<compile_context>
chip_gen: v5e
topology: v5e:2x2
jax: 0.10.0
libtpu: 0.0.40
codegen_flags: <defaults>
</compile_context>

<pallas_src>
import functools
import math

import numpy as np
import jax
import jax.numpy as jnp
from jax.experimental import pallas as pl
from jax.experimental.pallas import tpu as pltpu


# ---------------------------------------------------------------------------
# Static helpers (cached per spatial configuration)
# ---------------------------------------------------------------------------
@functools.lru_cache(maxsize=None)
def _interp_matrix_np(out_size, in_size):
    """align_corners=True bilinear interpolation matrix (out_size, in_size)."""
    A = np.zeros((out_size, in_size), dtype=np.float32)
    if out_size == 1:
        A[0, 0] = 1.0
        return A
    scale = (in_size - 1) / (out_size - 1)
    for i in range(out_size):
        pos = i * scale
        lo = int(math.floor(pos))
        hi = min(lo + 1, in_size - 1)
        frac = pos - lo
        A[i, lo] += 1.0 - frac
        A[i, hi] += frac
    return A


@functools.lru_cache(maxsize=None)
def _resize_matrix_T(h_in, w_in, h_out, w_out):
    """(h_in*w_in, h_out*w_out) bf16 so that  out_flat = x_flat @ R  resizes one image."""
    # TODO(synk): at large feature maps use the separable rows-then-cols form instead
    # of the Kronecker matrix (VMEM / FLOPs; matters on v7x's 64 MiB VMEM).
    R = np.kron(_interp_matrix_np(h_out, h_in), _interp_matrix_np(w_out, w_in))
    return jnp.asarray(R.T, dtype=jnp.bfloat16)


@functools.lru_cache(maxsize=None)
def _decim_matrix(h_in, w_in, h_out, w_out):
    """0/1 selection matrix (exact in bf16): stride-2 decimation of a stride-1 'same' conv."""
    S = np.zeros((h_in * w_in, h_out * w_out), np.float32)
    for ho in range(h_out):
        for wo in range(w_out):
            S[(2 * ho) * w_in + 2 * wo, ho * w_out + wo] = 1.0
    return jnp.asarray(S, dtype=jnp.bfloat16)


@functools.lru_cache(maxsize=None)
def _col_mask(h, w):
    """(3, h*w) validity masks for horizontal tap offsets dx in {0,1,2}."""
    wo = np.arange(h * w) % w
    m = np.stack([((wo + dx - 1 >= 0) & (wo + dx - 1 < w)).astype(np.float32)
                  for dx in range(3)])
    return jnp.asarray(m)


def _down_hw(hw):
    h, w = hw
    return ((h - 1) // 2 + 1, (w - 1) // 2 + 1)


def _pack_w2(w2):
    """(9, C_out, n_inner) -> (C_out, 9*n_inner) with K index = tap*n_inner + k."""
    t, o, k = w2.shape
    return jnp.transpose(w2, (1, 0, 2)).reshape(o, t * k)


_COMPILER_PARAMS = pltpu.CompilerParams(
    # The batch-group axis shards across TensorCores on v7x when NB >= 2.
    # TODO(synk): for N too small for a second grid step, lane-dense packing was
    # preferred over splitting the batch across the two v7x cores.
    dimension_semantics=("parallel",),
    vmem_limit_bytes=48 * 1024 * 1024,
)


# ---------------------------------------------------------------------------
# The single fused kernel: all ConvUpNormal layers + conv_last (+ trans)
# ---------------------------------------------------------------------------
def _block_kernel(*refs, cfg):
    n_in = cfg["n_in"]
    L = cfg["num_layers"]
    ins = refs[:n_in]
    outs = refs[n_in:n_in + L + 1]
    scratch = refs[n_in + L + 1:]
    G = cfg["G"]

    # Zero ONLY the gutter columns of the shifted-tap buffers (the interior is fully
    # rewritten for every image/layer).  Done unconditionally each grid step so it
    # stays correct when the 'parallel' batch axis is split across TensorCores.
    for gt in cfg["gutters"]:
        buf = scratch[gt["idx"]]
        Wd, HWd = gt["W"], gt["HW"]
        z = jnp.zeros((buf.shape[0], Wd + 1), buf.dtype)
        buf[:, :Wd + 1] = z
        buf[:, Wd + 1 + HWd:] = z

    def bottleneck_3x3(x2d, br):
        """1x1 conv+BN+ReLU -> 3x3 'same' conv as ONE stacked-K MXU matmul -> BN+ReLU."""
        Wd, HWd = br["W"], br["HW"]
        inter = jnp.dot(ins[br["w1"]][...], x2d.astype(jnp.bfloat16),
                        preferred_element_type=jnp.float32)
        inter = jnp.maximum(inter * ins[br["s1"]][...] + ins[br["b1"]][...], 0.0)
        ni = inter.shape[0]
        gut, stk = scratch[br["gut"]], scratch[br["stk"]]
        gut[:, Wd + 1:Wd + 1 + HWd] = inter               # interior; gutters stay zero
        mask = ins[br["mask"]][...]
        for dy in range(3):
            for dx in range(3):
                start = dy * Wd + dx
                tap = gut[:, start:start + HWd]
                if dx != 1:                               # left/right image-edge columns
                    tap = tap * mask[dx:dx + 1, :]
                stk[(dy * 3 + dx) * ni:(dy * 3 + dx + 1) * ni, :] = tap
        acc = jnp.dot(ins[br["w2"]][...], stk[...].astype(jnp.bfloat16),
                      preferred_element_type=jnp.float32)  # single K = 9*n_inner matmul
        return jnp.maximum(acc * ins[br["s2"]][...] + ins[br["b2"]][...], 0.0)

    fc = cfg["final"]
    HWf = fc["HW"]
    for g in range(G):                                     # images of this batch group
        for li, lc in enumerate(cfg["layers"]):
            HWc, HWo = lc["HW"], lc["HWo"]
            if li == 0:
                xg = ins[cfg["x_idx"]][g]                              # (Cx, HW)
            else:
                xg = outs[li - 1][0, :, g * HWc:(g + 1) * HWc]         # prev feat, in VMEM
            lowg = ins[lc["low_idx"]][g]

            res = bottleneck_3x3(xg, lc["normal"])                     # conv_normal(x)
            if lc["down"]:
                res = jnp.dot(res.astype(jnp.bfloat16), ins[lc["dec"]][...],
                              preferred_element_type=jnp.float32)      # stride-2 decimation
                r0 = jnp.dot(xg.astype(jnp.bfloat16), ins[lc["r_x"]][...],
                             preferred_element_type=jnp.float32)       # interp(x)
            else:
                r0 = xg                                                # same-size resize == id

            up = bottleneck_3x3(lowg, lc["up"])                        # conv_up(low)
            if lc["up_resize"]:
                up = jnp.dot(up.astype(jnp.bfloat16), ins[lc["r_up"]][...],
                             preferred_element_type=jnp.float32)       # interp(conv_up(low))

            # torch.cat([interp(x), interp(conv_up(low)), conv_normal(x)], dim=1),
            # staged straight into the lane-packed (VMEM-resident) output block.
            cx, cu = lc["Cx"], lc["Cu"]
            o = outs[li]
            o[0, :cx, g * HWo:(g + 1) * HWo] = r0.astype(o.dtype)
            o[0, cx:cx + cu, g * HWo:(g + 1) * HWo] = up.astype(o.dtype)
            o[0, cx + cu:, g * HWo:(g + 1) * HWo] = res.astype(o.dtype)

        # final: conv_last(low[-1]) -> resize -> cat([x, .], dim=1) -> optional trans
        lowg = ins[fc["low_idx"]][g]
        last = jnp.dot(ins[fc["w"]][...], lowg.astype(jnp.bfloat16),
                       preferred_element_type=jnp.float32)
        last = jnp.maximum(last * ins[fc["s"]][...] + ins[fc["b"]][...], 0.0)
        if fc["resize"]:
            last = jnp.dot(last.astype(jnp.bfloat16), ins[fc["r"]][...],
                           preferred_element_type=jnp.float32)
        xf = outs[L - 1][0, :, g * HWf:(g + 1) * HWf]
        o = outs[L]
        if fc["trans"]:
            # trans(cat([x, last], 1)) == wt[:, :Cx] @ x + wt[:, Cx:] @ last (pre-split)
            y = (jnp.dot(ins[fc["wt_x"]][...], xf.astype(jnp.bfloat16),
                         preferred_element_type=jnp.float32)
                 + jnp.dot(ins[fc["wt_l"]][...], last.astype(jnp.bfloat16),
                           preferred_element_type=jnp.float32))
            y = jnp.maximum(y * ins[fc["st"]][...] + ins[fc["bt"]][...], 0.0)
            o[0, :, g * HWf:(g + 1) * HWf] = y.astype(o.dtype)
        else:
            cxf = fc["Cxf"]
            o[0, :cxf, g * HWf:(g + 1) * HWf] = xf.astype(o.dtype)
            o[0, cxf:, g * HWf:(g + 1) * HWf] = last.astype(o.dtype)


# ---------------------------------------------------------------------------
# Wrapper: one pallas_call for the whole block (mirrors _BlockUpNormal.forward)
# ---------------------------------------------------------------------------
def block_up_normal_forward(x, low_feats, params, num_layers, trans_flag,
                            batch_tile=None):
    """x: (N, C, H, W); low_feats: list of num_layers+1 arrays (N, C_i, H_i, W_i).
    Returns (out_nchw, feats_nchw) like the PyTorch module."""
    N, Cx0, H0, W0 = x.shape
    x_flat = x.reshape(N, Cx0, H0 * W0)
    lows_flat = [t.reshape(N, t.shape[1], t.shape[2] * t.shape[3]) for t in low_feats]
    hw_lows = [(t.shape[2], t.shape[3]) for t in low_feats]

    # spatial size of each layer output
    hw = (H0, W0)
    hw_outs = []
    for i in range(num_layers):
        hw = _down_hw(hw) if params["layer_down"][i] else hw
        hw_outs.append(hw)
    min_hw = min([H0 * W0] + [h * w for h, w in hw_outs])

    # batch-group size G: pack images along the lane axis until the smallest output
    # stream is >= 128 lanes (dense, unmasked stores / writeback).
    if batch_tile is None:
        target = max(1, -(-128 // min_hw))
        G = next((g for g in range(1, N + 1) if N % g == 0 and g >= target), N)
    else:
        assert N % batch_tile == 0
        G = batch_tile
    NB = N // G

    inputs, in_specs = [], []
    scratch_shapes, gutters = [], []

    def add_rep(a):
        inputs.append(a)
        in_specs.append(pl.BlockSpec(a.shape, lambda n, _nd=a.ndim: (0,) * _nd))
        return len(inputs) - 1

    def add_batched(a):
        inputs.append(a)
        in_specs.append(pl.BlockSpec((G,) + a.shape[1:], lambda n: (n, 0, 0)))
        return len(inputs) - 1

    def add_gutter(rows, Wd, HWd):
        scratch_shapes.append(pltpu.VMEM((rows, HWd + 2 * Wd + 2), jnp.float32))
        gutters.append(dict(idx=len(scratch_shapes) - 1, W=Wd, HW=HWd))
        return len(scratch_shapes) - 1

    def add_stacked(rows, HWd):
        scratch_shapes.append(pltpu.VMEM((rows, HWd), jnp.float32))
        return len(scratch_shapes) - 1

    def add_branch(p, Wd, Hd):
        HWd = Hd * Wd
        n_inner = p["w1"].shape[0]
        return dict(
            W=Wd, HW=HWd,
            w1=add_rep(p["w1"]), s1=add_rep(p["s1"]), b1=add_rep(p["b1"]),
            w2=add_rep(_pack_w2(p["w2"])), s2=add_rep(p["s2"]), b2=add_rep(p["b2"]),
            mask=add_rep(_col_mask(Hd, Wd)),
            gut=add_gutter(n_inner, Wd, HWd),
            stk=add_stacked(9 * n_inner, HWd))

    x_idx = add_batched(x_flat)

    layer_cfgs = []
    cur_hw, cur_c = (H0, W0), Cx0
    for i in range(num_layers):
        H, W = cur_hw
        Hl, Wl = hw_lows[i]
        down = params["layer_down"][i]
        Ho, Wo = hw_outs[i]
        pn = params["layers"][i]["normal"]
        pu = params["layers"][i]["up"]
        Cn, Cu = pn["w2"].shape[1], pu["w2"].shape[1]
        lc = dict(
            HW=H * W, HWo=Ho * Wo, hw_out=(Ho, Wo),
            Cx=cur_c, Cu=Cu, Cn=Cn, C_out=cur_c + Cu + Cn,
            down=down, up_resize=(Hl, Wl) != (Ho, Wo),
            low_idx=add_batched(lows_flat[i]),
            normal=add_branch(pn, W, H),
            up=add_branch(pu, Wl, Hl))
        if lc["up_resize"]:
            lc["r_up"] = add_rep(_resize_matrix_T(Hl, Wl, Ho, Wo))
        if down:
            lc["r_x"] = add_rep(_resize_matrix_T(H, W, Ho, Wo))
            lc["dec"] = add_rep(_decim_matrix(H, W, Ho, Wo))
        layer_cfgs.append(lc)
        cur_hw, cur_c = (Ho, Wo), cur_c + Cu + Cn

    Hf, Wf = cur_hw
    HWf = Hf * Wf
    Hl, Wl = hw_lows[num_layers]
    p_last = params["conv_last"]
    Cc = p_last["w"].shape[0]
    fc = dict(HW=HWf, Cxf=cur_c, resize=(Hl, Wl) != (Hf, Wf), trans=trans_flag,
              low_idx=add_batched(lows_flat[num_layers]),
              w=add_rep(p_last["w"]), s=add_rep(p_last["s"]), b=add_rep(p_last["b"]))
    if fc["resize"]:
        fc["r"] = add_rep(_resize_matrix_T(Hl, Wl, Hf, Wf))
    if trans_flag:
        p_t = params["trans"]
        fc["wt_x"] = add_rep(p_t["w"][:, :cur_c])
        fc["wt_l"] = add_rep(p_t["w"][:, cur_c:])
        fc["st"] = add_rep(p_t["s"])
        fc["bt"] = add_rep(p_t["b"])
        Cout = p_t["w"].shape[0]
    else:
        Cout = cur_c + Cc

    out_shapes = [jax.ShapeDtypeStruct((NB, lc["C_out"], G * lc["HWo"]), jnp.float32)
                  for lc in layer_cfgs]
    out_shapes.append(jax.ShapeDtypeStruct((NB, Cout, G * HWf), jnp.float32))
    out_specs = [pl.BlockSpec((1, s.shape[1], s.shape[2]), lambda n: (n, 0, 0))
                 for s in out_shapes]

    cfg = dict(G=G, n_in=len(inputs), num_layers=num_layers, x_idx=x_idx,
               layers=layer_cfgs, final=fc, gutters=gutters)

    outs = pl.pallas_call(
        functools.partial(_block_kernel, cfg=cfg),
        out_shape=tuple(out_shapes),
        grid=(NB,),
        in_specs=in_specs,
        out_specs=tuple(out_specs),
        scratch_shapes=scratch_shapes,
        compiler_params=_COMPILER_PARAMS,
    )(*inputs)

    def unpack(a, hw_a):
        Hh, Ww = hw_a
        return (a.reshape(NB, a.shape[1], G, Hh, Ww)
                 .transpose(0, 2, 1, 3, 4)
                 .reshape(N, a.shape[1], Hh, Ww))

    feats = [x] + [unpack(outs[i], layer_cfgs[i]["hw_out"]) for i in range(num_layers)]
    out = unpack(outs[num_layers], (Hf, Wf))
    return out, feats


# ---------------------------------------------------------------------------
# Deterministic synthetic parameters (mirrors the module's __init__ shapes)
# ---------------------------------------------------------------------------
class _KeyGen:
    def __init__(self, key):
        self._key, self._i = key, 0

    def __call__(self):
        k = jax.random.fold_in(self._key, self._i)
        self._i += 1
        return k


def _bn_affine(kg, c):
    gamma = 1.0 + 0.1 * jax.random.normal(kg(), (c,), jnp.float32)
    beta = 0.1 * jax.random.normal(kg(), (c,), jnp.float32)
    mean = 0.1 * jax.random.normal(kg(), (c,), jnp.float32)
    var = jnp.abs(1.0 + 0.1 * jax.random.normal(kg(), (c,), jnp.float32))
    scale = gamma / jnp.sqrt(var + 1e-5)
    bias = beta - mean * scale
    return scale.reshape(c, 1), bias.reshape(c, 1)


def make_conv_with_bottleneck(kg, n_in, n_out, bn_width):
    n_inner = min(n_in, int(bn_width) * n_out)
    w1 = (jax.random.normal(kg(), (n_inner, n_in), jnp.float32)
          / math.sqrt(n_in)).astype(jnp.bfloat16)
    s1, b1 = _bn_affine(kg, n_inner)
    w2 = (jax.random.normal(kg(), (9, n_out, n_inner), jnp.float32)
          / math.sqrt(9 * n_inner)).astype(jnp.bfloat16)
    s2, b2 = _bn_affine(kg, n_out)
    return dict(w1=w1, s1=s1, b1=b1, w2=w2, s2=s2, b2=b2)


def make_conv_basic_1x1(kg, n_in, n_out):
    w = (jax.random.normal(kg(), (n_out, n_in), jnp.float32)
         / math.sqrt(n_in)).astype(jnp.bfloat16)
    s, b = _bn_affine(kg, n_out)
    return dict(w=w, s=s, b=b)


def make_block_params(key, num_layers, in_channels, nIn_lowFtrs, growth_rate,
                      reduction_rate, trans, whether_down_sample, compress_factor,
                      bottleneckFactor1, bottleneckFactor2):
    kg = _KeyGen(key)
    gr_up = math.floor(growth_rate * compress_factor)
    gr_normal = growth_rate - gr_up
    layers, layer_down = [], []
    for i in range(num_layers):
        down = whether_down_sample if i == num_layers - 1 else False
        in1 = in_channels + i * growth_rate
        in2 = nIn_lowFtrs[i]
        layers.append(dict(
            normal=make_conv_with_bottleneck(kg, in1, gr_normal, bottleneckFactor1),
            up=make_conv_with_bottleneck(kg, in2, gr_up, bottleneckFactor2)))
        layer_down.append(down)
    out_channels = in_channels + num_layers * growth_rate
    conv_last = make_conv_basic_1x1(kg, nIn_lowFtrs[num_layers],
                                    math.floor(out_channels * compress_factor))
    params = dict(layers=layers, layer_down=layer_down, conv_last=conv_last)
    if trans:
        oc2 = out_channels + math.floor(out_channels * compress_factor)
        params["trans"] = make_conv_basic_1x1(kg, oc2,
                                              math.floor(1.0 * reduction_rate * oc2))
    return params


# ---------------------------------------------------------------------------
# Pure-JAX reference (lax.conv / einsum, NCHW) used only for validation
# ---------------------------------------------------------------------------
def _ref_bottleneck(x, p, down):
    w1 = p["w1"].astype(jnp.float32)
    y = jnp.einsum("oi,nihw->nohw", w1, x, precision="highest")
    y = jnp.maximum(y * p["s1"].reshape(1, -1, 1, 1)
                    + p["b1"].reshape(1, -1, 1, 1), 0.0)
    w2 = p["w2"].astype(jnp.float32)
    o, c = w2.shape[1], w2.shape[2]
    w2 = w2.reshape(3, 3, o, c).transpose(2, 3, 0, 1)      # (O, I, kh, kw)
    s = 2 if down else 1
    y = jax.lax.conv_general_dilated(
        y, w2, (s, s), ((1, 1), (1, 1)),
        dimension_numbers=("NCHW", "OIHW", "NCHW"),
        precision=jax.lax.Precision.HIGHEST)
    return jnp.maximum(y * p["s2"].reshape(1, -1, 1, 1)
                       + p["b2"].reshape(1, -1, 1, 1), 0.0)


def _ref_conv1x1(x, p):
    w = p["w"].astype(jnp.float32)
    y = jnp.einsum("oi,nihw->nohw", w, x, precision="highest")
    return jnp.maximum(y * p["s"].reshape(1, -1, 1, 1)
                       + p["b"].reshape(1, -1, 1, 1), 0.0)


def _ref_resize(x, ho, wo):
    n, c, h, w = x.shape
    if (h, w) == (ho, wo):
        return x
    Ah = jnp.asarray(_interp_matrix_np(ho, h))
    Aw = jnp.asarray(_interp_matrix_np(wo, w))
    y = jnp.einsum("oh,nchw->ncow", Ah, x, precision="highest")
    return jnp.einsum("pw,ncow->ncop", Aw, y, precision="highest")


def _ref_block_forward(x, lows, params, num_layers, trans_flag):
    feats = [x]
    for i in range(num_layers):
        p = params["layers"][i]
        down = params["layer_down"][i]
        res = _ref_bottleneck(x, p["normal"], down)
        h, w = res.shape[2], res.shape[3]
        r0 = _ref_resize(x, h, w)
        r1 = _ref_resize(_ref_bottleneck(lows[i], p["up"], False), h, w)
        x = jnp.concatenate([r0, r1, res], axis=1)
        feats.append(x)
    h, w = x.shape[2], x.shape[3]
    last = _ref_resize(_ref_conv1x1(lows[num_layers], params["conv_last"]), h, w)
    x = jnp.concatenate([x, last], axis=1)
    if trans_flag:
        x = _ref_conv1x1(x, params["trans"])
    return x, feats


# ---------------------------------------------------------------------------
if __name__ == "__main__":
    key = jax.random.PRNGKey(0)

    # module-consistent small config
    num_layers = 2
    in_channels = 8
    growth_rate = 4
    nIn_lowFtrs = [4, 4, 4]            # len == num_layers + 1
    reduction_rate = 0.5
    trans_flag = True
    whether_down_sample = True
    compress_factor = 0.25
    bottleneckFactor1, bottleneckFactor2 = 2, 2
    N, H, W = 2, 16, 16
    Hl, Wl = 8, 8

    params = make_block_params(jax.random.fold_in(key, 1000), num_layers,
                               in_channels, nIn_lowFtrs, growth_rate,
                               reduction_rate, trans_flag, whether_down_sample,
                               compress_factor, bottleneckFactor1, bottleneckFactor2)

    # PyTorch-style NCHW inputs
    x_nchw = jax.random.normal(jax.random.fold_in(key, 1),
                               (N, in_channels, H, W), jnp.float32)
    low_nchw = [jax.random.normal(jax.random.fold_in(key, 2 + i),
                                  (N, nIn_lowFtrs[i], Hl, Wl), jnp.float32)
                for i in range(num_layers + 1)]

    fwd = jax.jit(lambda xx, ll: block_up_normal_forward(
        xx, ll, params, num_layers, trans_flag))
    out_nchw, feats_nchw = fwd(x_nchw, low_nchw)
    out_nchw = jax.block_until_ready(out_nchw)
    for f in feats_nchw:
        jax.block_until_ready(f)

    # expected: out channels = floor(0.5 * (16 + floor(16*0.25))) = 10, spatial 8x8
    assert out_nchw.shape == (2, 10, 8, 8), out_nchw.shape
    assert feats_nchw[0].shape == (2, 8, 16, 16)
    assert feats_nchw[1].shape == (2, 12, 16, 16)
    assert feats_nchw[2].shape == (2, 16, 8, 8)
    assert bool(jnp.all(jnp.isfinite(out_nchw)))

    # numerical check of the fused kernel against a plain lax.conv / einsum reference
    # (the kernel uses bf16 MXU operands with f32 accumulation, hence the loose tol)
    ref_out, ref_feats = _ref_block_forward(x_nchw, low_nchw, params,
                                            num_layers, trans_flag)
    np.testing.assert_allclose(np.asarray(out_nchw), np.asarray(ref_out),
                               rtol=0.1, atol=0.1)
    for f, rf in zip(feats_nchw, ref_feats):
        np.testing.assert_allclose(np.asarray(f), np.asarray(rf),
                                   rtol=0.1, atol=0.1)

    print("KERNEL_OK")
</pallas_src>

<mosaic_0001>
module attributes {stable_mosaic.version = 11 : i64} {
  func.func @_block_kernel(%arg0: i32, %arg1: memref<2x8x256xf32, #tpu.memory_space<vmem>>, %arg2: memref<2x4x64xf32, #tpu.memory_space<vmem>>, %arg3: memref<6x8xbf16, #tpu.memory_space<vmem>>, %arg4: memref<6x1xf32, #tpu.memory_space<vmem>>, %arg5: memref<6x1xf32, #tpu.memory_space<vmem>>, %arg6: memref<3x54xbf16, #tpu.memory_space<vmem>>, %arg7: memref<3x1xf32, #tpu.memory_space<vmem>>, %arg8: memref<3x1xf32, #tpu.memory_space<vmem>>, %arg9: memref<3x256xf32, #tpu.memory_space<vmem>>, %arg10: memref<2x4xbf16, #tpu.memory_space<vmem>>, %arg11: memref<2x1xf32, #tpu.memory_space<vmem>>, %arg12: memref<2x1xf32, #tpu.memory_space<vmem>>, %arg13: memref<1x18xbf16, #tpu.memory_space<vmem>>, %arg14: memref<1x1xf32, #tpu.memory_space<vmem>>, %arg15: memref<1x1xf32, #tpu.memory_space<vmem>>, %arg16: memref<3x64xf32, #tpu.memory_space<vmem>>, %arg17: memref<64x256xbf16, #tpu.memory_space<vmem>>, %arg18: memref<2x4x64xf32, #tpu.memory_space<vmem>>, %arg19: memref<6x12xbf16, #tpu.memory_space<vmem>>, %arg20: memref<6x1xf32, #tpu.memory_space<vmem>>, %arg21: memref<6x1xf32, #tpu.memory_space<vmem>>, %arg22: memref<3x54xbf16, #tpu.memory_space<vmem>>, %arg23: memref<3x1xf32, #tpu.memory_space<vmem>>, %arg24: memref<3x1xf32, #tpu.memory_space<vmem>>, %arg25: memref<3x256xf32, #tpu.memory_space<vmem>>, %arg26: memref<2x4xbf16, #tpu.memory_space<vmem>>, %arg27: memref<2x1xf32, #tpu.memory_space<vmem>>, %arg28: memref<2x1xf32, #tpu.memory_space<vmem>>, %arg29: memref<1x18xbf16, #tpu.memory_space<vmem>>, %arg30: memref<1x1xf32, #tpu.memory_space<vmem>>, %arg31: memref<1x1xf32, #tpu.memory_space<vmem>>, %arg32: memref<3x64xf32, #tpu.memory_space<vmem>>, %arg33: memref<256x64xbf16, #tpu.memory_space<vmem>>, %arg34: memref<256x64xbf16, #tpu.memory_space<vmem>>, %arg35: memref<2x4x64xf32, #tpu.memory_space<vmem>>, %arg36: memref<4x4xbf16, #tpu.memory_space<vmem>>, %arg37: memref<4x1xf32, #tpu.memory_space<vmem>>, %arg38: memref<4x1xf32, #tpu.memory_space<vmem>>, %arg39: memref<10x16xbf16, #tpu.memory_space<vmem>>, %arg40: memref<10x4xbf16, #tpu.memory_space<vmem>>, %arg41: memref<10x1xf32, #tpu.memory_space<vmem>>, %arg42: memref<10x1xf32, #tpu.memory_space<vmem>>, %arg43: memref<1x12x512xf32, #tpu.memory_space<vmem>>, %arg44: memref<1x16x128xf32, #tpu.memory_space<vmem>>, %arg45: memref<1x10x128xf32, #tpu.memory_space<vmem>>, %arg46: memref<6x290xf32, #tpu.memory_space<vmem>>, %arg47: memref<54x256xf32, #tpu.memory_space<vmem>>, %arg48: memref<2x82xf32, #tpu.memory_space<vmem>>, %arg49: memref<18x64xf32, #tpu.memory_space<vmem>>, %arg50: memref<6x290xf32, #tpu.memory_space<vmem>>, %arg51: memref<54x256xf32, #tpu.memory_space<vmem>>, %arg52: memref<2x82xf32, #tpu.memory_space<vmem>>, %arg53: memref<18x64xf32, #tpu.memory_space<vmem>>) attributes {dimension_semantics = [#tpu.dimension_semantics<parallel>], iteration_bounds = array<i64: 1>, scalar_prefetch = 0 : i64, scratch_operands = 8 : i64, tpu.core_type = #tpu.core_type<tc>, window_params = [{transform_indices = @transform_0, window_bounds = array<i64: 2, 8, 256>}, {transform_indices = @transform_1, window_bounds = array<i64: 2, 4, 64>}, {pipeline_mode = #tpu.pipeline_mode<synchronous>, transform_indices = @transform_2, window_bounds = array<i64: 6, 8>}, {pipeline_mode = #tpu.pipeline_mode<synchronous>, transform_indices = @transform_3, window_bounds = array<i64: 6, 1>}, {pipeline_mode = #tpu.pipeline_mode<synchronous>, transform_indices = @transform_4, window_bounds = array<i64: 6, 1>}, {pipeline_mode = #tpu.pipeline_mode<synchronous>, transform_indices = @transform_5, window_bounds = array<i64: 3, 54>}, {pipeline_mode = #tpu.pipeline_mode<synchronous>, transform_indices = @transform_6, window_bounds = array<i64: 3, 1>}, {pipeline_mode = #tpu.pipeline_mode<synchronous>, transform_indices = @transform_7, window_bounds = array<i64: 3, 1>}, {pipeline_mode = #tpu.pipeline_mode<synchronous>, transform_indices = @transform_8, window_bounds = array<i64: 3, 256>}, {pipeline_mode = #tpu.pipeline_mode<synchronous>, transform_indices = @transform_9, window_bounds = array<i64: 2, 4>}, {pipeline_mode = #tpu.pipeline_mode<synchronous>, transform_indices = @transform_10, window_bounds = array<i64: 2, 1>}, {pipeline_mode = #tpu.pipeline_mode<synchronous>, transform_indices = @transform_11, window_bounds = array<i64: 2, 1>}, {pipeline_mode = #tpu.pipeline_mode<synchronous>, transform_indices = @transform_12, window_bounds = array<i64: 1, 18>}, {pipeline_mode = #tpu.pipeline_mode<synchronous>, transform_indices = @transform_13, window_bounds = array<i64: 1, 1>}, {pipeline_mode = #tpu.pipeline_mode<synchronous>, transform_indices = @transform_14, window_bounds = array<i64: 1, 1>}, {pipeline_mode = #tpu.pipeline_mode<synchronous>, transform_indices = @transform_15, window_bounds = array<i64: 3, 64>}, {pipeline_mode = #tpu.pipeline_mode<synchronous>, transform_indices = @transform_16, window_bounds = array<i64: 64, 256>}, {transform_indices = @transform_17, window_bounds = array<i64: 2, 4, 64>}, {pipeline_mode = #tpu.pipeline_mode<synchronous>, transform_indices = @transform_18, window_bounds = array<i64: 6, 12>}, {pipeline_mode = #tpu.pipeline_mode<synchronous>, transform_indices = @transform_19, window_bounds = array<i64: 6, 1>}, {pipeline_mode = #tpu.pipeline_mode<synchronous>, transform_indices = @transform_20, window_bounds = array<i64: 6, 1>}, {pipeline_mode = #tpu.pipeline_mode<synchronous>, transform_indices = @transform_21, window_bounds = array<i64: 3, 54>}, {pipeline_mode = #tpu.pipeline_mode<synchronous>, transform_indices = @transform_22, window_bounds = array<i64: 3, 1>}, {pipeline_mode = #tpu.pipeline_mode<synchronous>, transform_indices = @transform_23, window_bounds = array<i64: 3, 1>}, {pipeline_mode = #tpu.pipeline_mode<synchronous>, transform_indices = @transform_24, window_bounds = array<i64: 3, 256>}, {pipeline_mode = #tpu.pipeline_mode<synchronous>, transform_indices = @transform_25, window_bounds = array<i64: 2, 4>}, {pipeline_mode = #tpu.pipeline_mode<synchronous>, transform_indices = @transform_26, window_bounds = array<i64: 2, 1>}, {pipeline_mode = #tpu.pipeline_mode<synchronous>, transform_indices = @transform_27, window_bounds = array<i64: 2, 1>}, {pipeline_mode = #tpu.pipeline_mode<synchronous>, transform_indices = @transform_28, window_bounds = array<i64: 1, 18>}, {pipeline_mode = #tpu.pipeline_mode<synchronous>, transform_indices = @transform_29, window_bounds = array<i64: 1, 1>}, {pipeline_mode = #tpu.pipeline_mode<synchronous>, transform_indices = @transform_30, window_bounds = array<i64: 1, 1>}, {pipeline_mode = #tpu.pipeline_mode<synchronous>, transform_indices = @transform_31, window_bounds = array<i64: 3, 64>}, {pipeline_mode = #tpu.pipeline_mode<synchronous>, transform_indices = @transform_32, window_bounds = array<i64: 256, 64>}, {pipeline_mode = #tpu.pipeline_mode<synchronous>, transform_indices = @transform_33, window_bounds = array<i64: 256, 64>}, {transform_indices = @transform_34, window_bounds = array<i64: 2, 4, 64>}, {pipeline_mode = #tpu.pipeline_mode<synchronous>, transform_indices = @transform_35, window_bounds = array<i64: 4, 4>}, {pipeline_mode = #tpu.pipeline_mode<synchronous>, transform_indices = @transform_36, window_bounds = array<i64: 4, 1>}, {pipeline_mode = #tpu.pipeline_mode<synchronous>, transform_indices = @transform_37, window_bounds = array<i64: 4, 1>}, {pipeline_mode = #tpu.pipeline_mode<synchronous>, transform_indices = @transform_38, window_bounds = array<i64: 10, 16>}, {pipeline_mode = #tpu.pipeline_mode<synchronous>, transform_indices = @transform_39, window_bounds = array<i64: 10, 4>}, {pipeline_mode = #tpu.pipeline_mode<synchronous>, transform_indices = @transform_40, window_bounds = array<i64: 10, 1>}, {pipeline_mode = #tpu.pipeline_mode<synchronous>, transform_indices = @transform_41, window_bounds = array<i64: 10, 1>}, {transform_indices = @transform_42, window_bounds = array<i64: 1, 12, 512>}, {transform_indices = @transform_43, window_bounds = array<i64: 1, 16, 128>}, {transform_indices = @transform_44, window_bounds = array<i64: 1, 10, 128>}]} {
    %cst = arith.constant 0.000000e+00 : f32
    %0 = vector.broadcast %cst : f32 to vector<6x17xf32>
    %c0 = arith.constant 0 : index
    %c0_0 = arith.constant 0 : index
    %1 = vector.load %arg46[%c0, %c0_0] : memref<6x290xf32, #tpu.memory_space<vmem>>, vector<6x17xf32>
    tpu.vector_store %arg46[%c0, %c0_0], %0 {strides = array<i32>} : memref<6x290xf32, #tpu.memory_space<vmem>>, vector<6x17xf32>,
    %c0_1 = arith.constant 0 : index
    %c273 = arith.constant 273 : index
    %2 = vector.load %arg46[%c0_1, %c273] : memref<6x290xf32, #tpu.memory_space<vmem>>, vector<6x17xf32>
    tpu.vector_store %arg46[%c0_1, %c273], %0 {strides = array<i32>} : memref<6x290xf32, #tpu.memory_space<vmem>>, vector<6x17xf32>,
    %cst_2 = arith.constant 0.000000e+00 : f32
    %3 = vector.broadcast %cst_2 : f32 to vector<2x9xf32>
    %c0_3 = arith.constant 0 : index
    %c0_4 = arith.constant 0 : index
    %4 = vector.load %arg48[%c0_3, %c0_4] : memref<2x82xf32, #tpu.memory_space<vmem>>, vector<2x9xf32>
    tpu.vector_store %arg48[%c0_3, %c0_4], %3 {strides = array<i32>} : memref<2x82xf32, #tpu.memory_space<vmem>>, vector<2x9xf32>,
    %c0_5 = arith.constant 0 : index
    %c73 = arith.constant 73 : index
    %5 = vector.load %arg48[%c0_5, %c73] : memref<2x82xf32, #tpu.memory_space<vmem>>, vector<2x9xf32>
    tpu.vector_store %arg48[%c0_5, %c73], %3 {strides = array<i32>} : memref<2x82xf32, #tpu.memory_space<vmem>>, vector<2x9xf32>,
    %cst_6 = arith.constant 0.000000e+00 : f32
    %6 = vector.broadcast %cst_6 : f32 to vector<6x17xf32>
    %c0_7 = arith.constant 0 : index
    %c0_8 = arith.constant 0 : index
    %7 = vector.load %arg50[%c0_7, %c0_8] : memref<6x290xf32, #tpu.memory_space<vmem>>, vector<6x17xf32>
    tpu.vector_store %arg50[%c0_7, %c0_8], %6 {strides = array<i32>} : memref<6x290xf32, #tpu.memory_space<vmem>>, vector<6x17xf32>,
    %c0_9 = arith.constant 0 : index
    %c273_10 = arith.constant 273 : index
    %8 = vector.load %arg50[%c0_9, %c273_10] : memref<6x290xf32, #tpu.memory_space<vmem>>, vector<6x17xf32>
    tpu.vector_store %arg50[%c0_9, %c273_10], %6 {strides = array<i32>} : memref<6x290xf32, #tpu.memory_space<vmem>>, vector<6x17xf32>,
    %cst_11 = arith.constant 0.000000e+00 : f32
    %9 = vector.broadcast %cst_11 : f32 to vector<2x9xf32>
    %c0_12 = arith.constant 0 : index
    %c0_13 = arith.constant 0 : index
    %10 = vector.load %arg52[%c0_12, %c0_13] : memref<2x82xf32, #tpu.memory_space<vmem>>, vector<2x9xf32>
    tpu.vector_store %arg52[%c0_12, %c0_13], %9 {strides = array<i32>} : memref<2x82xf32, #tpu.memory_space<vmem>>, vector<2x9xf32>,
    %c0_14 = arith.constant 0 : index
    %c73_15 = arith.constant 73 : index
    %11 = vector.load %arg52[%c0_14, %c73_15] : memref<2x82xf32, #tpu.memory_space<vmem>>, vector<2x9xf32>
    tpu.vector_store %arg52[%c0_14, %c73_15], %9 {strides = array<i32>} : memref<2x82xf32, #tpu.memory_space<vmem>>, vector<2x9xf32>,
    %c0_16 = arith.constant 0 : index
    %c0_17 = arith.constant 0 : index
    %c0_18 = arith.constant 0 : index
    %12 = vector.load %arg1[%c0_16, %c0_17, %c0_18] : memref<2x8x256xf32, #tpu.memory_space<vmem>>, vector<1x8x256xf32>
    %13 = vector.shape_cast %12 : vector<1x8x256xf32> to vector<8x256xf32>
    %c0_19 = arith.constant 0 : index
    %c0_20 = arith.constant 0 : index
    %c0_21 = arith.constant 0 : index
    %14 = vector.load %arg2[%c0_19, %c0_20, %c0_21] : memref<2x4x64xf32, #tpu.memory_space<vmem>>, vector<1x4x64xf32>
    %15 = vector.shape_cast %14 : vector<1x4x64xf32> to vector<4x64xf32>
    %c0_22 = arith.constant 0 : index
    %c0_23 = arith.constant 0 : index
    %16 = vector.load %arg3[%c0_22, %c0_23] : memref<6x8xbf16, #tpu.memory_space<vmem>>, vector<6x8xbf16>
    %17 = arith.truncf %13 : vector<8x256xf32> to vector<8x256xbf16>
    %cst_24 = arith.constant dense<0.000000e+00> : vector<6x256xf32>
    %18 = tpu.matmul %16, %17, %cst_24 {dimension_numbers = #tpu.dot_dimension_numbers<[1], [0], [0], [1], [0, 0, 1, 1], [], []>} : vector<6x8xbf16>, vector<8x256xbf16>, vector<6x256xf32> -> vector<6x256xf32>
    %c0_25 = arith.constant 0 : index
    %c0_26 = arith.constant 0 : index
    %19 = vector.load %arg4[%c0_25, %c0_26] : memref<6x1xf32, #tpu.memory_space<vmem>>, vector<6x1xf32>
    %20 = vector.broadcast %19 : vector<6x1xf32> to vector<6x256xf32>
    %21 = arith.mulf %18, %20 : vector<6x256xf32>
    %c0_27 = arith.constant 0 : index
    %c0_28 = arith.constant 0 : index
    %22 = vector.load %arg5[%c0_27, %c0_28] : memref<6x1xf32, #tpu.memory_space<vmem>>, vector<6x1xf32>
    %23 = vector.broadcast %22 : vector<6x1xf32> to vector<6x256xf32>
    %24 = arith.addf %21, %23 : vector<6x256xf32>
    %cst_29 = arith.constant 0.000000e+00 : f32
    %25 = vector.broadcast %cst_29 : f32 to vector<6x256xf32>
    %26 = arith.maximumf %24, %25 : vector<6x256xf32>
    %c0_30 = arith.constant 0 : index
    %c17 = arith.constant 17 : index
    %27 = vector.load %arg46[%c0_30, %c17] : memref<6x290xf32, #tpu.memory_space<vmem>>, vector<6x256xf32>
    tpu.vector_store %arg46[%c0_30, %c17], %26 {strides = array<i32>} : memref<6x290xf32, #tpu.memory_space<vmem>>, vector<6x256xf32>,
    %c0_31 = arith.constant 0 : index
    %c0_32 = arith.constant 0 : index
    %28 = vector.load %arg9[%c0_31, %c0_32] : memref<3x256xf32, #tpu.memory_space<vmem>>, vector<3x256xf32>
    %c0_33 = arith.constant 0 : index
    %c0_34 = arith.constant 0 : index
    %29 = vector.load %arg46[%c0_33, %c0_34] : memref<6x290xf32, #tpu.memory_space<vmem>>, vector<6x256xf32>
    %30 = vector.extract_strided_slice %28 {offsets = [0, 0], sizes = [1, 256], strides = [1, 1]} : vector<3x256xf32> to vector<1x256xf32>
    %31 = vector.broadcast %30 : vector<1x256xf32> to vector<6x256xf32>
    %32 = arith.mulf %29, %31 : vector<6x256xf32>
    %c0_35 = arith.constant 0 : index
    %c0_36 = arith.constant 0 : index
    %33 = vector.load %arg47[%c0_35, %c0_36] : memref<54x256xf32, #tpu.memory_space<vmem>>, vector<6x256xf32>
    tpu.vector_store %arg47[%c0_35, %c0_36], %32 {strides = array<i32>} : memref<54x256xf32, #tpu.memory_space<vmem>>, vector<6x256xf32>,
    %c0_37 = arith.constant 0 : index
    %c1 = arith.constant 1 : index
    %34 = vector.load %arg46[%c0_37, %c1] : memref<6x290xf32, #tpu.memory_space<vmem>>, vector<6x256xf32>
    %c6 = arith.constant 6 : index
    %c0_38 = arith.constant 0 : index
    %35 = vector.load %arg47[%c6, %c0_38] : memref<54x256xf32, #tpu.memory_space<vmem>>, vector<6x256xf32>
    tpu.vector_store %arg47[%c6, %c0_38], %34 {strides = array<i32>} : memref<54x256xf32, #tpu.memory_space<vmem>>, vector<6x256xf32>,
    %c0_39 = arith.constant 0 : index
    %c2 = arith.constant 2 : index
    %36 = vector.load %arg46[%c0_39, %c2] : memref<6x290xf32, #tpu.memory_space<vmem>>, vector<6x256xf32>
    %37 = vector.extract_strided_slice %28 {offsets = [2, 0], sizes = [1, 256], strides = [1, 1]} : vector<3x256xf32> to vector<1x256xf32>
    %38 = vector.broadcast %37 : vector<1x256xf32> to vector<6x256xf32>
    %39 = arith.mulf %36, %38 : vector<6x256xf32>
    %c12 = arith.constant 12 : index
    %c0_40 = arith.constant 0 : index
    %40 = vector.load %arg47[%c12, %c0_40] : memref<54x256xf32, #tpu.memory_space<vmem>>, vector<6x256xf32>
    tpu.vector_store %arg47[%c12, %c0_40], %39 {strides = array<i32>} : memref<54x256xf32, #tpu.memory_space<vmem>>, vector<6x256xf32>,
    %c0_41 = arith.constant 0 : index
    %c16 = arith.constant 16 : index
    %41 = vector.load %arg46[%c0_41, %c16] : memref<6x290xf32, #tpu.memory_space<vmem>>, vector<6x256xf32>
    %42 = vector.extract_strided_slice %28 {offsets = [0, 0], sizes = [1, 256], strides = [1, 1]} : vector<3x256xf32> to vector<1x256xf32>
    %43 = vector.broadcast %42 : vector<1x256xf32> to vector<6x256xf32>
    %44 = arith.mulf %41, %43 : vector<6x256xf32>
    %c18 = arith.constant 18 : index
    %c0_42 = arith.constant 0 : index
    %45 = vector.load %arg47[%c18, %c0_42] : memref<54x256xf32, #tpu.memory_space<vmem>>, vector<6x256xf32>
    tpu.vector_store %arg47[%c18, %c0_42], %44 {strides = array<i32>} : memref<54x256xf32, #tpu.memory_space<vmem>>, vector<6x256xf32>,
    %c0_43 = arith.constant 0 : index
    %c17_44 = arith.constant 17 : index
    %46 = vector.load %arg46[%c0_43, %c17_44] : memref<6x290xf32, #tpu.memory_space<vmem>>, vector<6x256xf32>
    %c24 = arith.constant 24 : index
    %c0_45 = arith.constant 0 : index
    %47 = vector.load %arg47[%c24, %c0_45] : memref<54x256xf32, #tpu.memory_space<vmem>>, vector<6x256xf32>
    tpu.vector_store %arg47[%c24, %c0_45], %46 {strides = array<i32>} : memref<54x256xf32, #tpu.memory_space<vmem>>, vector<6x256xf32>,
    %c0_46 = arith.constant 0 : index
    %c18_47 = arith.constant 18 : index
    %48 = vector.load %arg46[%c0_46, %c18_47] : memref<6x290xf32, #tpu.memory_space<vmem>>, vector<6x256xf32>
    %49 = vector.extract_strided_slice %28 {offsets = [2, 0], sizes = [1, 256], strides = [1, 1]} : vector<3x256xf32> to vector<1x256xf32>
    %50 = vector.broadcast %49 : vector<1x256xf32> to vector<6x256xf32>
    %51 = arith.mulf %48, %50 : vector<6x256xf32>
    %c30 = arith.constant 30 : index
    %c0_48 = arith.constant 0 : index
    %52 = vector.load %arg47[%c30, %c0_48] : memref<54x256xf32, #tpu.memory_space<vmem>>, vector<6x256xf32>
    tpu.vector_store %arg47[%c30, %c0_48], %51 {strides = array<i32>} : memref<54x256xf32, #tpu.memory_space<vmem>>, vector<6x256xf32>,
    %c0_49 = arith.constant 0 : index
    %c32 = arith.constant 32 : index
    %53 = vector.load %arg46[%c0_49, %c32] : memref<6x290xf32, #tpu.memory_space<vmem>>, vector<6x256xf32>
    %54 = vector.extract_strided_slice %28 {offsets = [0, 0], sizes = [1, 256], strides = [1, 1]} : vector<3x256xf32> to vector<1x256xf32>
    %55 = vector.broadcast %54 : vector<1x256xf32> to vector<6x256xf32>
    %56 = arith.mulf %53, %55 : vector<6x256xf32>
    %c36 = arith.constant 36 : index
    %c0_50 = arith.constant 0 : index
    %57 = vector.load %arg47[%c36, %c0_50] : memref<54x256xf32, #tpu.memory_space<vmem>>, vector<6x256xf32>
    tpu.vector_store %arg47[%c36, %c0_50], %56 {strides = array<i32>} : memref<54x256xf32, #tpu.memory_space<vmem>>, vector<6x256xf32>,
    %c0_51 = arith.constant 0 : index
    %c33 = arith.constant 33 : index
    %58 = vector.load %arg46[%c0_51, %c33] : memref<6x290xf32, #tpu.memory_space<vmem>>, vector<6x256xf32>
    %c42 = arith.constant 42 : index
    %c0_52 = arith.constant 0 : index
    %59 = vector.load %arg47[%c42, %c0_52] : memref<54x256xf32, #tpu.memory_space<vmem>>, vector<6x256xf32>
    tpu.vector_store %arg47[%c42, %c0_52], %58 {strides = array<i32>} : memref<54x256xf32, #tpu.memory_space<vmem>>, vector<6x256xf32>,
    %c0_53 = arith.constant 0 : index
    %c34 = arith.constant 34 : index
    %60 = vector.load %arg46[%c0_53, %c34] : memref<6x290xf32, #tpu.memory_space<vmem>>, vector<6x256xf32>
    %61 = vector.extract_strided_slice %28 {offsets = [2, 0], sizes = [1, 256], strides = [1, 1]} : vector<3x256xf32> to vector<1x256xf32>
    %62 = vector.broadcast %61 : vector<1x256xf32> to vector<6x256xf32>
    %63 = arith.mulf %60, %62 : vector<6x256xf32>
    %c48 = arith.constant 48 : index
    %c0_54 = arith.constant 0 : index
    %64 = vector.load %arg47[%c48, %c0_54] : memref<54x256xf32, #tpu.memory_space<vmem>>, vector<6x256xf32>
    tpu.vector_store %arg47[%c48, %c0_54], %63 {strides = array<i32>} : memref<54x256xf32, #tpu.memory_space<vmem>>, vector<6x256xf32>,
    %c0_55 = arith.constant 0 : index
    %c0_56 = arith.constant 0 : index
    %65 = vector.load %arg6[%c0_55, %c0_56] : memref<3x54xbf16, #tpu.memory_space<vmem>>, vector<3x54xbf16>
    %c0_57 = arith.constant 0 : index
    %c0_58 = arith.constant 0 : index
    %66 = vector.load %arg47[%c0_57, %c0_58] : memref<54x256xf32, #tpu.memory_space<vmem>>, vector<54x256xf32>
    %67 = arith.truncf %66 : vector<54x256xf32> to vector<54x256xbf16>
    %cst_59 = arith.constant dense<0.000000e+00> : vector<3x256xf32>
    %68 = tpu.matmul %65, %67, %cst_59 {dimension_numbers = #tpu.dot_dimension_numbers<[1], [0], [0], [1], [0, 0, 1, 1], [], []>} : vector<3x54xbf16>, vector<54x256xbf16>, vector<3x256xf32> -> vector<3x256xf32>
    %c0_60 = arith.constant 0 : index
    %c0_61 = arith.constant 0 : index
    %69 = vector.load %arg7[%c0_60, %c0_61] : memref<3x1xf32, #tpu.memory_space<vmem>>, vector<3x1xf32>
    %70 = vector.broadcast %69 : vector<3x1xf32> to vector<3x256xf32>
    %71 = arith.mulf %68, %70 : vector<3x256xf32>
    %c0_62 = arith.constant 0 : index
    %c0_63 = arith.constant 0 : index
    %72 = vector.load %arg8[%c0_62, %c0_63] : memref<3x1xf32, #tpu.memory_space<vmem>>, vector<3x1xf32>
    %73 = vector.broadcast %72 : vector<3x1xf32> to vector<3x256xf32>
    %74 = arith.addf %71, %73 : vector<3x256xf32>
    %cst_64 = arith.constant 0.000000e+00 : f32
    %75 = vector.broadcast %cst_64 : f32 to vector<3x256xf32>
    %76 = arith.maximumf %74, %75 : vector<3x256xf32>
    %c0_65 = arith.constant 0 : index
    %c0_66 = arith.constant 0 : index
    %77 = vector.load %arg10[%c0_65, %c0_66] : memref<2x4xbf16, #tpu.memory_space<vmem>>, vector<2x4xbf16>
    %78 = arith.truncf %15 : vector<4x64xf32> to vector<4x64xbf16>
    %cst_67 = arith.constant dense<0.000000e+00> : vector<2x64xf32>
    %79 = tpu.matmul %77, %78, %cst_67 {dimension_numbers = #tpu.dot_dimension_numbers<[1], [0], [0], [1], [0, 0, 1, 1], [], []>} : vector<2x4xbf16>, vector<4x64xbf16>, vector<2x64xf32> -> vector<2x64xf32>
    %c0_68 = arith.constant 0 : index
    %c0_69 = arith.constant 0 : index
    %80 = vector.load %arg11[%c0_68, %c0_69] : memref<2x1xf32, #tpu.memory_space<vmem>>, vector<2x1xf32>
    %81 = vector.broadcast %80 : vector<2x1xf32> to vector<2x64xf32>
    %82 = arith.mulf %79, %81 : vector<2x64xf32>
    %c0_70 = arith.constant 0 : index
    %c0_71 = arith.constant 0 : index
    %83 = vector.load %arg12[%c0_70, %c0_71] : memref<2x1xf32, #tpu.memory_space<vmem>>, vector<2x1xf32>
    %84 = vector.broadcast %83 : vector<2x1xf32> to vector<2x64xf32>
    %85 = arith.addf %82, %84 : vector<2x64xf32>
    %cst_72 = arith.constant 0.000000e+00 : f32
    %86 = vector.broadcast %cst_72 : f32 to vector<2x64xf32>
    %87 = arith.maximumf %85, %86 : vector<2x64xf32>
    %c0_73 = arith.constant 0 : index
    %c9 = arith.constant 9 : index
    %88 = vector.load %arg48[%c0_73, %c9] : memref<2x82xf32, #tpu.memory_space<vmem>>, vector<2x64xf32>
    tpu.vector_store %arg48[%c0_73, %c9], %87 {strides = array<i32>} : memref<2x82xf32, #tpu.memory_space<vmem>>, vector<2x64xf32>,
    %c0_74 = arith.constant 0 : index
    %c0_75 = arith.constant 0 : index
    %89 = vector.load %arg16[%c0_74, %c0_75] : memref<3x64xf32, #tpu.memory_space<vmem>>, vector<3x64xf32>
    %c0_76 = arith.constant 0 : index
    %c0_77 = arith.constant 0 : index
    %90 = vector.load %arg48[%c0_76, %c0_77] : memref<2x82xf32, #tpu.memory_space<vmem>>, vector<2x64xf32>
    %91 = vector.extract_strided_slice %89 {offsets = [0, 0], sizes = [1, 64], strides = [1, 1]} : vector<3x64xf32> to vector<1x64xf32>
    %92 = vector.broadcast %91 : vector<1x64xf32> to vector<2x64xf32>
    %93 = arith.mulf %90, %92 : vector<2x64xf32>
    %c0_78 = arith.constant 0 : index
    %c0_79 = arith.constant 0 : index
    %94 = vector.load %arg49[%c0_78, %c0_79] : memref<18x64xf32, #tpu.memory_space<vmem>>, vector<2x64xf32>
    tpu.vector_store %arg49[%c0_78, %c0_79], %93 {strides = array<i32>} : memref<18x64xf32, #tpu.memory_space<vmem>>, vector<2x64xf32>,
    %c0_80 = arith.constant 0 : index
    %c1_81 = arith.constant 1 : index
    %95 = vector.load %arg48[%c0_80, %c1_81] : memref<2x82xf32, #tpu.memory_space<vmem>>, vector<2x64xf32>
    %c2_82 = arith.constant 2 : index
    %c0_83 = arith.constant 0 : index
    %96 = vector.load %arg49[%c2_82, %c0_83] : memref<18x64xf32, #tpu.memory_space<vmem>>, vector<2x64xf32>
    tpu.vector_store %arg49[%c2_82, %c0_83], %95 {strides = array<i32>} : memref<18x64xf32, #tpu.memory_space<vmem>>, vector<2x64xf32>,
    %c0_84 = arith.constant 0 : index
    %c2_85 = arith.constant 2 : index
    %97 = vector.load %arg48[%c0_84, %c2_85] : memref<2x82xf32, #tpu.memory_space<vmem>>, vector<2x64xf32>
    %98 = vector.extract_strided_slice %89 {offsets = [2, 0], sizes = [1, 64], strides = [1, 1]} : vector<3x64xf32> to vector<1x64xf32>
    %99 = vector.broadcast %98 : vector<1x64xf32> to vector<2x64xf32>
    %100 = arith.mulf %97, %99 : vector<2x64xf32>
    %c4 = arith.constant 4 : index
    %c0_86 = arith.constant 0 : index
    %101 = vector.load %arg49[%c4, %c0_86] : memref<18x64xf32, #tpu.memory_space<vmem>>, vector<2x64xf32>
    tpu.vector_store %arg49[%c4, %c0_86], %100 {strides = array<i32>} : memref<18x64xf32, #tpu.memory_space<vmem>>, vector<2x64xf32>,
    %c0_87 = arith.constant 0 : index
    %c8 = arith.constant 8 : index
    %102 = vector.load %arg48[%c0_87, %c8] : memref<2x82xf32, #tpu.memory_space<vmem>>, vector<2x64xf32>
    %103 = vector.extract_strided_slice %89 {offsets = [0, 0], sizes = [1, 64], strides = [1, 1]} : vector<3x64xf32> to vector<1x64xf32>
    %104 = vector.broadcast %103 : vector<1x64xf32> to vector<2x64xf32>
    %105 = arith.mulf %102, %104 : vector<2x64xf32>
    %c6_88 = arith.constant 6 : index
    %c0_89 = arith.constant 0 : index
    %106 = vector.load %arg49[%c6_88, %c0_89] : memref<18x64xf32, #tpu.memory_space<vmem>>, vector<2x64xf32>
    tpu.vector_store %arg49[%c6_88, %c0_89], %105 {strides = array<i32>} : memref<18x64xf32, #tpu.memory_space<vmem>>, vector<2x64xf32>,
    %c0_90 = arith.constant 0 : index
    %c9_91 = arith.constant 9 : index
    %107 = vector.load %arg48[%c0_90, %c9_91] : memref<2x82xf32, #tpu.memory_space<vmem>>, vector<2x64xf32>
    %c8_92 = arith.constant 8 : index
    %c0_93 = arith.constant 0 : index
    %108 = vector.load %arg49[%c8_92, %c0_93] : memref<18x64xf32, #tpu.memory_space<vmem>>, vector<2x64xf32>
    tpu.vector_store %arg49[%c8_92, %c0_93], %107 {strides = array<i32>} : memref<18x64xf32, #tpu.memory_space<vmem>>, vector<2x64xf32>,
    %c0_94 = arith.constant 0 : index
    %c10 = arith.constant 10 : index
    %109 = vector.load %arg48[%c0_94, %c10] : memref<2x82xf32, #tpu.memory_space<vmem>>, vector<2x64xf32>
    %110 = vector.extract_strided_slice %89 {offsets = [2, 0], sizes = [1, 64], strides = [1, 1]} : vector<3x64xf32> to vector<1x64xf32>
    %111 = vector.broadcast %110 : vector<1x64xf32> to vector<2x64xf32>
    %112 = arith.mulf %109, %111 : vector<2x64xf32>
    %c10_95 = arith.constant 10 : index
    %c0_96 = arith.constant 0 : index
    %113 = vector.load %arg49[%c10_95, %c0_96] : memref<18x64xf32, #tpu.memory_space<vmem>>, vector<2x64xf32>
    tpu.vector_store %arg49[%c10_95, %c0_96], %112 {strides = array<i32>} : memref<18x64xf32, #tpu.memory_space<vmem>>, vector<2x64xf32>,
    %c0_97 = arith.constant 0 : index
    %c16_98 = arith.constant 16 : index
    %114 = vector.load %arg48[%c0_97, %c16_98] : memref<2x82xf32, #tpu.memory_space<vmem>>, vector<2x64xf32>
    %115 = vector.extract_strided_slice %89 {offsets = [0, 0], sizes = [1, 64], strides = [1, 1]} : vector<3x64xf32> to vector<1x64xf32>
    %116 = vector.broadcast %115 : vector<1x64xf32> to vector<2x64xf32>
    %117 = arith.mulf %114, %116 : vector<2x64xf32>
    %c12_99 = arith.constant 12 : index
    %c0_100 = arith.constant 0 : index
    %118 = vector.load %arg49[%c12_99, %c0_100] : memref<18x64xf32, #tpu.memory_space<vmem>>, vector<2x64xf32>
    tpu.vector_store %arg49[%c12_99, %c0_100], %117 {strides = array<i32>} : memref<18x64xf32, #tpu.memory_space<vmem>>, vector<2x64xf32>,
    %c0_101 = arith.constant 0 : index
    %c17_102 = arith.constant 17 : index
    %119 = vector.load %arg48[%c0_101, %c17_102] : memref<2x82xf32, #tpu.memory_space<vmem>>, vector<2x64xf32>
    %c14 = arith.constant 14 : index
    %c0_103 = arith.constant 0 : index
    %120 = vector.load %arg49[%c14, %c0_103] : memref<18x64xf32, #tpu.memory_space<vmem>>, vector<2x64xf32>
    tpu.vector_store %arg49[%c14, %c0_103], %119 {strides = array<i32>} : memref<18x64xf32, #tpu.memory_space<vmem>>, vector<2x64xf32>,
    %c0_104 = arith.constant 0 : index
    %c18_105 = arith.constant 18 : index
    %121 = vector.load %arg48[%c0_104, %c18_105] : memref<2x82xf32, #tpu.memory_space<vmem>>, vector<2x64xf32>
    %122 = vector.extract_strided_slice %89 {offsets = [2, 0], sizes = [1, 64], strides = [1, 1]} : vector<3x64xf32> to vector<1x64xf32>
    %123 = vector.broadcast %122 : vector<1x64xf32> to vector<2x64xf32>
    %124 = arith.mulf %121, %123 : vector<2x64xf32>
    %c16_106 = arith.constant 16 : index
    %c0_107 = arith.constant 0 : index
    %125 = vector.load %arg49[%c16_106, %c0_107] : memref<18x64xf32, #tpu.memory_space<vmem>>, vector<2x64xf32>
    tpu.vector_store %arg49[%c16_106, %c0_107], %124 {strides = array<i32>} : memref<18x64xf32, #tpu.memory_space<vmem>>, vector<2x64xf32>,
    %c0_108 = arith.constant 0 : index
    %c0_109 = arith.constant 0 : index
    %126 = vector.load %arg13[%c0_108, %c0_109] : memref<1x18xbf16, #tpu.memory_space<vmem>>, vector<1x18xbf16>
    %c0_110 = arith.constant 0 : index
    %c0_111 = arith.constant 0 : index
    %127 = vector.load %arg49[%c0_110, %c0_111] : memref<18x64xf32, #tpu.memory_space<vmem>>, vector<18x64xf32>
    %128 = arith.truncf %127 : vector<18x64xf32> to vector<18x64xbf16>
    %cst_112 = arith.constant dense<0.000000e+00> : vector<1x64xf32>
    %129 = tpu.matmul %126, %128, %cst_112 {dimension_numbers = #tpu.dot_dimension_numbers<[1], [0], [0], [1], [0, 0, 1, 1], [], []>} : vector<1x18xbf16>, vector<18x64xbf16>, vector<1x64xf32> -> vector<1x64xf32>
    %c0_113 = arith.constant 0 : index
    %c0_114 = arith.constant 0 : index
    %130 = vector.load %arg14[%c0_113, %c0_114] : memref<1x1xf32, #tpu.memory_space<vmem>>, vector<1x1xf32>
    %131 = vector.broadcast %130 : vector<1x1xf32> to vector<1x64xf32>
    %132 = arith.mulf %129, %131 : vector<1x64xf32>
    %c0_115 = arith.constant 0 : index
    %c0_116 = arith.constant 0 : index
    %133 = vector.load %arg15[%c0_115, %c0_116] : memref<1x1xf32, #tpu.memory_space<vmem>>, vector<1x1xf32>
    %134 = vector.broadcast %133 : vector<1x1xf32> to vector<1x64xf32>
    %135 = arith.addf %132, %134 : vector<1x64xf32>
    %cst_117 = arith.constant 0.000000e+00 : f32
    %136 = vector.broadcast %cst_117 : f32 to vector<1x64xf32>
    %137 = arith.maximumf %135, %136 : vector<1x64xf32>
    %138 = arith.truncf %137 : vector<1x64xf32> to vector<1x64xbf16>
    %c0_118 = arith.constant 0 : index
    %c0_119 = arith.constant 0 : index
    %139 = vector.load %arg17[%c0_118, %c0_119] : memref<64x256xbf16, #tpu.memory_space<vmem>>, vector<64x256xbf16>
    %cst_120 = arith.constant dense<0.000000e+00> : vector<1x256xf32>
    %140 = tpu.matmul %138, %139, %cst_120 {dimension_numbers = #tpu.dot_dimension_numbers<[1], [0], [0], [1], [0, 0, 1, 1], [], []>} : vector<1x64xbf16>, vector<64x256xbf16>, vector<1x256xf32> -> vector<1x256xf32>
    %c0_121 = arith.constant 0 : index
    %c0_122 = arith.constant 0 : index
    %c0_123 = arith.constant 0 : index
    %141 = vector.load %arg43[%c0_121, %c0_122, %c0_123] : memref<1x12x512xf32, #tpu.memory_space<vmem>>, vector<1x8x256xf32>
    %142 = vector.shape_cast %141 : vector<1x8x256xf32> to vector<8x256xf32>
    %143 = vector.shape_cast %13 : vector<8x256xf32> to vector<1x8x256xf32>
    tpu.vector_store %arg43[%c0_121, %c0_122, %c0_123], %143 {strides = array<i32>} : memref<1x12x512xf32, #tpu.memory_space<vmem>>, vector<1x8x256xf32>,
    %c0_124 = arith.constant 0 : index
    %c8_125 = arith.constant 8 : index
    %c0_126 = arith.constant 0 : index
    %144 = vector.load %arg43[%c0_124, %c8_125, %c0_126] : memref<1x12x512xf32, #tpu.memory_space<vmem>>, vector<1x1x256xf32>
    %145 = vector.shape_cast %144 : vector<1x1x256xf32> to vector<1x256xf32>
    %146 = vector.shape_cast %140 : vector<1x256xf32> to vector<1x1x256xf32>
    tpu.vector_store %arg43[%c0_124, %c8_125, %c0_126], %146 {strides = array<i32>} : memref<1x12x512xf32, #tpu.memory_space<vmem>>, vector<1x1x256xf32>,
    %c0_127 = arith.constant 0 : index
    %c9_128 = arith.constant 9 : index
    %c0_129 = arith.constant 0 : index
    %147 = vector.load %arg43[%c0_127, %c9_128, %c0_129] : memref<1x12x512xf32, #tpu.memory_space<vmem>>, vector<1x3x256xf32>
    %148 = vector.shape_cast %147 : vector<1x3x256xf32> to vector<3x256xf32>
    %149 = vector.shape_cast %76 : vector<3x256xf32> to vector<1x3x256xf32>
    tpu.vector_store %arg43[%c0_127, %c9_128, %c0_129], %149 {strides = array<i32>} : memref<1x12x512xf32, #tpu.memory_space<vmem>>, vector<1x3x256xf32>,
    %c0_130 = arith.constant 0 : index
    %c0_131 = arith.constant 0 : index
    %c0_132 = arith.constant 0 : index
    %150 = vector.load %arg43[%c0_130, %c0_131, %c0_132] : memref<1x12x512xf32, #tpu.memory_space<vmem>>, vector<1x12x256xf32>
    %151 = vector.shape_cast %150 : vector<1x12x256xf32> to vector<12x256xf32>
    %c0_133 = arith.constant 0 : index
    %c0_134 = arith.constant 0 : index
    %c0_135 = arith.constant 0 : index
    %152 = vector.load %arg18[%c0_133, %c0_134, %c0_135] : memref<2x4x64xf32, #tpu.memory_space<vmem>>, vector<1x4x64xf32>
    %153 = vector.shape_cast %152 : vector<1x4x64xf32> to vector<4x64xf32>
    %c0_136 = arith.constant 0 : index
    %c0_137 = arith.constant 0 : index
    %154 = vector.load %arg19[%c0_136, %c0_137] : memref<6x12xbf16, #tpu.memory_space<vmem>>, vector<6x12xbf16>
    %155 = arith.truncf %151 : vector<12x256xf32> to vector<12x256xbf16>
    %cst_138 = arith.constant dense<0.000000e+00> : vector<6x256xf32>
    %156 = tpu.matmul %154, %155, %cst_138 {dimension_numbers = #tpu.dot_dimension_numbers<[1], [0], [0], [1], [0, 0, 1, 1], [], []>} : vector<6x12xbf16>, vector<12x256xbf16>, vector<6x256xf32> -> vector<6x256xf32>
    %c0_139 = arith.constant 0 : index
    %c0_140 = arith.constant 0 : index
    %157 = vector.load %arg20[%c0_139, %c0_140] : memref<6x1xf32, #tpu.memory_space<vmem>>, vector<6x1xf32>
    %158 = vector.broadcast %157 : vector<6x1xf32> to vector<6x256xf32>
    %159 = arith.mulf %156, %158 : vector<6x256xf32>
    %c0_141 = arith.constant 0 : index
    %c0_142 = arith.constant 0 : index
    %160 = vector.load %arg21[%c0_141, %c0_142] : memref<6x1xf32, #tpu.memory_space<vmem>>, vector<6x1xf32>
    %161 = vector.broadcast %160 : vector<6x1xf32> to vector<6x256xf32>
    %162 = arith.addf %159, %161 : vector<6x256xf32>
    %cst_143 = arith.constant 0.000000e+00 : f32
    %163 = vector.broadcast %cst_143 : f32 to vector<6x256xf32>
    %164 = arith.maximumf %162, %163 : vector<6x256xf32>
    %c0_144 = arith.constant 0 : index
    %c17_145 = arith.constant 17 : index
    %165 = vector.load %arg50[%c0_144, %c17_145] : memref<6x290xf32, #tpu.memory_space<vmem>>, vector<6x256xf32>
    tpu.vector_store %arg50[%c0_144, %c17_145], %164 {strides = array<i32>} : memref<6x290xf32, #tpu.memory_space<vmem>>, vector<6x256xf32>,
    %c0_146 = arith.constant 0 : index
    %c0_147 = arith.constant 0 : index
    %166 = vector.load %arg25[%c0_146, %c0_147] : memref<3x256xf32, #tpu.memory_space<vmem>>, vector<3x256xf32>
    %c0_148 = arith.constant 0 : index
    %c0_149 = arith.constant 0 : index
    %167 = vector.load %arg50[%c0_148, %c0_149] : memref<6x290xf32, #tpu.memory_space<vmem>>, vector<6x256xf32>
    %168 = vector.extract_strided_slice %166 {offsets = [0, 0], sizes = [1, 256], strides = [1, 1]} : vector<3x256xf32> to vector<1x256xf32>
    %169 = vector.broadcast %168 : vector<1x256xf32> to vector<6x256xf32>
    %170 = arith.mulf %167, %169 : vector<6x256xf32>
    %c0_150 = arith.constant 0 : index
    %c0_151 = arith.constant 0 : index
    %171 = vector.load %arg51[%c0_150, %c0_151] : memref<54x256xf32, #tpu.memory_space<vmem>>, vector<6x256xf32>
    tpu.vector_store %arg51[%c0_150, %c0_151], %170 {strides = array<i32>} : memref<54x256xf32, #tpu.memory_space<vmem>>, vector<6x256xf32>,
    %c0_152 = arith.constant 0 : index
    %c1_153 = arith.constant 1 : index
    %172 = vector.load %arg50[%c0_152, %c1_153] : memref<6x290xf32, #tpu.memory_space<vmem>>, vector<6x256xf32>
    %c6_154 = arith.constant 6 : index
    %c0_155 = arith.constant 0 : index
    %173 = vector.load %arg51[%c6_154, %c0_155] : memref<54x256xf32, #tpu.memory_space<vmem>>, vector<6x256xf32>
    tpu.vector_store %arg51[%c6_154, %c0_155], %172 {strides = array<i32>} : memref<54x256xf32, #tpu.memory_space<vmem>>, vector<6x256xf32>,
    %c0_156 = arith.constant 0 : index
    %c2_157 = arith.constant 2 : index
    %174 = vector.load %arg50[%c0_156, %c2_157] : memref<6x290xf32, #tpu.memory_space<vmem>>, vector<6x256xf32>
    %175 = vector.extract_strided_slice %166 {offsets = [2, 0], sizes = [1, 256], strides = [1, 1]} : vector<3x256xf32> to vector<1x256xf32>
    %176 = vector.broadcast %175 : vector<1x256xf32> to vector<6x256xf32>
    %177 = arith.mulf %174, %176 : vector<6x256xf32>
    %c12_158 = arith.constant 12 : index
    %c0_159 = arith.constant 0 : index
    %178 = vector.load %arg51[%c12_158, %c0_159] : memref<54x256xf32, #tpu.memory_space<vmem>>, vector<6x256xf32>
    tpu.vector_store %arg51[%c12_158, %c0_159], %177 {strides = array<i32>} : memref<54x256xf32, #tpu.memory_space<vmem>>, vector<6x256xf32>,
    %c0_160 = arith.constant 0 : index
    %c16_161 = arith.constant 16 : index
    %179 = vector.load %arg50[%c0_160, %c16_161] : memref<6x290xf32, #tpu.memory_space<vmem>>, vector<6x256xf32>
    %180 = vector.extract_strided_slice %166 {offsets = [0, 0], sizes = [1, 256], strides = [1, 1]} : vector<3x256xf32> to vector<1x256xf32>
    %181 = vector.broadcast %180 : vector<1x256xf32> to vector<6x256xf32>
    %182 = arith.mulf %179, %181 : vector<6x256xf32>
    %c18_162 = arith.constant 18 : index
    %c0_163 = arith.constant 0 : index
    %183 = vector.load %arg51[%c18_162, %c0_163] : memref<54x256xf32, #tpu.memory_space<vmem>>, vector<6x256xf32>
    tpu.vector_store %arg51[%c18_162, %c0_163], %182 {strides = array<i32>} : memref<54x256xf32, #tpu.memory_space<vmem>>, vector<6x256xf32>,
    %c0_164 = arith.constant 0 : index
    %c17_165 = arith.constant 17 : index
    %184 = vector.load %arg50[%c0_164, %c17_165] : memref<6x290xf32, #tpu.memory_space<vmem>>, vector<6x256xf32>
    %c24_166 = arith.constant 24 : index
    %c0_167 = arith.constant 0 : index
    %185 = vector.load %arg51[%c24_166, %c0_167] : memref<54x256xf32, #tpu.memory_space<vmem>>, vector<6x256xf32>
    tpu.vector_store %arg51[%c24_166, %c0_167], %184 {strides = array<i32>} : memref<54x256xf32, #tpu.memory_space<vmem>>, vector<6x256xf32>,
    %c0_168 = arith.constant 0 : index
    %c18_169 = arith.constant 18 : index
    %186 = vector.load %arg50[%c0_168, %c18_169] : memref<6x290xf32, #tpu.memory_space<vmem>>, vector<6x256xf32>
    %187 = vector.extract_strided_slice %166 {offsets = [2, 0], sizes = [1, 256], strides = [1, 1]} : vector<3x256xf32> to vector<1x256xf32>
    %188 = vector.broadcast %187 : vector<1x256xf32> to vector<6x256xf32>
    %189 = arith.mulf %186, %188 : vector<6x256xf32>
    %c30_170 = arith.constant 30 : index
    %c0_171 = arith.constant 0 : index
    %190 = vector.load %arg51[%c30_170, %c0_171] : memref<54x256xf32, #tpu.memory_space<vmem>>, vector<6x256xf32>
    tpu.vector_store %arg51[%c30_170, %c0_171], %189 {strides = array<i32>} : memref<54x256xf32, #tpu.memory_space<vmem>>, vector<6x256xf32>,
    %c0_172 = arith.constant 0 : index
    %c32_173 = arith.constant 32 : index
    %191 = vector.load %arg50[%c0_172, %c32_173] : memref<6x290xf32, #tpu.memory_space<vmem>>, vector<6x256xf32>
    %192 = vector.extract_strided_slice %166 {offsets = [0, 0], sizes = [1, 256], strides = [1, 1]} : vector<3x256xf32> to vector<1x256xf32>
    %193 = vector.broadcast %192 : vector<1x256xf32> to vector<6x256xf32>
    %194 = arith.mulf %191, %193 : vector<6x256xf32>
    %c36_174 = arith.constant 36 : index
    %c0_175 = arith.constant 0 : index
    %195 = vector.load %arg51[%c36_174, %c0_175] : memref<54x256xf32, #tpu.memory_space<vmem>>, vector<6x256xf32>
    tpu.vector_store %arg51[%c36_174, %c0_175], %194 {strides = array<i32>} : memref<54x256xf32, #tpu.memory_space<vmem>>, vector<6x256xf32>,
    %c0_176 = arith.constant 0 : index
    %c33_177 = arith.constant 33 : index
    %196 = vector.load %arg50[%c0_176, %c33_177] : memref<6x290xf32, #tpu.memory_space<vmem>>, vector<6x256xf32>
    %c42_178 = arith.constant 42 : index
    %c0_179 = arith.constant 0 : index
    %197 = vector.load %arg51[%c42_178, %c0_179] : memref<54x256xf32, #tpu.memory_space<vmem>>, vector<6x256xf32>
    tpu.vector_store %arg51[%c42_178, %c0_179], %196 {strides = array<i32>} : memref<54x256xf32, #tpu.memory_space<vmem>>, vector<6x256xf32>,
    %c0_180 = arith.constant 0 : index
    %c34_181 = arith.constant 34 : index
    %198 = vector.load %arg50[%c0_180, %c34_181] : memref<6x290xf32, #tpu.memory_space<vmem>>, vector<6x256xf32>
    %199 = vector.extract_strided_slice %166 {offsets = [2, 0], sizes = [1, 256], strides = [1, 1]} : vector<3x256xf32> to vector<1x256xf32>
    %200 = vector.broadcast %199 : vector<1x256xf32> to vector<6x256xf32>
    %201 = arith.mulf %198, %200 : vector<6x256xf32>
    %c48_182 = arith.constant 48 : index
    %c0_183 = arith.constant 0 : index
    %202 = vector.load %arg51[%c48_182, %c0_183] : memref<54x256xf32, #tpu.memory_space<vmem>>, vector<6x256xf32>
    tpu.vector_store %arg51[%c48_182, %c0_183], %201 {strides = array<i32>} : memref<54x256xf32, #tpu.memory_space<vmem>>, vector<6x256xf32>,
    %c0_184 = arith.constant 0 : index
    %c0_185 = arith.constant 0 : index
    %203 = vector.load %arg22[%c0_184, %c0_185] : memref<3x54xbf16, #tpu.memory_space<vmem>>, vector<3x54xbf16>
    %c0_186 = arith.constant 0 : index
    %c0_187 = arith.constant 0 : index
    %204 = vector.load %arg51[%c0_186, %c0_187] : memref<54x256xf32, #tpu.memory_space<vmem>>, vector<54x256xf32>
    %205 = arith.truncf %204 : vector<54x256xf32> to vector<54x256xbf16>
    %cst_188 = arith.constant dense<0.000000e+00> : vector<3x256xf32>
    %206 = tpu.matmul %203, %205, %cst_188 {dimension_numbers = #tpu.dot_dimension_numbers<[1], [0], [0], [1], [0, 0, 1, 1], [], []>} : vector<3x54xbf16>, vector<54x256xbf16>, vector<3x256xf32> -> vector<3x256xf32>
    %c0_189 = arith.constant 0 : index
    %c0_190 = arith.constant 0 : index
    %207 = vector.load %arg23[%c0_189, %c0_190] : memref<3x1xf32, #tpu.memory_space<vmem>>, vector<3x1xf32>
    %208 = vector.broadcast %207 : vector<3x1xf32> to vector<3x256xf32>
    %209 = arith.mulf %206, %208 : vector<3x256xf32>
    %c0_191 = arith.constant 0 : index
    %c0_192 = arith.constant 0 : index
    %210 = vector.load %arg24[%c0_191, %c0_192] : memref<3x1xf32, #tpu.memory_space<vmem>>, vector<3x1xf32>
    %211 = vector.broadcast %210 : vector<3x1xf32> to vector<3x256xf32>
    %212 = arith.addf %209, %211 : vector<3x256xf32>
    %cst_193 = arith.constant 0.000000e+00 : f32
    %213 = vector.broadcast %cst_193 : f32 to vector<3x256xf32>
    %214 = arith.maximumf %212, %213 : vector<3x256xf32>
    %215 = arith.truncf %214 : vector<3x256xf32> to vector<3x256xbf16>
    %c0_194 = arith.constant 0 : index
    %c0_195 = arith.constant 0 : index
    %216 = vector.load %arg34[%c0_194, %c0_195] : memref<256x64xbf16, #tpu.memory_space<vmem>>, vector<256x64xbf16>
    %cst_196 = arith.constant dense<0.000000e+00> : vector<3x64xf32>
    %217 = tpu.matmul %215, %216, %cst_196 {dimension_numbers = #tpu.dot_dimension_numbers<[1], [0], [0], [1], [0, 0, 1, 1], [], []>} : vector<3x256xbf16>, vector<256x64xbf16>, vector<3x64xf32> -> vector<3x64xf32>
    %218 = arith.truncf %151 : vector<12x256xf32> to vector<12x256xbf16>
    %c0_197 = arith.constant 0 : index
    %c0_198 = arith.constant 0 : index
    %219 = vector.load %arg33[%c0_197, %c0_198] : memref<256x64xbf16, #tpu.memory_space<vmem>>, vector<256x64xbf16>
    %cst_199 = arith.constant dense<0.000000e+00> : vector<12x64xf32>
    %220 = tpu.matmul %218, %219, %cst_199 {dimension_numbers = #tpu.dot_dimension_numbers<[1], [0], [0], [1], [0, 0, 1, 1], [], []>} : vector<12x256xbf16>, vector<256x64xbf16>, vector<12x64xf32> -> vector<12x64xf32>
    %c0_200 = arith.constant 0 : index
    %c0_201 = arith.constant 0 : index
    %221 = vector.load %arg26[%c0_200, %c0_201] : memref<2x4xbf16, #tpu.memory_space<vmem>>, vector<2x4xbf16>
    %222 = arith.truncf %153 : vector<4x64xf32> to vector<4x64xbf16>
    %cst_202 = arith.constant dense<0.000000e+00> : vector<2x64xf32>
    %223 = tpu.matmul %221, %222, %cst_202 {dimension_numbers = #tpu.dot_dimension_numbers<[1], [0], [0], [1], [0, 0, 1, 1], [], []>} : vector<2x4xbf16>, vector<4x64xbf16>, vector<2x64xf32> -> vector<2x64xf32>
    %c0_203 = arith.constant 0 : index
    %c0_204 = arith.constant 0 : index
    %224 = vector.load %arg27[%c0_203, %c0_204] : memref<2x1xf32, #tpu.memory_space<vmem>>, vector<2x1xf32>
    %225 = vector.broadcast %224 : vector<2x1xf32> to vector<2x64xf32>
    %226 = arith.mulf %223, %225 : vector<2x64xf32>
    %c0_205 = arith.constant 0 : index
    %c0_206 = arith.constant 0 : index
    %227 = vector.load %arg28[%c0_205, %c0_206] : memref<2x1xf32, #tpu.memory_space<vmem>>, vector<2x1xf32>
    %228 = vector.broadcast %227 : vector<2x1xf32> to vector<2x64xf32>
    %229 = arith.addf %226, %228 : vector<2x64xf32>
    %cst_207 = arith.constant 0.000000e+00 : f32
    %230 = vector.broadcast %cst_207 : f32 to vector<2x64xf32>
    %231 = arith.maximumf %229, %230 : vector<2x64xf32>
    %c0_208 = arith.constant 0 : index
    %c9_209 = arith.constant 9 : index
    %232 = vector.load %arg52[%c0_208, %c9_209] : memref<2x82xf32, #tpu.memory_space<vmem>>, vector<2x64xf32>
    tpu.vector_store %arg52[%c0_208, %c9_209], %231 {strides = array<i32>} : memref<2x82xf32, #tpu.memory_space<vmem>>, vector<2x64xf32>,
    %c0_210 = arith.constant 0 : index
    %c0_211 = arith.constant 0 : index
    %233 = vector.load %arg32[%c0_210, %c0_211] : memref<3x64xf32, #tpu.memory_space<vmem>>, vector<3x64xf32>
    %c0_212 = arith.constant 0 : index
    %c0_213 = arith.constant 0 : index
    %234 = vector.load %arg52[%c0_212, %c0_213] : memref<2x82xf32, #tpu.memory_space<vmem>>, vector<2x64xf32>
    %235 = vector.extract_strided_slice %233 {offsets = [0, 0], sizes = [1, 64], strides = [1, 1]} : vector<3x64xf32> to vector<1x64xf32>
    %236 = vector.broadcast %235 : vector<1x64xf32> to vector<2x64xf32>
    %237 = arith.mulf %234, %236 : vector<2x64xf32>
    %c0_214 = arith.constant 0 : index
    %c0_215 = arith.constant 0 : index
    %238 = vector.load %arg53[%c0_214, %c0_215] : memref<18x64xf32, #tpu.memory_space<vmem>>, vector<2x64xf32>
    tpu.vector_store %arg53[%c0_214, %c0_215], %237 {strides = array<i32>} : memref<18x64xf32, #tpu.memory_space<vmem>>, vector<2x64xf32>,
    %c0_216 = arith.constant 0 : index
    %c1_217 = arith.constant 1 : index
    %239 = vector.load %arg52[%c0_216, %c1_217] : memref<2x82xf32, #tpu.memory_space<vmem>>, vector<2x64xf32>
    %c2_218 = arith.constant 2 : index
    %c0_219 = arith.constant 0 : index
    %240 = vector.load %arg53[%c2_218, %c0_219] : memref<18x64xf32, #tpu.memory_space<vmem>>, vector<2x64xf32>
    tpu.vector_store %arg53[%c2_218, %c0_219], %239 {strides = array<i32>} : memref<18x64xf32, #tpu.memory_space<vmem>>, vector<2x64xf32>,
    %c0_220 = arith.constant 0 : index
    %c2_221 = arith.constant 2 : index
    %241 = vector.load %arg52[%c0_220, %c2_221] : memref<2x82xf32, #tpu.memory_space<vmem>>, vector<2x64xf32>
    %242 = vector.extract_strided_slice %233 {offsets = [2, 0], sizes = [1, 64], strides = [1, 1]} : vector<3x64xf32> to vector<1x64xf32>
    %243 = vector.broadcast %242 : vector<1x64xf32> to vector<2x64xf32>
    %244 = arith.mulf %241, %243 : vector<2x64xf32>
    %c4_222 = arith.constant 4 : index
    %c0_223 = arith.constant 0 : index
    %245 = vector.load %arg53[%c4_222, %c0_223] : memref<18x64xf32, #tpu.memory_space<vmem>>, vector<2x64xf32>
    tpu.vector_store %arg53[%c4_222, %c0_223], %244 {strides = array<i32>} : memref<18x64xf32, #tpu.memory_space<vmem>>, vector<2x64xf32>,
    %c0_224 = arith.constant 0 : index
    %c8_225 = arith.constant 8 : index
    %246 = vector.load %arg52[%c0_224, %c8_225] : memref<2x82xf32, #tpu.memory_space<vmem>>, vector<2x64xf32>
    %247 = vector.extract_strided_slice %233 {offsets = [0, 0], sizes = [1, 64], strides = [1, 1]} : vector<3x64xf32> to vector<1x64xf32>
    %248 = vector.broadcast %247 : vector<1x64xf32> to vector<2x64xf32>
    %249 = arith.mulf %246, %248 : vector<2x64xf32>
    %c6_226 = arith.constant 6 : index
    %c0_227 = arith.constant 0 : index
    %250 = vector.load %arg53[%c6_226, %c0_227] : memref<18x64xf32, #tpu.memory_space<vmem>>, vector<2x64xf32>
    tpu.vector_store %arg53[%c6_226, %c0_227], %249 {strides = array<i32>} : memref<18x64xf32, #tpu.memory_space<vmem>>, vector<2x64xf32>,
    %c0_228 = arith.constant 0 : index
    %c9_229 = arith.constant 9 : index
    %251 = vector.load %arg52[%c0_228, %c9_229] : memref<2x82xf32, #tpu.memory_space<vmem>>, vector<2x64xf32>
    %c8_230 = arith.constant 8 : index
    %c0_231 = arith.constant 0 : index
    %252 = vector.load %arg53[%c8_230, %c0_231] : memref<18x64xf32, #tpu.memory_space<vmem>>, vector<2x64xf32>
    tpu.vector_store %arg53[%c8_230, %c0_231], %251 {strides = array<i32>} : memref<18x64xf32, #tpu.memory_space<vmem>>, vector<2x64xf32>,
    %c0_232 = arith.constant 0 : index
    %c10_233 = arith.constant 10 : index
    %253 = vector.load %arg52[%c0_232, %c10_233] : memref<2x82xf32, #tpu.memory_space<vmem>>, vector<2x64xf32>
    %254 = vector.extract_strided_slice %233 {offsets = [2, 0], sizes = [1, 64], strides = [1, 1]} : vector<3x64xf32> to vector<1x64xf32>
    %255 = vector.broadcast %254 : vector<1x64xf32> to vector<2x64xf32>
    %256 = arith.mulf %253, %255 : vector<2x64xf32>
    %c10_234 = arith.constant 10 : index
    %c0_235 = arith.constant 0 : index
    %257 = vector.load %arg53[%c10_234, %c0_235] : memref<18x64xf32, #tpu.memory_space<vmem>>, vector<2x64xf32>
    tpu.vector_store %arg53[%c10_234, %c0_235], %256 {strides = array<i32>} : memref<18x64xf32, #tpu.memory_space<vmem>>, vector<2x64xf32>,
    %c0_236 = arith.constant 0 : index
    %c16_237 = arith.constant 16 : index
    %258 = vector.load %arg52[%c0_236, %c16_237] : memref<2x82xf32, #tpu.memory_space<vmem>>, vector<2x64xf32>
    %259 = vector.extract_strided_slice %233 {offsets = [0, 0], sizes = [1, 64], strides = [1, 1]} : vector<3x64xf32> to vector<1x64xf32>
    %260 = vector.broadcast %259 : vector<1x64xf32> to vector<2x64xf32>
    %261 = arith.mulf %258, %260 : vector<2x64xf32>
    %c12_238 = arith.constant 12 : index
    %c0_239 = arith.constant 0 : index
    %262 = vector.load %arg53[%c12_238, %c0_239] : memref<18x64xf32, #tpu.memory_space<vmem>>, vector<2x64xf32>
    tpu.vector_store %arg53[%c12_238, %c0_239], %261 {strides = array<i32>} : memref<18x64xf32, #tpu.memory_space<vmem>>, vector<2x64xf32>,
    %c0_240 = arith.constant 0 : index
    %c17_241 = arith.constant 17 : index
    %263 = vector.load %arg52[%c0_240, %c17_241] : memref<2x82xf32, #tpu.memory_space<vmem>>, vector<2x64xf32>
    %c14_242 = arith.constant 14 : index
    %c0_243 = arith.constant 0 : index
    %264 = vector.load %arg53[%c14_242, %c0_243] : memref<18x64xf32, #tpu.memory_space<vmem>>, vector<2x64xf32>
    tpu.vector_store %arg53[%c14_242, %c0_243], %263 {strides = array<i32>} : memref<18x64xf32, #tpu.memory_space<vmem>>, vector<2x64xf32>,
    %c0_244 = arith.constant 0 : index
    %c18_245 = arith.constant 18 : index
    %265 = vector.load %arg52[%c0_244, %c18_245] : memref<2x82xf32, #tpu.memory_space<vmem>>, vector<2x64xf32>
    %266 = vector.extract_strided_slice %233 {offsets = [2, 0], sizes = [1, 64], strides = [1, 1]} : vector<3x64xf32> to vector<1x64xf32>
    %267 = vector.broadcast %266 : vector<1x64xf32> to vector<2x64xf32>
    %268 = arith.mulf %265, %267 : vector<2x64xf32>
    %c16_246 = arith.constant 16 : index
    %c0_247 = arith.constant 0 : index
    %269 = vector.load %arg53[%c16_246, %c0_247] : memref<18x64xf32, #tpu.memory_space<vmem>>, vector<2x64xf32>
    tpu.vector_store %arg53[%c16_246, %c0_247], %268 {strides = array<i32>} : memref<18x64xf32, #tpu.memory_space<vmem>>, vector<2x64xf32>,
    %c0_248 = arith.constant 0 : index
    %c0_249 = arith.constant 0 : index
    %270 = vector.load %arg29[%c0_248, %c0_249] : memref<1x18xbf16, #tpu.memory_space<vmem>>, vector<1x18xbf16>
    %c0_250 = arith.constant 0 : index
    %c0_251 = arith.constant 0 : index
    %271 = vector.load %arg53[%c0_250, %c0_251] : memref<18x64xf32, #tpu.memory_space<vmem>>, vector<18x64xf32>
    %272 = arith.truncf %271 : vector<18x64xf32> to vector<18x64xbf16>
    %cst_252 = arith.constant dense<0.000000e+00> : vector<1x64xf32>
    %273 = tpu.matmul %270, %272, %cst_252 {dimension_numbers = #tpu.dot_dimension_numbers<[1], [0], [0], [1], [0, 0, 1, 1], [], []>} : vector<1x18xbf16>, vector<18x64xbf16>, vector<1x64xf32> -> vector<1x64xf32>
    %c0_253 = arith.constant 0 : index
    %c0_254 = arith.constant 0 : index
    %274 = vector.load %arg30[%c0_253, %c0_254] : memref<1x1xf32, #tpu.memory_space<vmem>>, vector<1x1xf32>
    %275 = vector.broadcast %274 : vector<1x1xf32> to vector<1x64xf32>
    %276 = arith.mulf %273, %275 : vector<1x64xf32>
    %c0_255 = arith.constant 0 : index
    %c0_256 = arith.constant 0 : index
    %277 = vector.load %arg31[%c0_255, %c0_256] : memref<1x1xf32, #tpu.memory_space<vmem>>, vector<1x1xf32>
    %278 = vector.broadcast %277 : vector<1x1xf32> to vector<1x64xf32>
    %279 = arith.addf %276, %278 : vector<1x64xf32>
    %cst_257 = arith.constant 0.000000e+00 : f32
    %280 = vector.broadcast %cst_257 : f32 to vector<1x64xf32>
    %281 = arith.maximumf %279, %280 : vector<1x64xf32>
    %c0_258 = arith.constant 0 : index
    %c0_259 = arith.constant 0 : index
    %c0_260 = arith.constant 0 : index
    %282 = vector.load %arg44[%c0_258, %c0_259, %c0_260] : memref<1x16x128xf32, #tpu.memory_space<vmem>>, vector<1x12x64xf32>
    %283 = vector.shape_cast %282 : vector<1x12x64xf32> to vector<12x64xf32>
    %284 = vector.shape_cast %220 : vector<12x64xf32> to vector<1x12x64xf32>
    tpu.vector_store %arg44[%c0_258, %c0_259, %c0_260], %284 {strides = array<i32>} : memref<1x16x128xf32, #tpu.memory_space<vmem>>, vector<1x12x64xf32>,
    %c0_261 = arith.constant 0 : index
    %c12_262 = arith.constant 12 : index
    %c0_263 = arith.constant 0 : index
    %285 = vector.load %arg44[%c0_261, %c12_262, %c0_263] : memref<1x16x128xf32, #tpu.memory_space<vmem>>, vector<1x1x64xf32>
    %286 = vector.shape_cast %285 : vector<1x1x64xf32> to vector<1x64xf32>
    %287 = vector.shape_cast %281 : vector<1x64xf32> to vector<1x1x64xf32>
    tpu.vector_store %arg44[%c0_261, %c12_262, %c0_263], %287 {strides = array<i32>} : memref<1x16x128xf32, #tpu.memory_space<vmem>>, vector<1x1x64xf32>,
    %c0_264 = arith.constant 0 : index
    %c13 = arith.constant 13 : index
    %c0_265 = arith.constant 0 : index
    %288 = vector.load %arg44[%c0_264, %c13, %c0_265] : memref<1x16x128xf32, #tpu.memory_space<vmem>>, vector<1x3x64xf32>
    %289 = vector.shape_cast %288 : vector<1x3x64xf32> to vector<3x64xf32>
    %290 = vector.shape_cast %217 : vector<3x64xf32> to vector<1x3x64xf32>
    tpu.vector_store %arg44[%c0_264, %c13, %c0_265], %290 {strides = array<i32>} : memref<1x16x128xf32, #tpu.memory_space<vmem>>, vector<1x3x64xf32>,
    %c0_266 = arith.constant 0 : index
    %c0_267 = arith.constant 0 : index
    %c0_268 = arith.constant 0 : index
    %291 = vector.load %arg35[%c0_266, %c0_267, %c0_268] : memref<2x4x64xf32, #tpu.memory_space<vmem>>, vector<1x4x64xf32>
    %292 = vector.shape_cast %291 : vector<1x4x64xf32> to vector<4x64xf32>
    %c0_269 = arith.constant 0 : index
    %c0_270 = arith.constant 0 : index
    %293 = vector.load %arg36[%c0_269, %c0_270] : memref<4x4xbf16, #tpu.memory_space<vmem>>, vector<4x4xbf16>
    %294 = arith.truncf %292 : vector<4x64xf32> to vector<4x64xbf16>
    %cst_271 = arith.constant dense<0.000000e+00> : vector<4x64xf32>
    %295 = tpu.matmul %293, %294, %cst_271 {dimension_numbers = #tpu.dot_dimension_numbers<[1], [0], [0], [1], [0, 0, 1, 1], [], []>} : vector<4x4xbf16>, vector<4x64xbf16>, vector<4x64xf32> -> vector<4x64xf32>
    %c0_272 = arith.constant 0 : index
    %c0_273 = arith.constant 0 : index
    %296 = vector.load %arg37[%c0_272, %c0_273] : memref<4x1xf32, #tpu.memory_space<vmem>>, vector<4x1xf32>
    %297 = vector.broadcast %296 : vector<4x1xf32> to vector<4x64xf32>
    %298 = arith.mulf %295, %297 : vector<4x64xf32>
    %c0_274 = arith.constant 0 : index
    %c0_275 = arith.constant 0 : index
    %299 = vector.load %arg38[%c0_274, %c0_275] : memref<4x1xf32, #tpu.memory_space<vmem>>, vector<4x1xf32>
    %300 = vector.broadcast %299 : vector<4x1xf32> to vector<4x64xf32>
    %301 = arith.addf %298, %300 : vector<4x64xf32>
    %cst_276 = arith.constant 0.000000e+00 : f32
    %302 = vector.broadcast %cst_276 : f32 to vector<4x64xf32>
    %303 = arith.maximumf %301, %302 : vector<4x64xf32>
    %c0_277 = arith.constant 0 : index
    %c0_278 = arith.constant 0 : index
    %c0_279 = arith.constant 0 : index
    %304 = vector.load %arg44[%c0_277, %c0_278, %c0_279] : memref<1x16x128xf32, #tpu.memory_space<vmem>>, vector<1x16x64xf32>
    %305 = vector.shape_cast %304 : vector<1x16x64xf32> to vector<16x64xf32>
    %c0_280 = arith.constant 0 : index
    %c0_281 = arith.constant 0 : index
    %306 = vector.load %arg39[%c0_280, %c0_281] : memref<10x16xbf16, #tpu.memory_space<vmem>>, vector<10x16xbf16>
    %307 = arith.truncf %305 : vector<16x64xf32> to vector<16x64xbf16>
    %cst_282 = arith.constant dense<0.000000e+00> : vector<10x64xf32>
    %308 = tpu.matmul %306, %307, %cst_282 {dimension_numbers = #tpu.dot_dimension_numbers<[1], [0], [0], [1], [0, 0, 1, 1], [], []>} : vector<10x16xbf16>, vector<16x64xbf16>, vector<10x64xf32> -> vector<10x64xf32>
    %c0_283 = arith.constant 0 : index
    %c0_284 = arith.constant 0 : index
    %309 = vector.load %arg40[%c0_283, %c0_284] : memref<10x4xbf16, #tpu.memory_space<vmem>>, vector<10x4xbf16>
    %310 = arith.truncf %303 : vector<4x64xf32> to vector<4x64xbf16>
    %cst_285 = arith.constant dense<0.000000e+00> : vector<10x64xf32>
    %311 = tpu.matmul %309, %310, %cst_285 {dimension_numbers = #tpu.dot_dimension_numbers<[1], [0], [0], [1], [0, 0, 1, 1], [], []>} : vector<10x4xbf16>, vector<4x64xbf16>, vector<10x64xf32> -> vector<10x64xf32>
    %312 = arith.addf %308, %311 : vector<10x64xf32>
    %c0_286 = arith.constant 0 : index
    %c0_287 = arith.constant 0 : index
    %313 = vector.load %arg41[%c0_286, %c0_287] : memref<10x1xf32, #tpu.memory_space<vmem>>, vector<10x1xf32>
    %314 = vector.broadcast %313 : vector<10x1xf32> to vector<10x64xf32>
    %315 = arith.mulf %312, %314 : vector<10x64xf32>
    %c0_288 = arith.constant 0 : index
    %c0_289 = arith.constant 0 : index
    %316 = vector.load %arg42[%c0_288, %c0_289] : memref<10x1xf32, #tpu.memory_space<vmem>>, vector<10x1xf32>
    %317 = vector.broadcast %316 : vector<10x1xf32> to vector<10x64xf32>
    %318 = arith.addf %315, %317 : vector<10x64xf32>
    %cst_290 = arith.constant 0.000000e+00 : f32
    %319 = vector.broadcast %cst_290 : f32 to vector<10x64xf32>
    %320 = arith.maximumf %318, %319 : vector<10x64xf32>
    %c0_291 = arith.constant 0 : index
    %c0_292 = arith.constant 0 : index
    %c0_293 = arith.constant 0 : index
    %321 = vector.load %arg45[%c0_291, %c0_292, %c0_293] : memref<1x10x128xf32, #tpu.memory_space<vmem>>, vector<1x10x64xf32>
    %322 = vector.shape_cast %321 : vector<1x10x64xf32> to vector<10x64xf32>
    %323 = vector.shape_cast %320 : vector<10x64xf32> to vector<1x10x64xf32>
    tpu.vector_store %arg45[%c0_291, %c0_292, %c0_293], %323 {strides = array<i32>} : memref<1x10x128xf32, #tpu.memory_space<vmem>>, vector<1x10x64xf32>,
    %c1_294 = arith.constant 1 : index
    %c0_295 = arith.constant 0 : index
    %c0_296 = arith.constant 0 : index
    %324 = vector.load %arg1[%c1_294, %c0_295, %c0_296] : memref<2x8x256xf32, #tpu.memory_space<vmem>>, vector<1x8x256xf32>
    %325 = vector.shape_cast %324 : vector<1x8x256xf32> to vector<8x256xf32>
    %c1_297 = arith.constant 1 : index
    %c0_298 = arith.constant 0 : index
    %c0_299 = arith.constant 0 : index
    %326 = vector.load %arg2[%c1_297, %c0_298, %c0_299] : memref<2x4x64xf32, #tpu.memory_space<vmem>>, vector<1x4x64xf32>
    %327 = vector.shape_cast %326 : vector<1x4x64xf32> to vector<4x64xf32>
    %c0_300 = arith.constant 0 : index
    %c0_301 = arith.constant 0 : index
    %328 = vector.load %arg3[%c0_300, %c0_301] : memref<6x8xbf16, #tpu.memory_space<vmem>>, vector<6x8xbf16>
    %329 = arith.truncf %325 : vector<8x256xf32> to vector<8x256xbf16>
    %cst_302 = arith.constant dense<0.000000e+00> : vector<6x256xf32>
    %330 = tpu.matmul %328, %329, %cst_302 {dimension_numbers = #tpu.dot_dimension_numbers<[1], [0], [0], [1], [0, 0, 1, 1], [], []>} : vector<6x8xbf16>, vector<8x256xbf16>, vector<6x256xf32> -> vector<6x256xf32>
    %c0_303 = arith.constant 0 : index
    %c0_304 = arith.constant 0 : index
    %331 = vector.load %arg4[%c0_303, %c0_304] : memref<6x1xf32, #tpu.memory_space<vmem>>, vector<6x1xf32>
    %332 = vector.broadcast %331 : vector<6x1xf32> to vector<6x256xf32>
    %333 = arith.mulf %330, %332 : vector<6x256xf32>
    %c0_305 = arith.constant 0 : index
    %c0_306 = arith.constant 0 : index
    %334 = vector.load %arg5[%c0_305, %c0_306] : memref<6x1xf32, #tpu.memory_space<vmem>>, vector<6x1xf32>
    %335 = vector.broadcast %334 : vector<6x1xf32> to vector<6x256xf32>
    %336 = arith.addf %333, %335 : vector<6x256xf32>
    %cst_307 = arith.constant 0.000000e+00 : f32
    %337 = vector.broadcast %cst_307 : f32 to vector<6x256xf32>
    %338 = arith.maximumf %336, %337 : vector<6x256xf32>
    %c0_308 = arith.constant 0 : index
    %c17_309 = arith.constant 17 : index
    %339 = vector.load %arg46[%c0_308, %c17_309] : memref<6x290xf32, #tpu.memory_space<vmem>>, vector<6x256xf32>
    tpu.vector_store %arg46[%c0_308, %c17_309], %338 {strides = array<i32>} : memref<6x290xf32, #tpu.memory_space<vmem>>, vector<6x256xf32>,
    %c0_310 = arith.constant 0 : index
    %c0_311 = arith.constant 0 : index
    %340 = vector.load %arg9[%c0_310, %c0_311] : memref<3x256xf32, #tpu.memory_space<vmem>>, vector<3x256xf32>
    %c0_312 = arith.constant 0 : index
    %c0_313 = arith.constant 0 : index
    %341 = vector.load %arg46[%c0_312, %c0_313] : memref<6x290xf32, #tpu.memory_space<vmem>>, vector<6x256xf32>
    %342 = vector.extract_strided_slice %340 {offsets = [0, 0], sizes = [1, 256], strides = [1, 1]} : vector<3x256xf32> to vector<1x256xf32>
    %343 = vector.broadcast %342 : vector<1x256xf32> to vector<6x256xf32>
    %344 = arith.mulf %341, %343 : vector<6x256xf32>
    %c0_314 = arith.constant 0 : index
    %c0_315 = arith.constant 0 : index
    %345 = vector.load %arg47[%c0_314, %c0_315] : memref<54x256xf32, #tpu.memory_space<vmem>>, vector<6x256xf32>
    tpu.vector_store %arg47[%c0_314, %c0_315], %344 {strides = array<i32>} : memref<54x256xf32, #tpu.memory_space<vmem>>, vector<6x256xf32>,
    %c0_316 = arith.constant 0 : index
    %c1_317 = arith.constant 1 : index
    %346 = vector.load %arg46[%c0_316, %c1_317] : memref<6x290xf32, #tpu.memory_space<vmem>>, vector<6x256xf32>
    %c6_318 = arith.constant 6 : index
    %c0_319 = arith.constant 0 : index
    %347 = vector.load %arg47[%c6_318, %c0_319] : memref<54x256xf32, #tpu.memory_space<vmem>>, vector<6x256xf32>
    tpu.vector_store %arg47[%c6_318, %c0_319], %346 {strides = array<i32>} : memref<54x256xf32, #tpu.memory_space<vmem>>, vector<6x256xf32>,
    %c0_320 = arith.constant 0 : index
    %c2_321 = arith.constant 2 : index
    %348 = vector.load %arg46[%c0_320, %c2_321] : memref<6x290xf32, #tpu.memory_space<vmem>>, vector<6x256xf32>
    %349 = vector.extract_strided_slice %340 {offsets = [2, 0], sizes = [1, 256], strides = [1, 1]} : vector<3x256xf32> to vector<1x256xf32>
    %350 = vector.broadcast %349 : vector<1x256xf32> to vector<6x256xf32>
    %351 = arith.mulf %348, %350 : vector<6x256xf32>
    %c12_322 = arith.constant 12 : index
    %c0_323 = arith.constant 0 : index
    %352 = vector.load %arg47[%c12_322, %c0_323] : memref<54x256xf32, #tpu.memory_space<vmem>>, vector<6x256xf32>
    tpu.vector_store %arg47[%c12_322, %c0_323], %351 {strides = array<i32>} : memref<54x256xf32, #tpu.memory_space<vmem>>, vector<6x256xf32>,
    %c0_324 = arith.constant 0 : index
    %c16_325 = arith.constant 16 : index
    %353 = vector.load %arg46[%c0_324, %c16_325] : memref<6x290xf32, #tpu.memory_space<vmem>>, vector<6x256xf32>
    %354 = vector.extract_strided_slice %340 {offsets = [0, 0], sizes = [1, 256], strides = [1, 1]} : vector<3x256xf32> to vector<1x256xf32>
    %355 = vector.broadcast %354 : vector<1x256xf32> to vector<6x256xf32>
    %356 = arith.mulf %353, %355 : vector<6x256xf32>
    %c18_326 = arith.constant 18 : index
    %c0_327 = arith.constant 0 : index
    %357 = vector.load %arg47[%c18_326, %c0_327] : memref<54x256xf32, #tpu.memory_space<vmem>>, vector<6x256xf32>
    tpu.vector_store %arg47[%c18_326, %c0_327], %356 {strides = array<i32>} : memref<54x256xf32, #tpu.memory_space<vmem>>, vector<6x256xf32>,
    %c0_328 = arith.constant 0 : index
    %c17_329 = arith.constant 17 : index
    %358 = vector.load %arg46[%c0_328, %c17_329] : memref<6x290xf32, #tpu.memory_space<vmem>>, vector<6x256xf32>
    %c24_330 = arith.constant 24 : index
    %c0_331 = arith.constant 0 : index
    %359 = vector.load %arg47[%c24_330, %c0_331] : memref<54x256xf32, #tpu.memory_space<vmem>>, vector<6x256xf32>
    tpu.vector_store %arg47[%c24_330, %c0_331], %358 {strides = array<i32>} : memref<54x256xf32, #tpu.memory_space<vmem>>, vector<6x256xf32>,
    %c0_332 = arith.constant 0 : index
    %c18_333 = arith.constant 18 : index
    %360 = vector.load %arg46[%c0_332, %c18_333] : memref<6x290xf32, #tpu.memory_space<vmem>>, vector<6x256xf32>
    %361 = vector.extract_strided_slice %340 {offsets = [2, 0], sizes = [1, 256], strides = [1, 1]} : vector<3x256xf32> to vector<1x256xf32>
    %362 = vector.broadcast %361 : vector<1x256xf32> to vector<6x256xf32>
    %363 = arith.mulf %360, %362 : vector<6x256xf32>
    %c30_334 = arith.constant 30 : index
    %c0_335 = arith.constant 0 : index
    %364 = vector.load %arg47[%c30_334, %c0_335] : memref<54x256xf32, #tpu.memory_space<vmem>>, vector<6x256xf32>
    tpu.vector_store %arg47[%c30_334, %c0_335], %363 {strides = array<i32>} : memref<54x256xf32, #tpu.memory_space<vmem>>, vector<6x256xf32>,
    %c0_336 = arith.constant 0 : index
    %c32_337 = arith.constant 32 : index
    %365 = vector.load %arg46[%c0_336, %c32_337] : memref<6x290xf32, #tpu.memory_space<vmem>>, vector<6x256xf32>
    %366 = vector.extract_strided_slice %340 {offsets = [0, 0], sizes = [1, 256], strides = [1, 1]} : vector<3x256xf32> to vector<1x256xf32>
    %367 = vector.broadcast %366 : vector<1x256xf32> to vector<6x256xf32>
    %368 = arith.mulf %365, %367 : vector<6x256xf32>
    %c36_338 = arith.constant 36 : index
    %c0_339 = arith.constant 0 : index
    %369 = vector.load %arg47[%c36_338, %c0_339] : memref<54x256xf32, #tpu.memory_space<vmem>>, vector<6x256xf32>
    tpu.vector_store %arg47[%c36_338, %c0_339], %368 {strides = array<i32>} : memref<54x256xf32, #tpu.memory_space<vmem>>, vector<6x256xf32>,
    %c0_340 = arith.constant 0 : index
    %c33_341 = arith.constant 33 : index
    %370 = vector.load %arg46[%c0_340, %c33_341] : memref<6x290xf32, #tpu.memory_space<vmem>>, vector<6x256xf32>
    %c42_342 = arith.constant 42 : index
    %c0_343 = arith.constant 0 : index
    %371 = vector.load %arg47[%c42_342, %c0_343] : memref<54x256xf32, #tpu.memory_space<vmem>>, vector<6x256xf32>
    tpu.vector_store %arg47[%c42_342, %c0_343], %370 {strides = array<i32>} : memref<54x256xf32, #tpu.memory_space<vmem>>, vector<6x256xf32>,
    %c0_344 = arith.constant 0 : index
    %c34_345 = arith.constant 34 : index
    %372 = vector.load %arg46[%c0_344, %c34_345] : memref<6x290xf32, #tpu.memory_space<vmem>>, vector<6x256xf32>
    %373 = vector.extract_strided_slice %340 {offsets = [2, 0], sizes = [1, 256], strides = [1, 1]} : vector<3x256xf32> to vector<1x256xf32>
    %374 = vector.broadcast %373 : vector<1x256xf32> to vector<6x256xf32>
    %375 = arith.mulf %372, %374 : vector<6x256xf32>
    %c48_346 = arith.constant 48 : index
    %c0_347 = arith.constant 0 : index
    %376 = vector.load %arg47[%c48_346, %c0_347] : memref<54x256xf32, #tpu.memory_space<vmem>>, vector<6x256xf32>
    tpu.vector_store %arg47[%c48_346, %c0_347], %375 {strides = array<i32>} : memref<54x256xf32, #tpu.memory_space<vmem>>, vector<6x256xf32>,
    %c0_348 = arith.constant 0 : index
    %c0_349 = arith.constant 0 : index
    %377 = vector.load %arg6[%c0_348, %c0_349] : memref<3x54xbf16, #tpu.memory_space<vmem>>, vector<3x54xbf16>
    %c0_350 = arith.constant 0 : index
    %c0_351 = arith.constant 0 : index
    %378 = vector.load %arg47[%c0_350, %c0_351] : memref<54x256xf32, #tpu.memory_space<vmem>>, vector<54x256xf32>
    %379 = arith.truncf %378 : vector<54x256xf32> to vector<54x256xbf16>
    %cst_352 = arith.constant dense<0.000000e+00> : vector<3x256xf32>
    %380 = tpu.matmul %377, %379, %cst_352 {dimension_numbers = #tpu.dot_dimension_numbers<[1], [0], [0], [1], [0, 0, 1, 1], [], []>} : vector<3x54xbf16>, vector<54x256xbf16>, vector<3x256xf32> -> vector<3x256xf32>
    %c0_353 = arith.constant 0 : index
    %c0_354 = arith.constant 0 : index
    %381 = vector.load %arg7[%c0_353, %c0_354] : memref<3x1xf32, #tpu.memory_space<vmem>>, vector<3x1xf32>
    %382 = vector.broadcast %381 : vector<3x1xf32> to vector<3x256xf32>
    %383 = arith.mulf %380, %382 : vector<3x256xf32>
    %c0_355 = arith.constant 0 : index
    %c0_356 = arith.constant 0 : index
    %384 = vector.load %arg8[%c0_355, %c0_356] : memref<3x1xf32, #tpu.memory_space<vmem>>, vector<3x1xf32>
    %385 = vector.broadcast %384 : vector<3x1xf32> to vector<3x256xf32>
    %386 = arith.addf %383, %385 : vector<3x256xf32>
    %cst_357 = arith.constant 0.000000e+00 : f32
    %387 = vector.broadcast %cst_357 : f32 to vector<3x256xf32>
    %388 = arith.maximumf %386, %387 : vector<3x256xf32>
    %c0_358 = arith.constant 0 : index
    %c0_359 = arith.constant 0 : index
    %389 = vector.load %arg10[%c0_358, %c0_359] : memref<2x4xbf16, #tpu.memory_space<vmem>>, vector<2x4xbf16>
    %390 = arith.truncf %327 : vector<4x64xf32> to vector<4x64xbf16>
    %cst_360 = arith.constant dense<0.000000e+00> : vector<2x64xf32>
    %391 = tpu.matmul %389, %390, %cst_360 {dimension_numbers = #tpu.dot_dimension_numbers<[1], [0], [0], [1], [0, 0, 1, 1], [], []>} : vector<2x4xbf16>, vector<4x64xbf16>, vector<2x64xf32> -> vector<2x64xf32>
    %c0_361 = arith.constant 0 : index
    %c0_362 = arith.constant 0 : index
    %392 = vector.load %arg11[%c0_361, %c0_362] : memref<2x1xf32, #tpu.memory_space<vmem>>, vector<2x1xf32>
    %393 = vector.broadcast %392 : vector<2x1xf32> to vector<2x64xf32>
    %394 = arith.mulf %391, %393 : vector<2x64xf32>
    %c0_363 = arith.constant 0 : index
    %c0_364 = arith.constant 0 : index
    %395 = vector.load %arg12[%c0_363, %c0_364] : memref<2x1xf32, #tpu.memory_space<vmem>>, vector<2x1xf32>
    %396 = vector.broadcast %395 : vector<2x1xf32> to vector<2x64xf32>
    %397 = arith.addf %394, %396 : vector<2x64xf32>
    %cst_365 = arith.constant 0.000000e+00 : f32
    %398 = vector.broadcast %cst_365 : f32 to vector<2x64xf32>
    %399 = arith.maximumf %397, %398 : vector<2x64xf32>
    %c0_366 = arith.constant 0 : index
    %c9_367 = arith.constant 9 : index
    %400 = vector.load %arg48[%c0_366, %c9_367] : memref<2x82xf32, #tpu.memory_space<vmem>>, vector<2x64xf32>
    tpu.vector_store %arg48[%c0_366, %c9_367], %399 {strides = array<i32>} : memref<2x82xf32, #tpu.memory_space<vmem>>, vector<2x64xf32>,
    %c0_368 = arith.constant 0 : index
    %c0_369 = arith.constant 0 : index
    %401 = vector.load %arg16[%c0_368, %c0_369] : memref<3x64xf32, #tpu.memory_space<vmem>>, vector<3x64xf32>
    %c0_370 = arith.constant 0 : index
    %c0_371 = arith.constant 0 : index
    %402 = vector.load %arg48[%c0_370, %c0_371] : memref<2x82xf32, #tpu.memory_space<vmem>>, vector<2x64xf32>
    %403 = vector.extract_strided_slice %401 {offsets = [0, 0], sizes = [1, 64], strides = [1, 1]} : vector<3x64xf32> to vector<1x64xf32>
    %404 = vector.broadcast %403 : vector<1x64xf32> to vector<2x64xf32>
    %405 = arith.mulf %402, %404 : vector<2x64xf32>
    %c0_372 = arith.constant 0 : index
    %c0_373 = arith.constant 0 : index
    %406 = vector.load %arg49[%c0_372, %c0_373] : memref<18x64xf32, #tpu.memory_space<vmem>>, vector<2x64xf32>
    tpu.vector_store %arg49[%c0_372, %c0_373], %405 {strides = array<i32>} : memref<18x64xf32, #tpu.memory_space<vmem>>, vector<2x64xf32>,
    %c0_374 = arith.constant 0 : index
    %c1_375 = arith.constant 1 : index
    %407 = vector.load %arg48[%c0_374, %c1_375] : memref<2x82xf32, #tpu.memory_space<vmem>>, vector<2x64xf32>
    %c2_376 = arith.constant 2 : index
    %c0_377 = arith.constant 0 : index
    %408 = vector.load %arg49[%c2_376, %c0_377] : memref<18x64xf32, #tpu.memory_space<vmem>>, vector<2x64xf32>
    tpu.vector_store %arg49[%c2_376, %c0_377], %407 {strides = array<i32>} : memref<18x64xf32, #tpu.memory_space<vmem>>, vector<2x64xf32>,
    %c0_378 = arith.constant 0 : index
    %c2_379 = arith.constant 2 : index
    %409 = vector.load %arg48[%c0_378, %c2_379] : memref<2x82xf32, #tpu.memory_space<vmem>>, vector<2x64xf32>
    %410 = vector.extract_strided_slice %401 {offsets = [2, 0], sizes = [1, 64], strides = [1, 1]} : vector<3x64xf32> to vector<1x64xf32>
    %411 = vector.broadcast %410 : vector<1x64xf32> to vector<2x64xf32>
    %412 = arith.mulf %409, %411 : vector<2x64xf32>
    %c4_380 = arith.constant 4 : index
    %c0_381 = arith.constant 0 : index
    %413 = vector.load %arg49[%c4_380, %c0_381] : memref<18x64xf32, #tpu.memory_space<vmem>>, vector<2x64xf32>
    tpu.vector_store %arg49[%c4_380, %c0_381], %412 {strides = array<i32>} : memref<18x64xf32, #tpu.memory_space<vmem>>, vector<2x64xf32>,
    %c0_382 = arith.constant 0 : index
    %c8_383 = arith.constant 8 : index
    %414 = vector.load %arg48[%c0_382, %c8_383] : memref<2x82xf32, #tpu.memory_space<vmem>>, vector<2x64xf32>
    %415 = vector.extract_strided_slice %401 {offsets = [0, 0], sizes = [1, 64], strides = [1, 1]} : vector<3x64xf32> to vector<1x64xf32>
    %416 = vector.broadcast %415 : vector<1x64xf32> to vector<2x64xf32>
    %417 = arith.mulf %414, %416 : vector<2x64xf32>
    %c6_384 = arith.constant 6 : index
    %c0_385 = arith.constant 0 : index
    %418 = vector.load %arg49[%c6_384, %c0_385] : memref<18x64xf32, #tpu.memory_space<vmem>>, vector<2x64xf32>
    tpu.vector_store %arg49[%c6_384, %c0_385], %417 {strides = array<i32>} : memref<18x64xf32, #tpu.memory_space<vmem>>, vector<2x64xf32>,
    %c0_386 = arith.constant 0 : index
    %c9_387 = arith.constant 9 : index
    %419 = vector.load %arg48[%c0_386, %c9_387] : memref<2x82xf32, #tpu.memory_space<vmem>>, vector<2x64xf32>
    %c8_388 = arith.constant 8 : index
    %c0_389 = arith.constant 0 : index
    %420 = vector.load %arg49[%c8_388, %c0_389] : memref<18x64xf32, #tpu.memory_space<vmem>>, vector<2x64xf32>
    tpu.vector_store %arg49[%c8_388, %c0_389], %419 {strides = array<i32>} : memref<18x64xf32, #tpu.memory_space<vmem>>, vector<2x64xf32>,
    %c0_390 = arith.constant 0 : index
    %c10_391 = arith.constant 10 : index
    %421 = vector.load %arg48[%c0_390, %c10_391] : memref<2x82xf32, #tpu.memory_space<vmem>>, vector<2x64xf32>
    %422 = vector.extract_strided_slice %401 {offsets = [2, 0], sizes = [1, 64], strides = [1, 1]} : vector<3x64xf32> to vector<1x64xf32>
    %423 = vector.broadcast %422 : vector<1x64xf32> to vector<2x64xf32>
    %424 = arith.mulf %421, %423 : vector<2x64xf32>
    %c10_392 = arith.constant 10 : index
    %c0_393 = arith.constant 0 : index
    %425 = vector.load %arg49[%c10_392, %c0_393] : memref<18x64xf32, #tpu.memory_space<vmem>>, vector<2x64xf32>
    tpu.vector_store %arg49[%c10_392, %c0_393], %424 {strides = array<i32>} : memref<18x64xf32, #tpu.memory_space<vmem>>, vector<2x64xf32>,
    %c0_394 = arith.constant 0 : index
    %c16_395 = arith.constant 16 : index
    %426 = vector.load %arg48[%c0_394, %c16_395] : memref<2x82xf32, #tpu.memory_space<vmem>>, vector<2x64xf32>
    %427 = vector.extract_strided_slice %401 {offsets = [0, 0], sizes = [1, 64], strides = [1, 1]} : vector<3x64xf32> to vector<1x64xf32>
    %428 = vector.broadcast %427 : vector<1x64xf32> to vector<2x64xf32>
    %429 = arith.mulf %426, %428 : vector<2x64xf32>
    %c12_396 = arith.constant 12 : index
    %c0_397 = arith.constant 0 : index
    %430 = vector.load %arg49[%c12_396, %c0_397] : memref<18x64xf32, #tpu.memory_space<vmem>>, vector<2x64xf32>
    tpu.vector_store %arg49[%c12_396, %c0_397], %429 {strides = array<i32>} : memref<18x64xf32, #tpu.memory_space<vmem>>, vector<2x64xf32>,
    %c0_398 = arith.constant 0 : index
    %c17_399 = arith.constant 17 : index
    %431 = vector.load %arg48[%c0_398, %c17_399] : memref<2x82xf32, #tpu.memory_space<vmem>>, vector<2x64xf32>
    %c14_400 = arith.constant 14 : index
    %c0_401 = arith.constant 0 : index
    %432 = vector.load %arg49[%c14_400, %c0_401] : memref<18x64xf32, #tpu.memory_space<vmem>>, vector<2x64xf32>
    tpu.vector_store %arg49[%c14_400, %c0_401], %431 {strides = array<i32>} : memref<18x64xf32, #tpu.memory_space<vmem>>, vector<2x64xf32>,
    %c0_402 = arith.constant 0 : index
    %c18_403 = arith.constant 18 : index
    %433 = vector.load %arg48[%c0_402, %c18_403] : memref<2x82xf32, #tpu.memory_space<vmem>>, vector<2x64xf32>
    %434 = vector.extract_strided_slice %401 {offsets = [2, 0], sizes = [1, 64], strides = [1, 1]} : vector<3x64xf32> to vector<1x64xf32>
    %435 = vector.broadcast %434 : vector<1x64xf32> to vector<2x64xf32>
    %436 = arith.mulf %433, %435 : vector<2x64xf32>
    %c16_404 = arith.constant 16 : index
    %c0_405 = arith.constant 0 : index
    %437 = vector.load %arg49[%c16_404, %c0_405] : memref<18x64xf32, #tpu.memory_space<vmem>>, vector<2x64xf32>
    tpu.vector_store %arg49[%c16_404, %c0_405], %436 {strides = array<i32>} : memref<18x64xf32, #tpu.memory_space<vmem>>, vector<2x64xf32>,
    %c0_406 = arith.constant 0 : index
    %c0_407 = arith.constant 0 : index
    %438 = vector.load %arg13[%c0_406, %c0_407] : memref<1x18xbf16, #tpu.memory_space<vmem>>, vector<1x18xbf16>
    %c0_408 = arith.constant 0 : index
    %c0_409 = arith.constant 0 : index
    %439 = vector.load %arg49[%c0_408, %c0_409] : memref<18x64xf32, #tpu.memory_space<vmem>>, vector<18x64xf32>
    %440 = arith.truncf %439 : vector<18x64xf32> to vector<18x64xbf16>
    %cst_410 = arith.constant dense<0.000000e+00> : vector<1x64xf32>
    %441 = tpu.matmul %438, %440, %cst_410 {dimension_numbers = #tpu.dot_dimension_numbers<[1], [0], [0], [1], [0, 0, 1, 1], [], []>} : vector<1x18xbf16>, vector<18x64xbf16>, vector<1x64xf32> -> vector<1x64xf32>
    %c0_411 = arith.constant 0 : index
    %c0_412 = arith.constant 0 : index
    %442 = vector.load %arg14[%c0_411, %c0_412] : memref<1x1xf32, #tpu.memory_space<vmem>>, vector<1x1xf32>
    %443 = vector.broadcast %442 : vector<1x1xf32> to vector<1x64xf32>
    %444 = arith.mulf %441, %443 : vector<1x64xf32>
    %c0_413 = arith.constant 0 : index
    %c0_414 = arith.constant 0 : index
    %445 = vector.load %arg15[%c0_413, %c0_414] : memref<1x1xf32, #tpu.memory_space<vmem>>, vector<1x1xf32>
    %446 = vector.broadcast %445 : vector<1x1xf32> to vector<1x64xf32>
    %447 = arith.addf %444, %446 : vector<1x64xf32>
    %cst_415 = arith.constant 0.000000e+00 : f32
    %448 = vector.broadcast %cst_415 : f32 to vector<1x64xf32>
    %449 = arith.maximumf %447, %448 : vector<1x64xf32>
    %450 = arith.truncf %449 : vector<1x64xf32> to vector<1x64xbf16>
    %c0_416 = arith.constant 0 : index
    %c0_417 = arith.constant 0 : index
    %451 = vector.load %arg17[%c0_416, %c0_417] : memref<64x256xbf16, #tpu.memory_space<vmem>>, vector<64x256xbf16>
    %cst_418 = arith.constant dense<0.000000e+00> : vector<1x256xf32>
    %452 = tpu.matmul %450, %451, %cst_418 {dimension_numbers = #tpu.dot_dimension_numbers<[1], [0], [0], [1], [0, 0, 1, 1], [], []>} : vector<1x64xbf16>, vector<64x256xbf16>, vector<1x256xf32> -> vector<1x256xf32>
    %c0_419 = arith.constant 0 : index
    %c0_420 = arith.constant 0 : index
    %c256 = arith.constant 256 : index
    %453 = vector.load %arg43[%c0_419, %c0_420, %c256] : memref<1x12x512xf32, #tpu.memory_space<vmem>>, vector<1x8x256xf32>
    %454 = vector.shape_cast %453 : vector<1x8x256xf32> to vector<8x256xf32>
    %455 = vector.shape_cast %325 : vector<8x256xf32> to vector<1x8x256xf32>
    tpu.vector_store %arg43[%c0_419, %c0_420, %c256], %455 {strides = array<i32>} : memref<1x12x512xf32, #tpu.memory_space<vmem>>, vector<1x8x256xf32>,
    %c0_421 = arith.constant 0 : index
    %c8_422 = arith.constant 8 : index
    %c256_423 = arith.constant 256 : index
    %456 = vector.load %arg43[%c0_421, %c8_422, %c256_423] : memref<1x12x512xf32, #tpu.memory_space<vmem>>, vector<1x1x256xf32>
    %457 = vector.shape_cast %456 : vector<1x1x256xf32> to vector<1x256xf32>
    %458 = vector.shape_cast %452 : vector<1x256xf32> to vector<1x1x256xf32>
    tpu.vector_store %arg43[%c0_421, %c8_422, %c256_423], %458 {strides = array<i32>} : memref<1x12x512xf32, #tpu.memory_space<vmem>>, vector<1x1x256xf32>,
    %c0_424 = arith.constant 0 : index
    %c9_425 = arith.constant 9 : index
    %c256_426 = arith.constant 256 : index
    %459 = vector.load %arg43[%c0_424, %c9_425, %c256_426] : memref<1x12x512xf32, #tpu.memory_space<vmem>>, vector<1x3x256xf32>
    %460 = vector.shape_cast %459 : vector<1x3x256xf32> to vector<3x256xf32>
    %461 = vector.shape_cast %388 : vector<3x256xf32> to vector<1x3x256xf32>
    tpu.vector_store %arg43[%c0_424, %c9_425, %c256_426], %461 {strides = array<i32>} : memref<1x12x512xf32, #tpu.memory_space<vmem>>, vector<1x3x256xf32>,
    %c0_427 = arith.constant 0 : index
    %c0_428 = arith.constant 0 : index
    %c256_429 = arith.constant 256 : index
    %462 = vector.load %arg43[%c0_427, %c0_428, %c256_429] : memref<1x12x512xf32, #tpu.memory_space<vmem>>, vector<1x12x256xf32>
    %463 = vector.shape_cast %462 : vector<1x12x256xf32> to vector<12x256xf32>
    %c1_430 = arith.constant 1 : index
    %c0_431 = arith.constant 0 : index
    %c0_432 = arith.constant 0 : index
    %464 = vector.load %arg18[%c1_430, %c0_431, %c0_432] : memref<2x4x64xf32, #tpu.memory_space<vmem>>, vector<1x4x64xf32>
    %465 = vector.shape_cast %464 : vector<1x4x64xf32> to vector<4x64xf32>
    %c0_433 = arith.constant 0 : index
    %c0_434 = arith.constant 0 : index
    %466 = vector.load %arg19[%c0_433, %c0_434] : memref<6x12xbf16, #tpu.memory_space<vmem>>, vector<6x12xbf16>
    %467 = arith.truncf %463 : vector<12x256xf32> to vector<12x256xbf16>
    %cst_435 = arith.constant dense<0.000000e+00> : vector<6x256xf32>
    %468 = tpu.matmul %466, %467, %cst_435 {dimension_numbers = #tpu.dot_dimension_numbers<[1], [0], [0], [1], [0, 0, 1, 1], [], []>} : vector<6x12xbf16>, vector<12x256xbf16>, vector<6x256xf32> -> vector<6x256xf32>
    %c0_436 = arith.constant 0 : index
    %c0_437 = arith.constant 0 : index
    %469 = vector.load %arg20[%c0_436, %c0_437] : memref<6x1xf32, #tpu.memory_space<vmem>>, vector<6x1xf32>
    %470 = vector.broadcast %469 : vector<6x1xf32> to vector<6x256xf32>
    %471 = arith.mulf %468, %470 : vector<6x256xf32>
    %c0_438 = arith.constant 0 : index
    %c0_439 = arith.constant 0 : index
    %472 = vector.load %arg21[%c0_438, %c0_439] : memref<6x1xf32, #tpu.memory_space<vmem>>, vector<6x1xf32>
    %473 = vector.broadcast %472 : vector<6x1xf32> to vector<6x256xf32>
    %474 = arith.addf %471, %473 : vector<6x256xf32>
    %cst_440 = arith.constant 0.000000e+00 : f32
    %475 = vector.broadcast %cst_440 : f32 to vector<6x256xf32>
    %476 = arith.maximumf %474, %475 : vector<6x256xf32>
    %c0_441 = arith.constant 0 : index
    %c17_442 = arith.constant 17 : index
    %477 = vector.load %arg50[%c0_441, %c17_442] : memref<6x290xf32, #tpu.memory_space<vmem>>, vector<6x256xf32>
    tpu.vector_store %arg50[%c0_441, %c17_442], %476 {strides = array<i32>} : memref<6x290xf32, #tpu.memory_space<vmem>>, vector<6x256xf32>,
    %c0_443 = arith.constant 0 : index
    %c0_444 = arith.constant 0 : index
    %478 = vector.load %arg25[%c0_443, %c0_444] : memref<3x256xf32, #tpu.memory_space<vmem>>, vector<3x256xf32>
    %c0_445 = arith.constant 0 : index
    %c0_446 = arith.constant 0 : index
    %479 = vector.load %arg50[%c0_445, %c0_446] : memref<6x290xf32, #tpu.memory_space<vmem>>, vector<6x256xf32>
    %480 = vector.extract_strided_slice %478 {offsets = [0, 0], sizes = [1, 256], strides = [1, 1]} : vector<3x256xf32> to vector<1x256xf32>
    %481 = vector.broadcast %480 : vector<1x256xf32> to vector<6x256xf32>
    %482 = arith.mulf %479, %481 : vector<6x256xf32>
    %c0_447 = arith.constant 0 : index
    %c0_448 = arith.constant 0 : index
    %483 = vector.load %arg51[%c0_447, %c0_448] : memref<54x256xf32, #tpu.memory_space<vmem>>, vector<6x256xf32>
    tpu.vector_store %arg51[%c0_447, %c0_448], %482 {strides = array<i32>} : memref<54x256xf32, #tpu.memory_space<vmem>>, vector<6x256xf32>,
    %c0_449 = arith.constant 0 : index
    %c1_450 = arith.constant 1 : index
    %484 = vector.load %arg50[%c0_449, %c1_450] : memref<6x290xf32, #tpu.memory_space<vmem>>, vector<6x256xf32>
    %c6_451 = arith.constant 6 : index
    %c0_452 = arith.constant 0 : index
    %485 = vector.load %arg51[%c6_451, %c0_452] : memref<54x256xf32, #tpu.memory_space<vmem>>, vector<6x256xf32>
    tpu.vector_store %arg51[%c6_451, %c0_452], %484 {strides = array<i32>} : memref<54x256xf32, #tpu.memory_space<vmem>>, vector<6x256xf32>,
    %c0_453 = arith.constant 0 : index
    %c2_454 = arith.constant 2 : index
    %486 = vector.load %arg50[%c0_453, %c2_454] : memref<6x290xf32, #tpu.memory_space<vmem>>, vector<6x256xf32>
    %487 = vector.extract_strided_slice %478 {offsets = [2, 0], sizes = [1, 256], strides = [1, 1]} : vector<3x256xf32> to vector<1x256xf32>
    %488 = vector.broadcast %487 : vector<1x256xf32> to vector<6x256xf32>
    %489 = arith.mulf %486, %488 : vector<6x256xf32>
    %c12_455 = arith.constant 12 : index
    %c0_456 = arith.constant 0 : index
    %490 = vector.load %arg51[%c12_455, %c0_456] : memref<54x256xf32, #tpu.memory_space<vmem>>, vector<6x256xf32>
    tpu.vector_store %arg51[%c12_455, %c0_456], %489 {strides = array<i32>} : memref<54x256xf32, #tpu.memory_space<vmem>>, vector<6x256xf32>,
    %c0_457 = arith.constant 0 : index
    %c16_458 = arith.constant 16 : index
    %491 = vector.load %arg50[%c0_457, %c16_458] : memref<6x290xf32, #tpu.memory_space<vmem>>, vector<6x256xf32>
    %492 = vector.extract_strided_slice %478 {offsets = [0, 0], sizes = [1, 256], strides = [1, 1]} : vector<3x256xf32> to vector<1x256xf32>
    %493 = vector.broadcast %492 : vector<1x256xf32> to vector<6x256xf32>
    %494 = arith.mulf %491, %493 : vector<6x256xf32>
    %c18_459 = arith.constant 18 : index
    %c0_460 = arith.constant 0 : index
    %495 = vector.load %arg51[%c18_459, %c0_460] : memref<54x256xf32, #tpu.memory_space<vmem>>, vector<6x256xf32>
    tpu.vector_store %arg51[%c18_459, %c0_460], %494 {strides = array<i32>} : memref<54x256xf32, #tpu.memory_space<vmem>>, vector<6x256xf32>,
    %c0_461 = arith.constant 0 : index
    %c17_462 = arith.constant 17 : index
    %496 = vector.load %arg50[%c0_461, %c17_462] : memref<6x290xf32, #tpu.memory_space<vmem>>, vector<6x256xf32>
    %c24_463 = arith.constant 24 : index
    %c0_464 = arith.constant 0 : index
    %497 = vector.load %arg51[%c24_463, %c0_464] : memref<54x256xf32, #tpu.memory_space<vmem>>, vector<6x256xf32>
    tpu.vector_store %arg51[%c24_463, %c0_464], %496 {strides = array<i32>} : memref<54x256xf32, #tpu.memory_space<vmem>>, vector<6x256xf32>,
    %c0_465 = arith.constant 0 : index
    %c18_466 = arith.constant 18 : index
    %498 = vector.load %arg50[%c0_465, %c18_466] : memref<6x290xf32, #tpu.memory_space<vmem>>, vector<6x256xf32>
    %499 = vector.extract_strided_slice %478 {offsets = [2, 0], sizes = [1, 256], strides = [1, 1]} : vector<3x256xf32> to vector<1x256xf32>
    %500 = vector.broadcast %499 : vector<1x256xf32> to vector<6x256xf32>
    %501 = arith.mulf %498, %500 : vector<6x256xf32>
    %c30_467 = arith.constant 30 : index
    %c0_468 = arith.constant 0 : index
    %502 = vector.load %arg51[%c30_467, %c0_468] : memref<54x256xf32, #tpu.memory_space<vmem>>, vector<6x256xf32>
    tpu.vector_store %arg51[%c30_467, %c0_468], %501 {strides = array<i32>} : memref<54x256xf32, #tpu.memory_space<vmem>>, vector<6x256xf32>,
    %c0_469 = arith.constant 0 : index
    %c32_470 = arith.constant 32 : index
    %503 = vector.load %arg50[%c0_469, %c32_470] : memref<6x290xf32, #tpu.memory_space<vmem>>, vector<6x256xf32>
    %504 = vector.extract_strided_slice %478 {offsets = [0, 0], sizes = [1, 256], strides = [1, 1]} : vector<3x256xf32> to vector<1x256xf32>
    %505 = vector.broadcast %504 : vector<1x256xf32> to vector<6x256xf32>
    %506 = arith.mulf %503, %505 : vector<6x256xf32>
    %c36_471 = arith.constant 36 : index
    %c0_472 = arith.constant 0 : index
    %507 = vector.load %arg51[%c36_471, %c0_472] : memref<54x256xf32, #tpu.memory_space<vmem>>, vector<6x256xf32>
    tpu.vector_store %arg51[%c36_471, %c0_472], %506 {strides = array<i32>} : memref<54x256xf32, #tpu.memory_space<vmem>>, vector<6x256xf32>,
    %c0_473 = arith.constant 0 : index
    %c33_474 = arith.constant 33 : index
    %508 = vector.load %arg50[%c0_473, %c33_474] : memref<6x290xf32, #tpu.memory_space<vmem>>, vector<6x256xf32>
    %c42_475 = arith.constant 42 : index
    %c0_476 = arith.constant 0 : index
    %509 = vector.load %arg51[%c42_475, %c0_476] : memref<54x256xf32, #tpu.memory_space<vmem>>, vector<6x256xf32>
    tpu.vector_store %arg51[%c42_475, %c0_476], %508 {strides = array<i32>} : memref<54x256xf32, #tpu.memory_space<vmem>>, vector<6x256xf32>,
    %c0_477 = arith.constant 0 : index
    %c34_478 = arith.constant 34 : index
    %510 = vector.load %arg50[%c0_477, %c34_478] : memref<6x290xf32, #tpu.memory_space<vmem>>, vector<6x256xf32>
    %511 = vector.extract_strided_slice %478 {offsets = [2, 0], sizes = [1, 256], strides = [1, 1]} : vector<3x256xf32> to vector<1x256xf32>
    %512 = vector.broadcast %511 : vector<1x256xf32> to vector<6x256xf32>
    %513 = arith.mulf %510, %512 : vector<6x256xf32>
    %c48_479 = arith.constant 48 : index
    %c0_480 = arith.constant 0 : index
    %514 = vector.load %arg51[%c48_479, %c0_480] : memref<54x256xf32, #tpu.memory_space<vmem>>, vector<6x256xf32>
    tpu.vector_store %arg51[%c48_479, %c0_480], %513 {strides = array<i32>} : memref<54x256xf32, #tpu.memory_space<vmem>>, vector<6x256xf32>,
    %c0_481 = arith.constant 0 : index
    %c0_482 = arith.constant 0 : index
    %515 = vector.load %arg22[%c0_481, %c0_482] : memref<3x54xbf16, #tpu.memory_space<vmem>>, vector<3x54xbf16>
    %c0_483 = arith.constant 0 : index
    %c0_484 = arith.constant 0 : index
    %516 = vector.load %arg51[%c0_483, %c0_484] : memref<54x256xf32, #tpu.memory_space<vmem>>, vector<54x256xf32>
    %517 = arith.truncf %516 : vector<54x256xf32> to vector<54x256xbf16>
    %cst_485 = arith.constant dense<0.000000e+00> : vector<3x256xf32>
    %518 = tpu.matmul %515, %517, %cst_485 {dimension_numbers = #tpu.dot_dimension_numbers<[1], [0], [0], [1], [0, 0, 1, 1], [], []>} : vector<3x54xbf16>, vector<54x256xbf16>, vector<3x256xf32> -> vector<3x256xf32>
    %c0_486 = arith.constant 0 : index
    %c0_487 = arith.constant 0 : index
    %519 = vector.load %arg23[%c0_486, %c0_487] : memref<3x1xf32, #tpu.memory_space<vmem>>, vector<3x1xf32>
    %520 = vector.broadcast %519 : vector<3x1xf32> to vector<3x256xf32>
    %521 = arith.mulf %518, %520 : vector<3x256xf32>
    %c0_488 = arith.constant 0 : index
    %c0_489 = arith.constant 0 : index
    %522 = vector.load %arg24[%c0_488, %c0_489] : memref<3x1xf32, #tpu.memory_space<vmem>>, vector<3x1xf32>
    %523 = vector.broadcast %522 : vector<3x1xf32> to vector<3x256xf32>
    %524 = arith.addf %521, %523 : vector<3x256xf32>
    %cst_490 = arith.constant 0.000000e+00 : f32
    %525 = vector.broadcast %cst_490 : f32 to vector<3x256xf32>
    %526 = arith.maximumf %524, %525 : vector<3x256xf32>
    %527 = arith.truncf %526 : vector<3x256xf32> to vector<3x256xbf16>
    %c0_491 = arith.constant 0 : index
    %c0_492 = arith.constant 0 : index
    %528 = vector.load %arg34[%c0_491, %c0_492] : memref<256x64xbf16, #tpu.memory_space<vmem>>, vector<256x64xbf16>
    %cst_493 = arith.constant dense<0.000000e+00> : vector<3x64xf32>
    %529 = tpu.matmul %527, %528, %cst_493 {dimension_numbers = #tpu.dot_dimension_numbers<[1], [0], [0], [1], [0, 0, 1, 1], [], []>} : vector<3x256xbf16>, vector<256x64xbf16>, vector<3x64xf32> -> vector<3x64xf32>
    %530 = arith.truncf %463 : vector<12x256xf32> to vector<12x256xbf16>
    %c0_494 = arith.constant 0 : index
    %c0_495 = arith.constant 0 : index
    %531 = vector.load %arg33[%c0_494, %c0_495] : memref<256x64xbf16, #tpu.memory_space<vmem>>, vector<256x64xbf16>
    %cst_496 = arith.constant dense<0.000000e+00> : vector<12x64xf32>
    %532 = tpu.matmul %530, %531, %cst_496 {dimension_numbers = #tpu.dot_dimension_numbers<[1], [0], [0], [1], [0, 0, 1, 1], [], []>} : vector<12x256xbf16>, vector<256x64xbf16>, vector<12x64xf32> -> vector<12x64xf32>
    %c0_497 = arith.constant 0 : index
    %c0_498 = arith.constant 0 : index
    %533 = vector.load %arg26[%c0_497, %c0_498] : memref<2x4xbf16, #tpu.memory_space<vmem>>, vector<2x4xbf16>
    %534 = arith.truncf %465 : vector<4x64xf32> to vector<4x64xbf16>
    %cst_499 = arith.constant dense<0.000000e+00> : vector<2x64xf32>
    %535 = tpu.matmul %533, %534, %cst_499 {dimension_numbers = #tpu.dot_dimension_numbers<[1], [0], [0], [1], [0, 0, 1, 1], [], []>} : vector<2x4xbf16>, vector<4x64xbf16>, vector<2x64xf32> -> vector<2x64xf32>
    %c0_500 = arith.constant 0 : index
    %c0_501 = arith.constant 0 : index
    %536 = vector.load %arg27[%c0_500, %c0_501] : memref<2x1xf32, #tpu.memory_space<vmem>>, vector<2x1xf32>
    %537 = vector.broadcast %536 : vector<2x1xf32> to vector<2x64xf32>
    %538 = arith.mulf %535, %537 : vector<2x64xf32>
    %c0_502 = arith.constant 0 : index
    %c0_503 = arith.constant 0 : index
    %539 = vector.load %arg28[%c0_502, %c0_503] : memref<2x1xf32, #tpu.memory_space<vmem>>, vector<2x1xf32>
    %540 = vector.broadcast %539 : vector<2x1xf32> to vector<2x64xf32>
    %541 = arith.addf %538, %540 : vector<2x64xf32>
    %cst_504 = arith.constant 0.000000e+00 : f32
    %542 = vector.broadcast %cst_504 : f32 to vector<2x64xf32>
    %543 = arith.maximumf %541, %542 : vector<2x64xf32>
    %c0_505 = arith.constant 0 : index
    %c9_506 = arith.constant 9 : index
    %544 = vector.load %arg52[%c0_505, %c9_506] : memref<2x82xf32, #tpu.memory_space<vmem>>, vector<2x64xf32>
    tpu.vector_store %arg52[%c0_505, %c9_506], %543 {strides = array<i32>} : memref<2x82xf32, #tpu.memory_space<vmem>>, vector<2x64xf32>,
    %c0_507 = arith.constant 0 : index
    %c0_508 = arith.constant 0 : index
    %545 = vector.load %arg32[%c0_507, %c0_508] : memref<3x64xf32, #tpu.memory_space<vmem>>, vector<3x64xf32>
    %c0_509 = arith.constant 0 : index
    %c0_510 = arith.constant 0 : index
    %546 = vector.load %arg52[%c0_509, %c0_510] : memref<2x82xf32, #tpu.memory_space<vmem>>, vector<2x64xf32>
    %547 = vector.extract_strided_slice %545 {offsets = [0, 0], sizes = [1, 64], strides = [1, 1]} : vector<3x64xf32> to vector<1x64xf32>
    %548 = vector.broadcast %547 : vector<1x64xf32> to vector<2x64xf32>
    %549 = arith.mulf %546, %548 : vector<2x64xf32>
    %c0_511 = arith.constant 0 : index
    %c0_512 = arith.constant 0 : index
    %550 = vector.load %arg53[%c0_511, %c0_512] : memref<18x64xf32, #tpu.memory_space<vmem>>, vector<2x64xf32>
    tpu.vector_store %arg53[%c0_511, %c0_512], %549 {strides = array<i32>} : memref<18x64xf32, #tpu.memory_space<vmem>>, vector<2x64xf32>,
    %c0_513 = arith.constant 0 : index
    %c1_514 = arith.constant 1 : index
    %551 = vector.load %arg52[%c0_513, %c1_514] : memref<2x82xf32, #tpu.memory_space<vmem>>, vector<2x64xf32>
    %c2_515 = arith.constant 2 : index
    %c0_516 = arith.constant 0 : index
    %552 = vector.load %arg53[%c2_515, %c0_516] : memref<18x64xf32, #tpu.memory_space<vmem>>, vector<2x64xf32>
    tpu.vector_store %arg53[%c2_515, %c0_516], %551 {strides = array<i32>} : memref<18x64xf32, #tpu.memory_space<vmem>>, vector<2x64xf32>,
    %c0_517 = arith.constant 0 : index
    %c2_518 = arith.constant 2 : index
    %553 = vector.load %arg52[%c0_517, %c2_518] : memref<2x82xf32, #tpu.memory_space<vmem>>, vector<2x64xf32>
    %554 = vector.extract_strided_slice %545 {offsets = [2, 0], sizes = [1, 64], strides = [1, 1]} : vector<3x64xf32> to vector<1x64xf32>
    %555 = vector.broadcast %554 : vector<1x64xf32> to vector<2x64xf32>
    %556 = arith.mulf %553, %555 : vector<2x64xf32>
    %c4_519 = arith.constant 4 : index
    %c0_520 = arith.constant 0 : index
    %557 = vector.load %arg53[%c4_519, %c0_520] : memref<18x64xf32, #tpu.memory_space<vmem>>, vector<2x64xf32>
    tpu.vector_store %arg53[%c4_519, %c0_520], %556 {strides = array<i32>} : memref<18x64xf32, #tpu.memory_space<vmem>>, vector<2x64xf32>,
    %c0_521 = arith.constant 0 : index
    %c8_522 = arith.constant 8 : index
    %558 = vector.load %arg52[%c0_521, %c8_522] : memref<2x82xf32, #tpu.memory_space<vmem>>, vector<2x64xf32>
    %559 = vector.extract_strided_slice %545 {offsets = [0, 0], sizes = [1, 64], strides = [1, 1]} : vector<3x64xf32> to vector<1x64xf32>
    %560 = vector.broadcast %559 : vector<1x64xf32> to vector<2x64xf32>
    %561 = arith.mulf %558, %560 : vector<2x64xf32>
    %c6_523 = arith.constant 6 : index
    %c0_524 = arith.constant 0 : index
    %562 = vector.load %arg53[%c6_523, %c0_524] : memref<18x64xf32, #tpu.memory_space<vmem>>, vector<2x64xf32>
    tpu.vector_store %arg53[%c6_523, %c0_524], %561 {strides = array<i32>} : memref<18x64xf32, #tpu.memory_space<vmem>>, vector<2x64xf32>,
    %c0_525 = arith.constant 0 : index
    %c9_526 = arith.constant 9 : index
    %563 = vector.load %arg52[%c0_525, %c9_526] : memref<2x82xf32, #tpu.memory_space<vmem>>, vector<2x64xf32>
    %c8_527 = arith.constant 8 : index
    %c0_528 = arith.constant 0 : index
    %564 = vector.load %arg53[%c8_527, %c0_528] : memref<18x64xf32, #tpu.memory_space<vmem>>, vector<2x64xf32>
    tpu.vector_store %arg53[%c8_527, %c0_528], %563 {strides = array<i32>} : memref<18x64xf32, #tpu.memory_space<vmem>>, vector<2x64xf32>,
    %c0_529 = arith.constant 0 : index
    %c10_530 = arith.constant 10 : index
    %565 = vector.load %arg52[%c0_529, %c10_530] : memref<2x82xf32, #tpu.memory_space<vmem>>, vector<2x64xf32>
    %566 = vector.extract_strided_slice %545 {offsets = [2, 0], sizes = [1, 64], strides = [1, 1]} : vector<3x64xf32> to vector<1x64xf32>
    %567 = vector.broadcast %566 : vector<1x64xf32> to vector<2x64xf32>
    %568 = arith.mulf %565, %567 : vector<2x64xf32>
    %c10_531 = arith.constant 10 : index
    %c0_532 = arith.constant 0 : index
    %569 = vector.load %arg53[%c10_531, %c0_532] : memref<18x64xf32, #tpu.memory_space<vmem>>, vector<2x64xf32>
    tpu.vector_store %arg53[%c10_531, %c0_532], %568 {strides = array<i32>} : memref<18x64xf32, #tpu.memory_space<vmem>>, vector<2x64xf32>,
    %c0_533 = arith.constant 0 : index
    %c16_534 = arith.constant 16 : index
    %570 = vector.load %arg52[%c0_533, %c16_534] : memref<2x82xf32, #tpu.memory_space<vmem>>, vector<2x64xf32>
    %571 = vector.extract_strided_slice %545 {offsets = [0, 0], sizes = [1, 64], strides = [1, 1]} : vector<3x64xf32> to vector<1x64xf32>
    %572 = vector.broadcast %571 : vector<1x64xf32> to vector<2x64xf32>
    %573 = arith.mulf %570, %572 : vector<2x64xf32>
    %c12_535 = arith.constant 12 : index
    %c0_536 = arith.constant 0 : index
    %574 = vector.load %arg53[%c12_535, %c0_536] : memref<18x64xf32, #tpu.memory_space<vmem>>, vector<2x64xf32>
    tpu.vector_store %arg53[%c12_535, %c0_536], %573 {strides = array<i32>} : memref<18x64xf32, #tpu.memory_space<vmem>>, vector<2x64xf32>,
    %c0_537 = arith.constant 0 : index
    %c17_538 = arith.constant 17 : index
    %575 = vector.load %arg52[%c0_537, %c17_538] : memref<2x82xf32, #tpu.memory_space<vmem>>, vector<2x64xf32>
    %c14_539 = arith.constant 14 : index
    %c0_540 = arith.constant 0 : index
    %576 = vector.load %arg53[%c14_539, %c0_540] : memref<18x64xf32, #tpu.memory_space<vmem>>, vector<2x64xf32>
    tpu.vector_store %arg53[%c14_539, %c0_540], %575 {strides = array<i32>} : memref<18x64xf32, #tpu.memory_space<vmem>>, vector<2x64xf32>,
    %c0_541 = arith.constant 0 : index
    %c18_542 = arith.constant 18 : index
    %577 = vector.load %arg52[%c0_541, %c18_542] : memref<2x82xf32, #tpu.memory_space<vmem>>, vector<2x64xf32>
    %578 = vector.extract_strided_slice %545 {offsets = [2, 0], sizes = [1, 64], strides = [1, 1]} : vector<3x64xf32> to vector<1x64xf32>
    %579 = vector.broadcast %578 : vector<1x64xf32> to vector<2x64xf32>
    %580 = arith.mulf %577, %579 : vector<2x64xf32>
    %c16_543 = arith.constant 16 : index
    %c0_544 = arith.constant 0 : index
    %581 = vector.load %arg53[%c16_543, %c0_544] : memref<18x64xf32, #tpu.memory_space<vmem>>, vector<2x64xf32>
    tpu.vector_store %arg53[%c16_543, %c0_544], %580 {strides = array<i32>} : memref<18x64xf32, #tpu.memory_space<vmem>>, vector<2x64xf32>,
    %c0_545 = arith.constant 0 : index
    %c0_546 = arith.constant 0 : index
    %582 = vector.load %arg29[%c0_545, %c0_546] : memref<1x18xbf16, #tpu.memory_space<vmem>>, vector<1x18xbf16>
    %c0_547 = arith.constant 0 : index
    %c0_548 = arith.constant 0 : index
    %583 = vector.load %arg53[%c0_547, %c0_548] : memref<18x64xf32, #tpu.memory_space<vmem>>, vector<18x64xf32>
    %584 = arith.truncf %583 : vector<18x64xf32> to vector<18x64xbf16>
    %cst_549 = arith.constant dense<0.000000e+00> : vector<1x64xf32>
    %585 = tpu.matmul %582, %584, %cst_549 {dimension_numbers = #tpu.dot_dimension_numbers<[1], [0], [0], [1], [0, 0, 1, 1], [], []>} : vector<1x18xbf16>, vector<18x64xbf16>, vector<1x64xf32> -> vector<1x64xf32>
    %c0_550 = arith.constant 0 : index
    %c0_551 = arith.constant 0 : index
    %586 = vector.load %arg30[%c0_550, %c0_551] : memref<1x1xf32, #tpu.memory_space<vmem>>, vector<1x1xf32>
    %587 = vector.broadcast %586 : vector<1x1xf32> to vector<1x64xf32>
    %588 = arith.mulf %585, %587 : vector<1x64xf32>
    %c0_552 = arith.constant 0 : index
    %c0_553 = arith.constant 0 : index
    %589 = vector.load %arg31[%c0_552, %c0_553] : memref<1x1xf32, #tpu.memory_space<vmem>>, vector<1x1xf32>
    %590 = vector.broadcast %589 : vector<1x1xf32> to vector<1x64xf32>
    %591 = arith.addf %588, %590 : vector<1x64xf32>
    %cst_554 = arith.constant 0.000000e+00 : f32
    %592 = vector.broadcast %cst_554 : f32 to vector<1x64xf32>
    %593 = arith.maximumf %591, %592 : vector<1x64xf32>
    %c0_555 = arith.constant 0 : index
    %c0_556 = arith.constant 0 : index
    %c64 = arith.constant 64 : index
    %594 = vector.load %arg44[%c0_555, %c0_556, %c64] : memref<1x16x128xf32, #tpu.memory_space<vmem>>, vector<1x12x64xf32>
    %595 = vector.shape_cast %594 : vector<1x12x64xf32> to vector<12x64xf32>
    %596 = vector.shape_cast %532 : vector<12x64xf32> to vector<1x12x64xf32>
    tpu.vector_store %arg44[%c0_555, %c0_556, %c64], %596 {strides = array<i32>} : memref<1x16x128xf32, #tpu.memory_space<vmem>>, vector<1x12x64xf32>,
    %c0_557 = arith.constant 0 : index
    %c12_558 = arith.constant 12 : index
    %c64_559 = arith.constant 64 : index
    %597 = vector.load %arg44[%c0_557, %c12_558, %c64_559] : memref<1x16x128xf32, #tpu.memory_space<vmem>>, vector<1x1x64xf32>
    %598 = vector.shape_cast %597 : vector<1x1x64xf32> to vector<1x64xf32>
    %599 = vector.shape_cast %593 : vector<1x64xf32> to vector<1x1x64xf32>
    tpu.vector_store %arg44[%c0_557, %c12_558, %c64_559], %599 {strides = array<i32>} : memref<1x16x128xf32, #tpu.memory_space<vmem>>, vector<1x1x64xf32>,
    %c0_560 = arith.constant 0 : index
    %c13_561 = arith.constant 13 : index
    %c64_562 = arith.constant 64 : index
    %600 = vector.load %arg44[%c0_560, %c13_561, %c64_562] : memref<1x16x128xf32, #tpu.memory_space<vmem>>, vector<1x3x64xf32>
    %601 = vector.shape_cast %600 : vector<1x3x64xf32> to vector<3x64xf32>
    %602 = vector.shape_cast %529 : vector<3x64xf32> to vector<1x3x64xf32>
    tpu.vector_store %arg44[%c0_560, %c13_561, %c64_562], %602 {strides = array<i32>} : memref<1x16x128xf32, #tpu.memory_space<vmem>>, vector<1x3x64xf32>,
    %c1_563 = arith.constant 1 : index
    %c0_564 = arith.constant 0 : index
    %c0_565 = arith.constant 0 : index
    %603 = vector.load %arg35[%c1_563, %c0_564, %c0_565] : memref<2x4x64xf32, #tpu.memory_space<vmem>>, vector<1x4x64xf32>
    %604 = vector.shape_cast %603 : vector<1x4x64xf32> to vector<4x64xf32>
    %c0_566 = arith.constant 0 : index
    %c0_567 = arith.constant 0 : index
    %605 = vector.load %arg36[%c0_566, %c0_567] : memref<4x4xbf16, #tpu.memory_space<vmem>>, vector<4x4xbf16>
    %606 = arith.truncf %604 : vector<4x64xf32> to vector<4x64xbf16>
    %cst_568 = arith.constant dense<0.000000e+00> : vector<4x64xf32>
    %607 = tpu.matmul %605, %606, %cst_568 {dimension_numbers = #tpu.dot_dimension_numbers<[1], [0], [0], [1], [0, 0, 1, 1], [], []>} : vector<4x4xbf16>, vector<4x64xbf16>, vector<4x64xf32> -> vector<4x64xf32>
    %c0_569 = arith.constant 0 : index
    %c0_570 = arith.constant 0 : index
    %608 = vector.load %arg37[%c0_569, %c0_570] : memref<4x1xf32, #tpu.memory_space<vmem>>, vector<4x1xf32>
    %609 = vector.broadcast %608 : vector<4x1xf32> to vector<4x64xf32>
    %610 = arith.mulf %607, %609 : vector<4x64xf32>
    %c0_571 = arith.constant 0 : index
    %c0_572 = arith.constant 0 : index
    %611 = vector.load %arg38[%c0_571, %c0_572] : memref<4x1xf32, #tpu.memory_space<vmem>>, vector<4x1xf32>
    %612 = vector.broadcast %611 : vector<4x1xf32> to vector<4x64xf32>
    %613 = arith.addf %610, %612 : vector<4x64xf32>
    %cst_573 = arith.constant 0.000000e+00 : f32
    %614 = vector.broadcast %cst_573 : f32 to vector<4x64xf32>
    %615 = arith.maximumf %613, %614 : vector<4x64xf32>
    %c0_574 = arith.constant 0 : index
    %c0_575 = arith.constant 0 : index
    %c64_576 = arith.constant 64 : index
    %616 = vector.load %arg44[%c0_574, %c0_575, %c64_576] : memref<1x16x128xf32, #tpu.memory_space<vmem>>, vector<1x16x64xf32>
    %617 = vector.shape_cast %616 : vector<1x16x64xf32> to vector<16x64xf32>
    %c0_577 = arith.constant 0 : index
    %c0_578 = arith.constant 0 : index
    %618 = vector.load %arg39[%c0_577, %c0_578] : memref<10x16xbf16, #tpu.memory_space<vmem>>, vector<10x16xbf16>
    %619 = arith.truncf %617 : vector<16x64xf32> to vector<16x64xbf16>
    %cst_579 = arith.constant dense<0.000000e+00> : vector<10x64xf32>
    %620 = tpu.matmul %618, %619, %cst_579 {dimension_numbers = #tpu.dot_dimension_numbers<[1], [0], [0], [1], [0, 0, 1, 1], [], []>} : vector<10x16xbf16>, vector<16x64xbf16>, vector<10x64xf32> -> vector<10x64xf32>
    %c0_580 = arith.constant 0 : index
    %c0_581 = arith.constant 0 : index
    %621 = vector.load %arg40[%c0_580, %c0_581] : memref<10x4xbf16, #tpu.memory_space<vmem>>, vector<10x4xbf16>
    %622 = arith.truncf %615 : vector<4x64xf32> to vector<4x64xbf16>
    %cst_582 = arith.constant dense<0.000000e+00> : vector<10x64xf32>
    %623 = tpu.matmul %621, %622, %cst_582 {dimension_numbers = #tpu.dot_dimension_numbers<[1], [0], [0], [1], [0, 0, 1, 1], [], []>} : vector<10x4xbf16>, vector<4x64xbf16>, vector<10x64xf32> -> vector<10x64xf32>
    %624 = arith.addf %620, %623 : vector<10x64xf32>
    %c0_583 = arith.constant 0 : index
    %c0_584 = arith.constant 0 : index
    %625 = vector.load %arg41[%c0_583, %c0_584] : memref<10x1xf32, #tpu.memory_space<vmem>>, vector<10x1xf32>
    %626 = vector.broadcast %625 : vector<10x1xf32> to vector<10x64xf32>
    %627 = arith.mulf %624, %626 : vector<10x64xf32>
    %c0_585 = arith.constant 0 : index
    %c0_586 = arith.constant 0 : index
    %628 = vector.load %arg42[%c0_585, %c0_586] : memref<10x1xf32, #tpu.memory_space<vmem>>, vector<10x1xf32>
    %629 = vector.broadcast %628 : vector<10x1xf32> to vector<10x64xf32>
    %630 = arith.addf %627, %629 : vector<10x64xf32>
    %cst_587 = arith.constant 0.000000e+00 : f32
    %631 = vector.broadcast %cst_587 : f32 to vector<10x64xf32>
    %632 = arith.maximumf %630, %631 : vector<10x64xf32>
    %c0_588 = arith.constant 0 : index
    %c0_589 = arith.constant 0 : index
    %c64_590 = arith.constant 64 : index
    %633 = vector.load %arg45[%c0_588, %c0_589, %c64_590] : memref<1x10x128xf32, #tpu.memory_space<vmem>>, vector<1x10x64xf32>
    %634 = vector.shape_cast %633 : vector<1x10x64xf32> to vector<10x64xf32>
    %635 = vector.shape_cast %632 : vector<10x64xf32> to vector<1x10x64xf32>
    tpu.vector_store %arg45[%c0_588, %c0_589, %c64_590], %635 {strides = array<i32>} : memref<1x10x128xf32, #tpu.memory_space<vmem>>, vector<1x10x64xf32>,
    return
  }
  func.func @transform_0(%arg0: i32) -> (i32, i32, i32) {
    %c0_i32 = arith.constant 0 : i32
    %c0_i32_0 = arith.constant 0 : i32
    %c0_i32_1 = arith.constant 0 : i32
    return %arg0, %c0_i32, %c0_i32_0 : i32, i32, i32
  }
  func.func @transform_1(%arg0: i32) -> (i32, i32, i32) {
    %c0_i32 = arith.constant 0 : i32
    %c0_i32_0 = arith.constant 0 : i32
    %c0_i32_1 = arith.constant 0 : i32
    return %arg0, %c0_i32, %c0_i32_0 : i32, i32, i32
  }
  func.func @transform_2(%arg0: i32) -> (i32, i32) {
    %c0_i32 = arith.constant 0 : i32
    %c0_i32_0 = arith.constant 0 : i32
    %c0_i32_1 = arith.constant 0 : i32
    return %c0_i32, %c0_i32_0 : i32, i32
  }
  func.func @transform_3(%arg0: i32) -> (i32, i32) {
    %c0_i32 = arith.constant 0 : i32
    %c0_i32_0 = arith.constant 0 : i32
    %c0_i32_1 = arith.constant 0 : i32
    return %c0_i32, %c0_i32_0 : i32, i32
  }
  func.func @transform_4(%arg0: i32) -> (i32, i32) {
    %c0_i32 = arith.constant 0 : i32
    %c0_i32_0 = arith.constant 0 : i32
    %c0_i32_1 = arith.constant 0 : i32
    return %c0_i32, %c0_i32_0 : i32, i32
  }
  func.func @transform_5(%arg0: i32) -> (i32, i32) {
    %c0_i32 = arith.constant 0 : i32
    %c0_i32_0 = arith.constant 0 : i32
    %c0_i32_1 = arith.constant 0 : i32
    return %c0_i32, %c0_i32_0 : i32, i32
  }
  func.func @transform_6(%arg0: i32) -> (i32, i32) {
    %c0_i32 = arith.constant 0 : i32
    %c0_i32_0 = arith.constant 0 : i32
    %c0_i32_1 = arith.constant 0 : i32
    return %c0_i32, %c0_i32_0 : i32, i32
  }
  func.func @transform_7(%arg0: i32) -> (i32, i32) {
    %c0_i32 = arith.constant 0 : i32
    %c0_i32_0 = arith.constant 0 : i32
    %c0_i32_1 = arith.constant 0 : i32
    return %c0_i32, %c0_i32_0 : i32, i32
  }
  func.func @transform_8(%arg0: i32) -> (i32, i32) {
    %c0_i32 = arith.constant 0 : i32
    %c0_i32_0 = arith.constant 0 : i32
    %c0_i32_1 = arith.constant 0 : i32
    return %c0_i32, %c0_i32_0 : i32, i32
  }
  func.func @transform_9(%arg0: i32) -> (i32, i32) {
    %c0_i32 = arith.constant 0 : i32
    %c0_i32_0 = arith.constant 0 : i32
    %c0_i32_1 = arith.constant 0 : i32
    return %c0_i32, %c0_i32_0 : i32, i32
  }
  func.func @transform_10(%arg0: i32) -> (i32, i32) {
    %c0_i32 = arith.constant 0 : i32
    %c0_i32_0 = arith.constant 0 : i32
    %c0_i32_1 = arith.constant 0 : i32
    return %c0_i32, %c0_i32_0 : i32, i32
  }
  func.func @transform_11(%arg0: i32) -> (i32, i32) {
    %c0_i32 = arith.constant 0 : i32
    %c0_i32_0 = arith.constant 0 : i32
    %c0_i32_1 = arith.constant 0 : i32
    return %c0_i32, %c0_i32_0 : i32, i32
  }
  func.func @transform_12(%arg0: i32) -> (i32, i32) {
    %c0_i32 = arith.constant 0 : i32
    %c0_i32_0 = arith.constant 0 : i32
    %c0_i32_1 = arith.constant 0 : i32
    return %c0_i32, %c0_i32_0 : i32, i32
  }
  func.func @transform_13(%arg0: i32) -> (i32, i32) {
    %c0_i32 = arith.constant 0 : i32
    %c0_i32_0 = arith.constant 0 : i32
    %c0_i32_1 = arith.constant 0 : i32
    return %c0_i32, %c0_i32_0 : i32, i32
  }
  func.func @transform_14(%arg0: i32) -> (i32, i32) {
    %c0_i32 = arith.constant 0 : i32
    %c0_i32_0 = arith.constant 0 : i32
    %c0_i32_1 = arith.constant 0 : i32
    return %c0_i32, %c0_i32_0 : i32, i32
  }
  func.func @transform_15(%arg0: i32) -> (i32, i32) {
    %c0_i32 = arith.constant 0 : i32
    %c0_i32_0 = arith.constant 0 : i32
    %c0_i32_1 = arith.constant 0 : i32
    return %c0_i32, %c0_i32_0 : i32, i32
  }
  func.func @transform_16(%arg0: i32) -> (i32, i32) {
    %c0_i32 = arith.constant 0 : i32
    %c0_i32_0 = arith.constant 0 : i32
    %c0_i32_1 = arith.constant 0 : i32
    return %c0_i32, %c0_i32_0 : i32, i32
  }
  func.func @transform_17(%arg0: i32) -> (i32, i32, i32) {
    %c0_i32 = arith.constant 0 : i32
    %c0_i32_0 = arith.constant 0 : i32
    %c0_i32_1 = arith.constant 0 : i32
    return %arg0, %c0_i32, %c0_i32_0 : i32, i32, i32
  }
  func.func @transform_18(%arg0: i32) -> (i32, i32) {
    %c0_i32 = arith.constant 0 : i32
    %c0_i32_0 = arith.constant 0 : i32
    %c0_i32_1 = arith.constant 0 : i32
    return %c0_i32, %c0_i32_0 : i32, i32
  }
  func.func @transform_19(%arg0: i32) -> (i32, i32) {
    %c0_i32 = arith.constant 0 : i32
    %c0_i32_0 = arith.constant 0 : i32
    %c0_i32_1 = arith.constant 0 : i32
    return %c0_i32, %c0_i32_0 : i32, i32
  }
  func.func @transform_20(%arg0: i32) -> (i32, i32) {
    %c0_i32 = arith.constant 0 : i32
    %c0_i32_0 = arith.constant 0 : i32
    %c0_i32_1 = arith.constant 0 : i32
    return %c0_i32, %c0_i32_0 : i32, i32
  }
  func.func @transform_21(%arg0: i32) -> (i32, i32) {
    %c0_i32 = arith.constant 0 : i32
    %c0_i32_0 = arith.constant 0 : i32
    %c0_i32_1 = arith.constant 0 : i32
    return %c0_i32, %c0_i32_0 : i32, i32
  }
  func.func @transform_22(%arg0: i32) -> (i32, i32) {
    %c0_i32 = arith.constant 0 : i32
    %c0_i32_0 = arith.constant 0 : i32
    %c0_i32_1 = arith.constant 0 : i32
    return %c0_i32, %c0_i32_0 : i32, i32
  }
  func.func @transform_23(%arg0: i32) -> (i32, i32) {
    %c0_i32 = arith.constant 0 : i32
    %c0_i32_0 = arith.constant 0 : i32
    %c0_i32_1 = arith.constant 0 : i32
    return %c0_i32, %c0_i32_0 : i32, i32
  }
  func.func @transform_24(%arg0: i32) -> (i32, i32) {
    %c0_i32 = arith.constant 0 : i32
    %c0_i32_0 = arith.constant 0 : i32
    %c0_i32_1 = arith.constant 0 : i32
    return %c0_i32, %c0_i32_0 : i32, i32
  }
  func.func @transform_25(%arg0: i32) -> (i32, i32) {
    %c0_i32 = arith.constant 0 : i32
    %c0_i32_0 = arith.constant 0 : i32
    %c0_i32_1 = arith.constant 0 : i32
    return %c0_i32, %c0_i32_0 : i32, i32
  }
  func.func @transform_26(%arg0: i32) -> (i32, i32) {
    %c0_i32 = arith.constant 0 : i32
    %c0_i32_0 = arith.constant 0 : i32
    %c0_i32_1 = arith.constant 0 : i32
    return %c0_i32, %c0_i32_0 : i32, i32
  }
  func.func @transform_27(%arg0: i32) -> (i32, i32) {
    %c0_i32 = arith.constant 0 : i32
    %c0_i32_0 = arith.constant 0 : i32
    %c0_i32_1 = arith.constant 0 : i32
    return %c0_i32, %c0_i32_0 : i32, i32
  }
  func.func @transform_28(%arg0: i32) -> (i32, i32) {
    %c0_i32 = arith.constant 0 : i32
    %c0_i32_0 = arith.constant 0 : i32
    %c0_i32_1 = arith.constant 0 : i32
    return %c0_i32, %c0_i32_0 : i32, i32
  }
  func.func @transform_29(%arg0: i32) -> (i32, i32) {
    %c0_i32 = arith.constant 0 : i32
    %c0_i32_0 = arith.constant 0 : i32
    %c0_i32_1 = arith.constant 0 : i32
    return %c0_i32, %c0_i32_0 : i32, i32
  }
  func.func @transform_30(%arg0: i32) -> (i32, i32) {
    %c0_i32 = arith.constant 0 : i32
    %c0_i32_0 = arith.constant 0 : i32
    %c0_i32_1 = arith.constant 0 : i32
    return %c0_i32, %c0_i32_0 : i32, i32
  }
  func.func @transform_31(%arg0: i32) -> (i32, i32) {
    %c0_i32 = arith.constant 0 : i32
    %c0_i32_0 = arith.constant 0 : i32
    %c0_i32_1 = arith.constant 0 : i32
    return %c0_i32, %c0_i32_0 : i32, i32
  }
  func.func @transform_32(%arg0: i32) -> (i32, i32) {
    %c0_i32 = arith.constant 0 : i32
    %c0_i32_0 = arith.constant 0 : i32
    %c0_i32_1 = arith.constant 0 : i32
    return %c0_i32, %c0_i32_0 : i32, i32
  }
  func.func @transform_33(%arg0: i32) -> (i32, i32) {
    %c0_i32 = arith.constant 0 : i32
    %c0_i32_0 = arith.constant 0 : i32
    %c0_i32_1 = arith.constant 0 : i32
    return %c0_i32, %c0_i32_0 : i32, i32
  }
  func.func @transform_34(%arg0: i32) -> (i32, i32, i32) {
    %c0_i32 = arith.constant 0 : i32
    %c0_i32_0 = arith.constant 0 : i32
    %c0_i32_1 = arith.constant 0 : i32
    return %arg0, %c0_i32, %c0_i32_0 : i32, i32, i32
  }
  func.func @transform_35(%arg0: i32) -> (i32, i32) {
    %c0_i32 = arith.constant 0 : i32
    %c0_i32_0 = arith.constant 0 : i32
    %c0_i32_1 = arith.constant 0 : i32
    return %c0_i32, %c0_i32_0 : i32, i32
  }
  func.func @transform_36(%arg0: i32) -> (i32, i32) {
    %c0_i32 = arith.constant 0 : i32
    %c0_i32_0 = arith.constant 0 : i32
    %c0_i32_1 = arith.constant 0 : i32
    return %c0_i32, %c0_i32_0 : i32, i32
  }
  func.func @transform_37(%arg0: i32) -> (i32, i32) {
    %c0_i32 = arith.constant 0 : i32
    %c0_i32_0 = arith.constant 0 : i32
    %c0_i32_1 = arith.constant 0 : i32
    return %c0_i32, %c0_i32_0 : i32, i32
  }
  func.func @transform_38(%arg0: i32) -> (i32, i32) {
    %c0_i32 = arith.constant 0 : i32
    %c0_i32_0 = arith.constant 0 : i32
    %c0_i32_1 = arith.constant 0 : i32
    return %c0_i32, %c0_i32_0 : i32, i32
  }
  func.func @transform_39(%arg0: i32) -> (i32, i32) {
    %c0_i32 = arith.constant 0 : i32
    %c0_i32_0 = arith.constant 0 : i32
    %c0_i32_1 = arith.constant 0 : i32
    return %c0_i32, %c0_i32_0 : i32, i32
  }
  func.func @transform_40(%arg0: i32) -> (i32, i32) {
    %c0_i32 = arith.constant 0 : i32
    %c0_i32_0 = arith.constant 0 : i32
    %c0_i32_1 = arith.constant 0 : i32
    return %c0_i32, %c0_i32_0 : i32, i32
  }
  func.func @transform_41(%arg0: i32) -> (i32, i32) {
    %c0_i32 = arith.constant 0 : i32
    %c0_i32_0 = arith.constant 0 : i32
    %c0_i32_1 = arith.constant 0 : i32
    return %c0_i32, %c0_i32_0 : i32, i32
  }
  func.func @transform_42(%arg0: i32) -> (i32, i32, i32) {
    %c0_i32 = arith.constant 0 : i32
    %c0_i32_0 = arith.constant 0 : i32
    %c0_i32_1 = arith.constant 0 : i32
    return %arg0, %c0_i32, %c0_i32_0 : i32, i32, i32
  }
  func.func @transform_43(%arg0: i32) -> (i32, i32, i32) {
    %c0_i32 = arith.constant 0 : i32
    %c0_i32_0 = arith.constant 0 : i32
    %c0_i32_1 = arith.constant 0 : i32
    return %arg0, %c0_i32, %c0_i32_0 : i32, i32, i32
  }
  func.func @transform_44(%arg0: i32) -> (i32, i32, i32) {
    %c0_i32 = arith.constant 0 : i32
    %c0_i32_0 = arith.constant 0 : i32
    %c0_i32_1 = arith.constant 0 : i32
    return %arg0, %c0_i32, %c0_i32_0 : i32, i32, i32
  }
}

</mosaic_0001>

<bundles_post_ra>
// kernel: _lambda_.1
= control target key start
LH: loop header
LB: loop body
LE: loop exit
PB: predicated region body
PF: predicated region fallthrough
CT: control target
= control target key end

     0   :  { %s4363_s6 = smov 1   ;;  %s4364_s10 = smov 2   ;;  %s5413_s0 = inlined_call_operand.smem [shape: u32[45], index: -1, kind: input, shape index: {}] }
   0x1   :  { %s4444_s5 = sld [smem:[%s5413_s0]]   ;;  %s4365_s14 = smov 3  }
   0x2   :  { %s4449_s9 = sld [smem:[%s5413_s0 + %s4363_s6]]   ;;  %s4366_s18 = smov 4  }
   0x3   :  { %s4454_s13 = sld [smem:[%s5413_s0 + %s4364_s10]]   ;;  %s4367_s22 = smov 5  }
   0x4   :  { %s4459_s17 = sld [smem:[%s5413_s0 + %s4365_s14]]   ;;  %s4368_s26 = smov 6  }
   0x5   :  { %s4464_s21 = sld [smem:[%s5413_s0 + %s4366_s18]]   ;;  %s4369_s30 = smov 7  }
   0x6   :  { %s4469_s25 = sld [smem:[%s5413_s0 + %s4367_s22]]   ;;  %s4370_s4 = smov 8  }
   0x7   :  { %s4474_s29 = sld [smem:[%s5413_s0 + %s4368_s26]]   ;;  %s4371_s10 = smov 9  }
   0x8   :  { %s4479_s3 = sld [smem:[%s5413_s0 + %s4369_s30]]   ;;  %s4372_s15 = smov 10  }
   0x9   :  { %s4484_s8 = sld [smem:[%s5413_s0 + %s4370_s4]]   ;;  %s4373_s20 = smov 11  }
   0xa   :  { %5504 = sst [smem:[#allocation25_spill]] %s4459_s17  ;;  %s4374_s26 = smov 12  }
   0xb   :  { %5505 = sst [smem:[#allocation26_spill]] %s4464_s21  ;;  %s4375_s1 = smov 13  }
   0xc   :  { %5506 = sst [smem:[#allocation27_spill]] %s4469_s25  ;;  %s4376_s7 = smov 15  }
   0xd   :  { %5507 = sst [smem:[#allocation28_spill]] %s4474_s29  ;;  %s4378_s22 = smov 17  }
   0xe   :  { %5508 = sst [smem:[#allocation29_spill]] %s4479_s3  ;;  %s4379_s28 = smov 18  }
   0xf   :  { %5509 = sst [smem:[#allocation30_spill]] %s4484_s8  ;;  %s4405_s16 = smov 29  }
  0x10   :  { %s4489_s14 = sld [smem:[%s5413_s0 + %s4371_s10]]   ;;  %s4384_s10 = smov 23  }
  0x11   :  { %s4494_s19 = sld [smem:[%s5413_s0 + %s4372_s15]]   ;;  %s4377_s15 = smov 16  }
  0x12   :  { %s4499_s24 = sld [smem:[%s5413_s0 + %s4373_s20]]   ;;  %s4406_s17 = smov 30  }
  0x13   :  { %s4504_s30 = sld [smem:[%s5413_s0 + %s4374_s26]]  }
  0x14   :  { %s3668_s6 = sld [smem:[%s5413_s0 + %s4375_s1]]  }
  0x15   :  { %s4512_s12 = sld [smem:[%s5413_s0 + %s4376_s7]]   ;;  %s4380_s7 = smov 19  }
  0x16   :  { %s4517_s20 = sld [smem:[%s5413_s0 + %s4377_s15]]   ;;  %s4381_s15 = smov 20  }
  0x17   :  { %s4522_s27 = sld [smem:[%s5413_s0 + %s4378_s22]]   ;;  %s4382_s22 = smov 21  }
  0x18   :  { %s4527_s4 = sld [smem:[%s5413_s0 + %s4379_s28]]   ;;  %s4383_s28 = smov 22  }
  0x19   :  { %5510 = sst [smem:[#allocation31_spill]] %s4504_s30 }
  0x1a   :  { %s4532_s25 = sld [smem:[%s5413_s0 + %s4380_s7]]   ;;  %v95_v0 = vstv %s3668_s6  ;;  %s4385_s6 = smov 24  }
  0x1b   :  { %s4542_s1 = sld [smem:[%s5413_s0 + %s4382_s22]]   ;;  %96 = vst [vmem:[#allocation10] sm:$0x1] %v95_v0  ;;  %s4386_s22 = smov 25  }
  0x1c   :  { %5511 = sst [smem:[#allocation32_spill]] %s4517_s20 }
  0x1d   :  { %5512 = sst [smem:[#allocation33_spill]] %s4522_s27  ;;  %s4387_s27 = smov 26  }
  0x1e   :  { %5513 = sst [smem:[#allocation34_spill]] %s4527_s4  ;;  %s4388_s4 = smov 27  }
  0x1f   :  { %s4537_s20 = sld [smem:[%s5413_s0 + %s4381_s15]]  }
  0x20   :  { %5514 = sst [smem:[#allocation35_spill]] %s4532_s25 }
  0x21   :  { %5516 = sst [smem:[#allocation37_spill]] %s4542_s1  ;;  %s4390_s1 = smov 31  }
  0x22   :  { %s4547_s7 = sld [smem:[%s5413_s0 + %s4383_s28]]  }
  0x23   :  { %s4552_s15 = sld [smem:[%s5413_s0 + %s4384_s10]]  }
  0x24   :  { %s4557_s23 = sld [smem:[%s5413_s0 + %s4385_s6]]   ;;  %s4389_s6 = smov 28  }
  0x25   :  { %5515 = sst [smem:[#allocation36_spill]] %s4537_s20 }
  0x26   :  { %s4562_s20 = sld [smem:[%s5413_s0 + %s4386_s22]]  }
  0x27   :  { %s4582_s3 = sld [smem:[%s5413_s0 + %s4390_s1]]   ;;  %s4394_s1 = smov 35  }
  0x28   :  { %5517 = sst [smem:[#allocation38_spill]] %s4547_s7 }
  0x29   :  { %5518 = sst [smem:[#allocation39_spill]] %s4552_s15 }
  0x2a   :  { %5519 = sst [smem:[#allocation40_spill]] %s4557_s23 }
  0x2b   :  { %s4567_s7 = sld [smem:[%s5413_s0 + %s4387_s27]]   ;;  %s4391_s27 = smov 32  }
  0x2c   :  { %s4572_s15 = sld [smem:[%s5413_s0 + %s4388_s4]]   ;;  %s4392_s4 = smov 33  }
  0x2d   :  { %s4577_s23 = sld [smem:[%s5413_s0 + %s4389_s6]]   ;;  %s4393_s6 = smov 34  }
  0x2e   :  { %5521 = sst [smem:[#allocation42_spill]] %s4582_s3 }
  0x2f   :  { %s4587_s25 = sld [smem:[%s5413_s0 + %s4391_s27]]   ;;  %s4395_s27 = smov 36  }
  0x30   :  { %s4592_s29 = sld [smem:[%s5413_s0 + %s4392_s4]]   ;;  %s4396_s4 = smov 37  }
  0x31   :  { %s4602_s3 = sld [smem:[%s5413_s0 + %s4394_s1]]   ;;  %s4398_s1 = smov 39  }
  0x32   :  { %s4612_s30 = sld [smem:[%s5413_s0 + %s4396_s4]]   ;;  %s4400_s4 = smov 41  }
  0x33   :  { %5520 = sst [smem:[#allocation41_spill]] %s4577_s23 }
  0x34   :  { %s4597_s23 = sld [smem:[%s5413_s0 + %s4393_s6]]   ;;  %s4397_s6 = smov 38  }
  0x35   :  { %5522 = sst [smem:[#allocation43_spill]] %s4587_s25 }
  0x36   :  { %s4607_s25 = sld [smem:[%s5413_s0 + %s4395_s27]]   ;;  %s4399_s27 = smov 40  }
  0x37   :  { %s4622_s8 = sld [smem:[%s5413_s0 + %s4398_s1]]   ;;  %s4402_s1 = smov 43  }
  0x38   :  { %5525 = sst [smem:[#allocation46_spill]] %s4612_s30 }
  0x39   :  { %s4632_s30 = sld [smem:[%s5413_s0 + %s4400_s4]]   ;;  %s4404_s4 = smov 14  }
  0x3a   :  { %5523 = sst [smem:[#allocation44_spill]] %s4597_s23 }
  0x3b   :  { %s4617_s23 = sld [smem:[%s5413_s0 + %s4397_s6]]   ;;  %s4401_s6 = smov 42  }
  0x3c   :  { %5524 = sst [smem:[#allocation45_spill]] %s4607_s25 }
  0x3d   :  { %5527 = sst [smem:[#allocation48_spill]] %s4622_s8 }
  0x3e   :  { %s4627_s25 = sld [smem:[%s5413_s0 + %s4399_s27]]   ;;  %s4403_s27 = smov 44  }
  0x3f   :  { %5529 = sst [smem:[#allocation50_spill]] %s4632_s30 }
  0x40   :  { %s4642_s8 = sld [smem:[%s5413_s0 + %s4402_s1]]  }
  0x41   :  { %5526 = sst [smem:[#allocation47_spill]] %s4617_s23 }
  0x42   :  { %s4637_s23 = sld [smem:[%s5413_s0 + %s4401_s6]]  }
  0x43   :  { %s3669_s30 = sld [smem:[%s5413_s0 + %s4404_s4]]  }
  0x44   :  { %5528 = sst [smem:[#allocation49_spill]] %s4627_s25 }
  0x45   :  { %s4647_s25 = sld [smem:[%s5413_s0 + %s4403_s27]]  }
  0x46   :  { %s3684_s21 = sld [smem:[%s5413_s0 + %s4405_s16]]  }
  0x47   :  { %s3685_s26 = sld [smem:[%s5413_s0 + %s4406_s17]]  }
  0x49   :  { %v97_v1 = vstv %s3669_s30 }
  0x4a   :  { %98 = vst [vmem:[#allocation11] sm:$0x1] %v97_v1 }
  0x4b   :  { %5530 = sst [smem:[#allocation51_spill]] %s4647_s25 }
  0x4c   :  { %v99_v2 = vstv %s3684_s21 }
  0x4d   :  { %100 = vst [vmem:[#allocation12] sm:$0x1] %v99_v2  ;;  %v101_v3 = vstv %s3685_s26 }
  0x4e   :  { %102 = vst [vmem:[#allocation13] sm:$0x1] %v101_v3 }
  0x4f   :  { %103 = vsyncpa [#allocation15], 0 }
  0x50   :  { %104 = vsyncpa [#allocation17], 0  ;;  %s172_s27 = sshll.u32 %s4567_s7, 4  ;;  %s173_s27 = int_to_ptr.hbm [resolvable:$true] %s172_s27 }
  0x51   :  { %105 = vsyncpa [#allocation20], 0  ;;  %s4407_s28 = smov [#allocation16]   ;;  %s203_s4 = sshll.u32 %s4592_s29, 4  ;;  %s204_s4 = int_to_ptr.hbm [resolvable:$true] %s203_s4 }
  0x52   :  { %s174_s2 = sshll.u32 %s4407_s28, 4  ;;  %s4237_s0 = sshra.s32 %s173_s27, 4  ;;  %s175_s2 = int_to_ptr.vmem [resolvable:$true] %s174_s2  ;;  %s4238_s0 = int_to_ptr.hbm [resolvable:$true] %s4237_s0 }
  0x53   :  { %s4239_s17 = scalar_lea.hbm %s4238_s0, 2  ;;  %s4241_s21 = scalar_lea.hbm %s4567_s7, 2 }
  0x54   :  { %p4240_p0 = scmp.ne.s32.totalorder %s4238_s0, %s4239_s17  ;;  %p4242_p1 = scmp.lt.s32.totalorder %s4238_s0, %s4567_s7 }
  0x55   :  { %p4243_p2 = scmp.lt.s32.totalorder %s4241_s21, %s4239_s17 }
  0x57   :  { %p4244_p3 = por %p4243_p2, %p4242_p1 }
  0x59   :  { %p4245_p4 = pnand %p4244_p3, %p4240_p0 }
  0x5b   :  { %4248 = shalt.err (!%p4245_p4)
}
  0x5c   :  { %177 = dma.hbm_to_vmem [thread:$0]  %s173_s27, 32, %s175_s2, [#allocation17]  }
  0x5d   :  { %s4408_s30 = smov [#allocation19]   ;;  %s4261_s11 = sshra.s32 %s204_s4, 4  ;;  %s4262_s11 = int_to_ptr.hbm [resolvable:$true] %s4261_s11 }
  0x5e   :  { %s205_s10 = sshll.u32 %s4408_s30, 4  ;;  %s4263_s16 = scalar_lea.hbm %s4262_s11, 128  ;;  %s206_s10 = int_to_ptr.vmem [resolvable:$true] %s205_s10 }
  0x5f   :  { %p4264_p5 = scmp.ne.s32.totalorder %s4262_s11, %s4263_s16  ;;  %s4265_s6 = scalar_lea.hbm %s4592_s29, 128 }
  0x60   :  { %p4266_p6 = scmp.lt.s32.totalorder %s4262_s11, %s4592_s29  ;;  %p4267_p7 = scmp.lt.s32.totalorder %s4265_s6, %s4263_s16 }
  0x62   :  { %p4268_p8 = por %p4267_p7, %p4266_p6 }
  0x64   :  { %p4269_p9 = pnand %p4268_p8, %p4264_p5 }
  0x66   :  { %4272 = shalt.err (!%p4269_p9)
}
  0x67   :  { %s5440_s7 = smov 64   ;;  %s4410_s18 = smov 4  }
  0x68   :  { %211 = dma.hbm_to_vmem [thread:$0]  %s204_s4, 2048, %s206_s10, [#allocation20], %s5440_s7, %s5440_s7, %s4410_s18  }
  0x69   :  { %s161_s22 = sshll.u32 %s4562_s20, 4  ;;  %s4411_s1 = smov [#allocation14]   ;;  %s162_s22 = int_to_ptr.hbm [resolvable:$true] %s161_s22 }
  0x6a   :  { %s163_s26 = sshll.u32 %s4411_s1, 4  ;;  %s183_s27 = sshll.u32 %s4572_s15, 4  ;;  %s164_s26 = int_to_ptr.vmem [resolvable:$true] %s163_s26  ;;  %s184_s27 = int_to_ptr.hbm [resolvable:$true] %s183_s27 }
  0x6b   :  { %s4285_s29 = sshra.s32 %s162_s22, 4  ;;  %s4289_s2 = scalar_lea.hbm %s4562_s20, 1  ;;  %s4286_s29 = int_to_ptr.hbm [resolvable:$true] %s4285_s29 }
  0x6c   :  { %s4287_s28 = scalar_lea.hbm %s4286_s29, 1  ;;  %p4290_p11 = scmp.lt.s32.totalorder %s4286_s29, %s4562_s20 }
  0x6d   :  { %p4288_p10 = scmp.ne.s32.totalorder %s4286_s29, %s4287_s28  ;;  %p4291_p12 = scmp.lt.s32.totalorder %s4289_s2, %s4287_s28 }
  0x6f   :  { %p4292_p13 = por %p4291_p12, %p4290_p11 }
  0x71   :  { %p4293_p0 = pnand %p4292_p13, %p4288_p10 }
  0x73   :  { %4296 = shalt.err (!%p4293_p0)
}
  0x74   :  { %166 = dma.hbm_to_vmem [thread:$0]  %s162_s22, 16, %s164_s26, [#allocation15]  }
  0x75   :  { %s4412_s4 = smov [#allocation18]   ;;  %s219_s17 = sshll.u32 %s4602_s3, 4  ;;  %s220_s17 = int_to_ptr.hbm [resolvable:$true] %s219_s17 }
  0x76   :  { %s185_s0 = sshll.u32 %s4412_s4, 4  ;;  %s4309_s21 = sshra.s32 %s184_s27, 4  ;;  %s186_s0 = int_to_ptr.vmem [resolvable:$true] %s185_s0  ;;  %s4310_s21 = int_to_ptr.hbm [resolvable:$true] %s4309_s21 }
  0x77   :  { %s4311_s30 = scalar_lea.hbm %s4310_s21, 2  ;;  %s4313_s10 = scalar_lea.hbm %s4572_s15, 2 }
  0x78   :  { %p4312_p1 = scmp.ne.s32.totalorder %s4310_s21, %s4311_s30  ;;  %p4314_p2 = scmp.lt.s32.totalorder %s4310_s21, %s4572_s15 }
  0x79   :  { %p4315_p3 = scmp.lt.s32.totalorder %s4313_s10, %s4311_s30 }
  0x7b   :  { %p4316_p4 = por %p4315_p3, %p4314_p2 }
  0x7d   :  { %p4317_p5 = pnand %p4316_p4, %p4312_p1 }
  0x7f   :  { %4320 = shalt.err (!%p4317_p5)
}
  0x80   :  { %188 = dma.hbm_to_vmem [thread:$0]  %s184_s27, 32, %s186_s0, [#allocation17]  }
  0x81   :  { %s4413_s20 = smov [#allocation21]   ;;  %s4333_s16 = sshra.s32 %s220_s17, 4  ;;  %s4334_s16 = int_to_ptr.hbm [resolvable:$true] %s4333_s16 }
  0x82   :  { %s221_s11 = sshll.u32 %s4413_s20, 4  ;;  %s4335_s6 = scalar_lea.hbm %s4334_s16, 2  ;;  %s222_s11 = int_to_ptr.vmem [resolvable:$true] %s221_s11 }
  0x83   :  { %p4336_p6 = scmp.ne.s32.totalorder %s4334_s16, %s4335_s6  ;;  %s4337_s18 = scalar_lea.hbm %s4602_s3, 2 }
  0x84   :  { %p4338_p7 = scmp.lt.s32.totalorder %s4334_s16, %s4602_s3  ;;  %p4339_p8 = scmp.lt.s32.totalorder %s4337_s18, %s4335_s6 }
  0x86   :  { %p4340_p9 = por %p4339_p8, %p4338_p7 }
  0x88   :  { %p4341_p10 = pnand %p4340_p9, %p4336_p6 }
  0x8a   :  { %4344 = shalt.err (!%p4341_p10)
}
  0x8b   :  { %224 = dma.hbm_to_vmem [thread:$0]  %s220_s17, 32, %s222_s11, [#allocation20]  }
  0x8c   :  { %4357 = dma.done.wait [#allocation15], 16  }
  0x8d   :  { %4358 = vsyncadd [#allocation15], 4294967280 }
  0x8e   :  { %4359 = dma.done.wait [#allocation17], 64  }
  0x8f   :  { %4360 = vsyncadd [#allocation17], 4294967232 }
  0x90   :  { %4361 = dma.done.wait [#allocation20], 2080  }
  0x91   :  { %4362 = vsyncadd [#allocation20], 4294965216  ;;  %v4414_v4 = vmov 0   ;;  %v4676_v5 = vld [vmem:[%s4444_s5] sm:$0xff]  ;;  %vm5457_vm0 = vcmask 1043456   ;;  %vm5461_vm1 = vcmask 1041408  }
  0x92   :  { %4234 = vset.pattern.permute.xlu0 %v4414_v4  ;;  %4235 = vset.pattern.permute.xlu1 %v4414_v4  ;;  %v709_v6 = vld [vmem:[%s4494_s19] sm:$0x3]  ;;  %v274_v7 = vpack.c.bf16 %v4676_v5, %v4676_v5  ;;  %929 = vst [vmem:[%s4637_s23] sm:$0xff] %v4676_v5  ;;  %vm5456_vm2 = vcmask 64512   ;;  %vm5460_vm3 = vcmask 31744   ;;  %s5452_s3 = smov 10   ;;  %s5487_s15 = smov 2  }
  0x93   :  { %4236 = vset.pattern.permute.xlu2 %v4414_v4  ;;  %712 = vperm.xlu0 %4234, %v709_v6   ;;  %v272_v8 = vld [vmem:[%s4449_s9] sm:$0xf]  ;;  %s5448_s22 = smov 8   ;;  %s5450_s1 = smov 9   ;;  %vm262_vm4 = vcmask 66560   ;;  %vm264_vm5 = vcmask 665160  }
  0x94   :  { %v687_v9 = vpack.c.bf16 %v272_v8, %v272_v8  ;;  %v282_v10 = vsel %vm5457_vm0, %v274_v7, 0  ;;  %v273_v11 = vld [vmem:[%s4454_s13] sm:$0x7]  ;;  %s5485_s26 = smov 18   ;;  %s5483_s27 = smov 16   ;;  %v4421_v27 = vmov 0.0  }
  0x95   :  { %294 = vmatpush.bf16.msra.mxu0 %v282_v10  ;;  %v716_v13 = vld [vmem:[%s4499_s24] sm:$0x3]  ;;  %263 = vst.msk [vmem:[#allocation4] sm:$0x3] %vm262_vm4, %v4421_v27  ;;  %v4705_v28 = vld [vmem:[%s4444_s5 + $0x8] sm:$0xff]  ;;  %vm5459_vm6 = vcmask 590920  }
  0x96   :  { %v694_v12 = vsel %vm5461_vm1, %v687_v9, 0  ;;  %v686_v14 = vld [vmem:[%s4489_s14] sm:$0x1]  ;;  %265 = vst.msk [vmem:[#allocation4] sm:$0x3] %vm264_vm5, %v4421_v27  ;;  %v275_v29 = vpack.c.bf16 %v4705_v28, %v4705_v28  ;;  %vm5458_vm7 = vcmask 517120  }
  0x97   :  { %v730_v15 = vld [vmem:[%s4512_s12] sm:$0x7]  ;;  %268 = vst.msk [vmem:[#allocation8] sm:$0x3] %vm262_vm4, %v4421_v27  ;;  %s5463_s29 = smov 127   ;;  %s5489_s28 = smov 110  }
  0x98   :  { %3700 = vmatmul.msk.bf16.vlgmr.msra.gmra.mxu0 %vm5456_vm2, %v273_v11  ;;  %v743_v16 = vperm.slane %v730_v15, 2  ;;  %v732_v18 = vperm.slane %v730_v15, 0  ;;  %269 = vst.msk [vmem:[#allocation8] sm:$0x3] %vm264_vm5, %v4421_v27  ;;  %v285_v30 = vsel %vm5457_vm0, %v275_v29, 0  ;;  %s5469_s2 = smov 126  }
  0x99   :  { %703 = vmatpush.bf16.msrb.mxu0 %v694_v12  ;;  %930 = vst [vmem:[%s4637_s23 + $0x8] sm:$0xff] %v4705_v28  ;;  %307 = vmatpush.bf16.msra.mxu1 %v285_v30  ;;  %s5531_s4 = sld [smem:[#allocation25_spill]]  ;;  %s5446_s0 = smov 119   ;;  %vm5476_vm8 = vcmask 1040384   ;;  %vm258_vm9 = vcmask 136192   ;;  %vm260_vm10 = vcmask 275592  }
  0x9a   :  { %745 = vrot.lane.b32.xlu2 %v743_v16, %s5487_s15  ;;  %s5532_s17 = sld [smem:[#allocation26_spill]]  ;;  %s5444_s21 = smov 120   ;;  %261 = vst.msk [vmem:[#allocation2 + $0x10] sm:$0x3f] %vm260_vm10, %v4421_v27  ;;  %vm337_vm11 = vcmask 138240   ;;  %vm342_vm12 = vcmask 1045640  }
  0x9b   :  { %719 = vperm.xlu0 %4234, %v716_v13   ;;  %s5442_s30 = smov 118   ;;  %s5491_s10 = smov 111   ;;  %259 = vst.msk [vmem:[#allocation2] sm:$0x3f] %vm258_vm9, %v4421_v27  ;;  %vm584_vm13 = vcmask 277504   ;;  %vm490_vm14 = vcmask 146432  }
  0x9c   :  { %3701 = vmatmul.msk.bf16.vlgmr.msra.gmra.mxu1 %vm5456_vm2, %v273_v11  ;;  %s5466_s20 = smov 112   ;;  %s5533_s11 = sld [smem:[#allocation30_spill]]  ;;  %266 = vst.msk [vmem:[#allocation6] sm:$0x3f] %vm258_vm9, %v4421_v27  ;;  %vm526_vm15 = vcmask 261120   ;;  %vm399_vm4 = vcmask 15360  }
  0x9d   :  { %s5481_s16 = smov 34   ;;  %s5479_s6 = smov 17   ;;  %267 = vst.msk [vmem:[#allocation6 + $0x10] sm:$0x3f] %vm260_vm10, %v4421_v27  ;;  %vm437_vm5 = vcmask 130048   ;;  %vm601_vm10 = vcmask 769024  }
  0x9e   :  { %s5477_s18 = smov 32   ;;  %s5493_s7 = smov 94   ;;  %vm5462_vm2 = vcmask 900096   ;;  %vm5503_vm0 = vcmask 1042432   ;;  %vm5465_vm1 = vcmask 908288  }
  0x9f   :  { %v313_v51 = vld [vmem:[%s5531_s4] sm:$0x3f]  ;;  %s5557_s25 = sld [smem:[#allocation43_spill]] }
  0xa0   :  { %v321_v53 = vld [vmem:[%s5532_s17] sm:$0x3f] }
  0xa2   :  { %756 = vrot.lane.b32.xlu2 %v732_v18, %s5448_s22  ;;  %v346_v62 = vld [vmem:[%s5533_s11] sm:$0x77]  ;;  %s5535_s22 = sld [smem:[#allocation28_spill]] }
  0xa3   :  { %772 = vrot.lane.b32.xlu0 %v743_v16, %s5452_s3  ;;  %v387_v63 = vperm.slane %v346_v62, 2  ;;  %v388_v3 = vperm.slane %v346_v62, 6  ;;  %v351_v11 = vperm.slane %v346_v62, 4  ;;  %s5537_s3 = sld [smem:[#allocation29_spill]] }
  0xa5   :  { %v391_v0 = vperm.slane %v387_v63, 2  ;;  %v392_v4 = vperm.slane %v388_v3, 2 }
  0xa8   :  { %3704 = vmatmul.msk.bf16.vlgmr.msrb.gmra.mxu0 %vm5460_vm3, %v686_v14  ;;  %vm5475_vm3 = vcmask 1031168  }
  0xf4   :  { %v746_v32 = vpop.permute.xlu2 %745 }
  0xfc   :  { %v757_v41 = vpop.permute.xlu2 %756 }
 0x105   :  { %v713_v19 = vpop.permute.xlu0 %712 }
 0x10d   :  { %v720_v23 = vpop.permute.xlu0 %719 }
 0x115   :  { %v4694_v17 = vpop.f32.mrf.mxu0  ;;  %v773_v43 = vpop.permute.xlu0 %772 }
 0x119   :  { %v309_v54 = vpop.f32.mrf.mxu1 }
 0x11d   :  { %v298_v20 = vpop.f32.mrf.mxu0 }
 0x121   :  { %v311_v56 = vpop.f32.mrf.mxu1 }
 0x125   :  { %v705_v21 = vpop.f32.mrf.mxu0 }
 0x126   :  { %v715_v22 = vmul.f32 %v713_v19, %v705_v21 }
 0x128   :  { %v722_v24 = vadd.f32 %v720_v23, %v715_v22 }
 0x12a   :  { %v723_v25 = vmax.f32 %v722_v24, 0.0 }
 0x12c   :  { %725 = vrot.lane.b32.xlu1 %v723_v25, %s5450_s1  ;;  %s5536_s1 = sld [smem:[#allocation35_spill]] }
 0x12d   :  { %v707_v26 = vpop.f32.mrf.mxu0 }
 0x134   :  { %798 = vrot.lane.b32.xlu1 %v743_v16, %s5485_s26  ;;  %v355_v16 = vperm.slane %v351_v11, 0 }
 0x13c   :  { %782 = vrot.lane.b32.xlu1 %v732_v18, %s5483_s27 }
 0x19e   :  { %v726_v31 = vpop.permute.xlu1 %725 }
 0x19f   :  { %729 = vst.msk [vmem:[#allocation4] sm:$0x3] %vm5459_vm6, %v726_v31  ;;  %vm5498_vm6 = vcmask 785408  }
 0x1a6   :  { %v731_v33 = vld [vmem:[#allocation4] sm:$0x3]  ;;  %v799_v34 = vpop.permute.xlu1 %798 }
 0x1a7   :  { %v733_v35 = vmul.f32 %v732_v18, %v731_v33  ;;  %v797_v36 = vld [vmem:[#allocation4] sm:$0x3] }
 0x1a8   :  { %v736_v37 = vld [vmem:[#allocation4] sm:$0x3]  ;;  %v801_v39 = vmul.f32 %v799_v34, %v797_v36 }
 0x1a9   :  { %v742_v38 = vld [vmem:[#allocation4] sm:$0x3]  ;;  %738 = vrot.lane.b32.xlu0 %v736_v37, %s5463_s29  ;;  %735 = vst.msk [vmem:[#allocation5] sm:$0x3] %vm5458_vm7, %v733_v35 }
 0x1aa   :  { %v748_v40 = vmul.f32 %v746_v32, %v742_v38  ;;  %803 = vrot.lane.b32.xlu2 %v801_v39, %s5489_s28  ;;  %v754_v42 = vld [vmem:[#allocation4] sm:$0x3] }
 0x1ab   :  { %v771_v44 = vld [vmem:[#allocation4] sm:$0x3]  ;;  %v759_v46 = vmul.f32 %v757_v41, %v754_v42 }
 0x1ac   :  { %750 = vrot.lane.b32.xlu1 %v748_v40, %s5469_s2  ;;  %v765_v45 = vld [vmem:[#allocation4] sm:$0x3]  ;;  %v775_v47 = vmul.f32 %v773_v43, %v771_v44 }
 0x1ad   :  { %v781_v49 = vld [vmem:[#allocation4] sm:$0x3] }
 0x1ae   :  { %v783_v48 = vpop.permute.xlu1 %782  ;;  %v791_v50 = vld [vmem:[#allocation4] sm:$0x3] }
 0x1af   :  { %v785_v52 = vmul.f32 %v783_v48, %v781_v49 }
 0x1b1   :  { %767 = vrot.lane.b32.xlu0 %v765_v45, %s5446_s0  ;;  %s5472_s0 = smov 95  }
 0x1b2   :  { %761 = vrot.lane.b32.xlu2 %v759_v46, %s5444_s21  ;;  %s5534_s21 = sld [smem:[#allocation31_spill]] }
 0x1b4   :  { %777 = vrot.lane.b32.xlu1 %v775_v47, %s5442_s30  ;;  %s5454_s30 = smov 96  }
 0x1b8   :  { %v807_v3 = vld [vmem:[%s5534_s21] sm:$0x1] }
 0x1b9   :  { %793 = vrot.lane.b32.xlu0 %v791_v50, %s5491_s10 }
 0x1ba   :  { %787 = vrot.lane.b32.xlu2 %v785_v52, %s5466_s20 }
 0x1bc   :  { %316 = vperm.xlu1 %4235, %v313_v51  }
 0x1c2   :  { %324 = vperm.xlu2 %4236, %v321_v53  }
 0x1ca   :  { %580 = vrot.lane.b32.xlu2 %v391_v0, %s5481_s16 }
 0x1d2   :  { %488 = vrot.lane.b32.xlu2 %v392_v4, %s5485_s26 }
 0x1da   :  { %395 = vrot.lane.b32.xlu2 %v391_v0, %s5487_s15 }
 0x1e2   :  { %435 = vrot.lane.b32.xlu2 %v355_v16, %s5483_s27 }
 0x204   :  { %v804_v55 = vpop.permute.xlu2 %803 }
 0x205   :  { %806 = vst.msk [vmem:[#allocation5 + $0x10] sm:$0x3] %vm5458_vm7, %v804_v55 }
 0x20c   :  { %v762_v57 = vpop.permute.xlu2 %761  ;;  %v810_v58 = vld [vmem:[#allocation5 + $0x10] sm:$0x3] }
 0x20d   :  { %764 = vst.msk [vmem:[#allocation5 + $0x6] sm:$0x3] %vm5458_vm7, %v762_v57  ;;  %v812_v59 = vpack.c.bf16 %v810_v58, %v810_v58 }
 0x20f   :  { %v818_v60 = vsel %vm5476_vm8, %v812_v59, 0 }
 0x210   :  { %826 = vmatpush.bf16.msrb.mxu1 %v818_v60 }
 0x214   :  { %v788_v61 = vpop.permute.xlu2 %787 }
 0x215   :  { %790 = vst.msk [vmem:[#allocation5 + $0xc] sm:$0x3] %vm5458_vm7, %v788_v61 }
 0x21b   :  { %v739_v1 = vpop.permute.xlu0 %738 }
 0x21c   :  { %741 = vst.msk [vmem:[#allocation5 + $0x2] sm:$0x3] %vm5458_vm7, %v739_v1  ;;  %v325_v10 = vpop.permute.xlu2 %324 }
 0x21e   :  { %v751_v2 = vpop.permute.xlu1 %750 }
 0x21f   :  { %753 = vst.msk [vmem:[#allocation5 + $0x4] sm:$0x3] %vm5458_vm7, %v751_v2 }
 0x223   :  { %v768_v6 = vpop.permute.xlu0 %767 }
 0x224   :  { %770 = vst.msk [vmem:[#allocation5 + $0x8] sm:$0x3] %vm5458_vm7, %v768_v6  ;;  %v581_v26 = vpop.permute.xlu2 %580 }
 0x226   :  { %v778_v7 = vpop.permute.xlu1 %777  ;;  %v808_v20 = vld [vmem:[#allocation5] sm:$0xff] }
 0x227   :  { %780 = vst.msk [vmem:[#allocation5 + $0xa] sm:$0x3] %vm5458_vm7, %v778_v7 }
 0x22b   :  { %v794_v8 = vpop.permute.xlu0 %793 }
 0x22c   :  { %796 = vst.msk [vmem:[#allocation5 + $0xe] sm:$0x3] %vm5458_vm7, %v794_v8  ;;  %v489_v40 = vpop.permute.xlu2 %488  ;;  %vm5502_vm7 = vcmask 777216  }
 0x22e   :  { %v317_v9 = vpop.permute.xlu1 %316 }
 0x22f   :  { %v319_v12 = vmul.f32 %v317_v9, %v4694_v17  ;;  %v320_v13 = vmul.f32 %v317_v9, %v309_v54  ;;  %v350_v17 = vperm.slane %v346_v62, 0 }
 0x231   :  { %v327_v14 = vadd.f32 %v325_v10, %v319_v12  ;;  %v328_v15 = vadd.f32 %v325_v10, %v320_v13  ;;  %v354_v23 = vperm.slane %v350_v17, 0 }
 0x233   :  { %v330_v18 = vmax.f32 %v328_v15, 0.0  ;;  %v329_v19 = vmax.f32 %v327_v14, 0.0  ;;  %v809_v21 = vld [vmem:[#allocation5 + $0x8] sm:$0xff] }
 0x234   :  { %v811_v22 = vpack.c.bf16 %v809_v21, %v808_v20  ;;  %v396_v61 = vpop.permute.xlu2 %395 }
 0x235   :  { %335 = vrot.lane.b32.xlu1 %v330_v18, %s5479_s6  ;;  %333 = vrot.lane.b32.xlu0 %v329_v19, %s5479_s6 }
 0x236   :  { %827 = vmatpush.bf16.msrb.mxu1 %v811_v22 }
 0x239   :  { %3705 = vmatmul.msk.bf16.vlgmr.msrb.gmra.mxu1 %vm490_vm14, %v807_v3 }
 0x23c   :  { %v436_v11 = vpop.permute.xlu2 %435 }
 0x23d   :  { %486 = vrot.lane.b32.xlu1 %v391_v0, %s5485_s26  ;;  %582 = vrot.lane.b32.xlu0 %v392_v4, %s5481_s16 }
 0x245   :  { %524 = vrot.lane.b32.xlu1 %v355_v16, %s5477_s18  ;;  %522 = vrot.lane.b32.xlu0 %v354_v23, %s5477_s18 }
 0x24d   :  { %433 = vrot.lane.b32.xlu1 %v354_v23, %s5483_s27  ;;  %397 = vrot.lane.b32.xlu0 %v392_v4, %s5487_s15 }
 0x2a7   :  { %v336_v24 = vpop.permute.xlu1 %335  ;;  %v334_v25 = vpop.permute.xlu0 %333 }
 0x2a8   :  { %345 = vst.msk [vmem:[#allocation2 + $0x10] sm:$0x3f] %vm258_vm9, %v336_v24  ;;  %v338_v29 = vsel %vm337_vm11, %v334_v25, %v336_v24 }
 0x2a9   :  { %343 = vst.msk [vmem:[#allocation2] sm:$0x3f] %vm342_vm12, %v334_v25 }
 0x2aa   :  { %344 = vst [vmem:[#allocation2 + $0x8] sm:$0x3f] %v338_v29 }
 0x2af   :  { %v487_v30 = vpop.permute.xlu1 %486  ;;  %v583_v31 = vpop.permute.xlu0 %582  ;;  %v579_v32 = vld [vmem:[#allocation2 + $0x10] sm:$0x3f] }
 0x2b0   :  { %v347_v33 = vld [vmem:[#allocation2] sm:$0x3f]  ;;  %v585_v27 = vsel %vm584_vm13, %v581_v26, %v583_v31  ;;  %v591_v34 = vmul.f32 %v583_v31, %v579_v32  ;;  %v485_v43 = vld [vmem:[#allocation2 + $0x10] sm:$0x3f]  ;;  %v491_v44 = vsel %vm490_vm14, %v487_v30, %v489_v40 }
 0x2b1   :  { %v577_v35 = vld [vmem:[#allocation2] sm:$0x3f]  ;;  %v348_v36 = vld [vmem:[#allocation2 + $0x8] sm:$0x3f]  ;;  %v356_v37 = vmul.f32 %v354_v23, %v347_v33  ;;  %v497_v46 = vmul.f32 %v489_v40, %v485_v43  ;;  %v521_v56 = vld [vmem:[#allocation2 + $0x10] sm:$0x3f] }
 0x2b2   :  { %v589_v38 = vmul.f32 %v581_v26, %v577_v35  ;;  %v578_v39 = vld [vmem:[#allocation2 + $0x8] sm:$0x3f]  ;;  %v357_v41 = vmul.f32 %v355_v16, %v348_v36  ;;  %599 = vrot.lane.b32.xlu1 %v591_v34, %s5493_s7  ;;  %v557_v60 = vld [vmem:[#allocation2 + $0x10] sm:$0x3f]  ;;  %v483_v63 = vld [vmem:[#allocation2] sm:$0x3f] }
 0x2b3   :  { %v590_v42 = vmul.f32 %v585_v27, %v578_v39  ;;  %358 = vst [vmem:[#allocation3 + $0x30] sm:$0x3f] %v356_v37  ;;  %v484_v45 = vld [vmem:[#allocation2 + $0x8] sm:$0x3f]  ;;  %v503_v51 = vrot.slane %v497_v46, 2  ;;  %v563_v1 = vrot.slane %v557_v60, 6  ;;  %v495_v4 = vmul.f32 %v487_v30, %v483_v63 }
 0x2b4   :  { %595 = vrot.lane.b32.xlu2 %v589_v38, %s5493_s7  ;;  %359 = vst [vmem:[#allocation3] sm:$0x3f] %v357_v41  ;;  %v496_v47 = vmul.f32 %v491_v44, %v484_v45  ;;  %v520_v52 = vld [vmem:[#allocation2 + $0x8] sm:$0x3f]  ;;  %v519_v0 = vld [vmem:[#allocation2] sm:$0x3f] }
 0x2b5   :  { %597 = vrot.lane.b32.xlu0 %v590_v42, %s5493_s7  ;;  %v556_v57 = vld [vmem:[#allocation2 + $0x8] sm:$0x3f]  ;;  %v555_v8 = vld [vmem:[#allocation2] sm:$0x3f]  ;;  %v501_v10 = vrot.slane %v495_v4, 2 }
 0x2b6   :  { %v502_v54 = vrot.slane %v496_v47, 2  ;;  %v562_v59 = vrot.slane %v556_v57, 6  ;;  %v386_v12 = vld [vmem:[#allocation2 + $0x10] sm:$0x3f]  ;;  %v561_v14 = vrot.slane %v555_v8, 6 }
 0x2b7   :  { %v525_v48 = vpop.permute.xlu1 %524  ;;  %v523_v49 = vpop.permute.xlu0 %522  ;;  %v385_v18 = vld [vmem:[#allocation2 + $0x8] sm:$0x3f]  ;;  %v430_v23 = vld [vmem:[#allocation2 + $0x10] sm:$0x3f]  ;;  %v428_v30 = vld [vmem:[#allocation2] sm:$0x3f] }
 0x2b8   :  { %v527_v50 = vsel %vm526_vm15, %v523_v49, %v525_v48  ;;  %v533_v58 = vmul.f32 %v525_v48, %v521_v56  ;;  %v531_v2 = vmul.f32 %v523_v49, %v519_v0  ;;  %v429_v20 = vld [vmem:[#allocation2 + $0x8] sm:$0x3f]  ;;  %v444_v25 = vmul.f32 %v436_v11, %v430_v23  ;;  %v384_v31 = vld [vmem:[#allocation2] sm:$0x3f]  ;;  %v466_v33 = vld [vmem:[#allocation2 + $0x10] sm:$0x3f] }
 0x2b9   :  { %v532_v53 = vmul.f32 %v527_v50, %v520_v52  ;;  %v465_v26 = vld [vmem:[#allocation2 + $0x8] sm:$0x3f]  ;;  %v404_v27 = vmul.f32 %v396_v61, %v384_v31  ;;  %v464_v36 = vld [vmem:[#allocation2] sm:$0x3f]  ;;  %v362_v37 = vld [vmem:[#allocation2 + $0x10] sm:$0x3f] }
 0x2ba   :  { %508 = vrot.lane.b32.xlu1 %v503_v51, %s5489_s28  ;;  %v539_v62 = vrot.slane %v533_v58, 4  ;;  %v537_v7 = vrot.slane %v531_v2, 4  ;;  %v450_v29 = vrot.slane %v444_v25, 6  ;;  %v361_v38 = vld [vmem:[#allocation2 + $0x8] sm:$0x3f]  ;;  %v368_v39 = vrot.slane %v362_v37, 2 }
 0x2bb   :  { %v538_v55 = vrot.slane %v532_v53, 4  ;;  %v410_v35 = vrot.slane %v404_v27, 4  ;;  %v360_v40 = vld [vmem:[#allocation2] sm:$0x3f]  ;;  %v367_v41 = vrot.slane %v361_v38, 2 }
 0x2bc   :  { %v366_v42 = vrot.slane %v360_v40, 2  ;;  %v841_v43 = vld [vmem:[#allocation11] sm:$0x1]  ;;  %v833_v44 = vld [vmem:[#allocation10] sm:$0x1] }
 0x2bd   :  { %506 = vrot.lane.b32.xlu0 %v502_v54, %s5489_s28  ;;  %542 = vrot.lane.b32.xlu2 %v538_v55, %s5454_s30  ;;  %v668_v45 = vld [vmem:[%s5535_s22] sm:$0x7] }
 0x2be   :  { %v996_v46 = vld [vmem:[%s5536_s1] sm:$0x3f] }
 0x2bf   :  { %v398_v6 = vpop.permute.xlu0 %397  ;;  %v434_v9 = vpop.permute.xlu1 %433  ;;  %v676_v47 = vld [vmem:[%s5537_s3] sm:$0x7]  ;;  %s5581_s3 = smov 118  }
 0x2c0   :  { %v400_v13 = vsel %vm399_vm4, %v396_v61, %v398_v6  ;;  %v438_v15 = vsel %vm437_vm5, %v434_v9, %v436_v11  ;;  %v406_v16 = vmul.f32 %v398_v6, %v386_v12  ;;  %v442_v32 = vmul.f32 %v434_v9, %v428_v30 }
 0x2c1   :  { %v405_v19 = vmul.f32 %v400_v13, %v385_v18  ;;  %v443_v21 = vmul.f32 %v438_v15, %v429_v20 }
 0x2c2   :  { %566 = vrot.lane.b32.xlu1 %v562_v59, %s5472_s0  ;;  %v412_v22 = vrot.slane %v406_v16, 4  ;;  %v448_v34 = vrot.slane %v442_v32, 6 }
 0x2c3   :  { %v411_v17 = vrot.slane %v405_v19, 4  ;;  %v449_v24 = vrot.slane %v443_v21, 6 }
 0x2c5   :  { %544 = vrot.lane.b32.xlu0 %v539_v62, %s5454_s30  ;;  %568 = vrot.lane.b32.xlu2 %v563_v1, %s5472_s0 }
 0x2ca   :  { %540 = vrot.lane.b32.xlu1 %v537_v7, %s5454_s30  ;;  %s5538_s30 = sld [smem:[#allocation36_spill]] }
 0x2cd   :  { %504 = vrot.lane.b32.xlu0 %v501_v10, %s5489_s28  ;;  %564 = vrot.lane.b32.xlu2 %v561_v14, %s5472_s0  ;;  %s5542_s0 = sld [smem:[#allocation34_spill]] }
 0x2d0   :  { %v1004_v48 = vld [vmem:[%s5538_s30] sm:$0x3f]  ;;  %s5580_s30 = smov 120  }
 0x2d2   :  { %417 = vrot.lane.b32.xlu1 %v412_v22, %s5469_s2  ;;  %v4803_v22 = vpop.f32.mrf.mxu1 }
 0x2d5   :  { %415 = vrot.lane.b32.xlu0 %v411_v17, %s5469_s2  ;;  %453 = vrot.lane.b32.xlu2 %v449_v24, %s5466_s20 }
 0x2da   :  { %472 = vrot.lane.b32.xlu1 %v465_v26, %s5491_s10  ;;  %v831_v32 = vpop.f32.mrf.mxu1 }
 0x2dd   :  { %455 = vrot.lane.b32.xlu0 %v450_v29, %s5466_s20  ;;  %474 = vrot.lane.b32.xlu2 %v466_v33, %s5491_s10 }
 0x2e2   :  { %451 = vrot.lane.b32.xlu1 %v448_v34, %s5466_s20  ;;  %s5540_s20 = sld [smem:[#allocation27_spill]] }
 0x2e5   :  { %413 = vrot.lane.b32.xlu0 %v410_v35, %s5469_s2  ;;  %470 = vrot.lane.b32.xlu2 %v464_v36, %s5491_s10  ;;  %s5541_s2 = sld [smem:[#allocation40_spill]] }
 0x2ea   :  { %373 = vrot.lane.b32.xlu1 %v368_v39, %s5463_s29 }
 0x2eb   :  { %v1027_v32 = vld [vmem:[%s5541_s2] sm:$0x77]  ;;  %s5574_s2 = smov 10  }
 0x2ed   :  { %371 = vrot.lane.b32.xlu0 %v367_v41, %s5463_s29  ;;  %369 = vrot.lane.b32.xlu2 %v366_v42, %s5463_s29  ;;  %s5539_s29 = sld [smem:[#allocation32_spill]] }
 0x2f2   :  { %844 = vperm.xlu1 %4235, %v841_v43  }
 0x2f5   :  { %836 = vperm.xlu0 %4234, %v833_v44   ;;  %671 = vperm.xlu2 %4236, %v668_v45  }
 0x2fa   :  { %999 = vperm.xlu1 %4235, %v996_v46  }
 0x2fd   :  { %679 = vperm.xlu0 %4234, %v676_v47   ;;  %1007 = vperm.xlu2 %4236, %v1004_v48   ;;  %v3732_v47 = vld [vmem:[%s5539_s29 + $0x30] sm:$0xf]  ;;  %v4084_v48 = vld [vmem:[%s5539_s29 + $0x34] sm:$0xf0] }
 0x30e   :  { %v596_v49 = vpop.permute.xlu2 %595 }
 0x317   :  { %v543_v50 = vpop.permute.xlu2 %542 }
 0x31f   :  { %v569_v51 = vpop.permute.xlu2 %568 }
 0x324   :  { %v600_v52 = vpop.permute.xlu1 %599 }
 0x327   :  { %v598_v53 = vpop.permute.xlu0 %597  ;;  %v565_v57 = vpop.permute.xlu2 %564 }
 0x328   :  { %v602_v54 = vsel %vm601_vm10, %v596_v49, %v598_v53  ;;  %v603_v55 = vsel %vm601_vm10, %v598_v53, %v600_v52 }
 0x329   :  { %606 = vst [vmem:[#allocation3 + $0x60] sm:$0x3f] %v602_v54  ;;  %v3733_v54 = vor.u32 %v4084_v48, %v3732_v47 }
 0x32a   :  { %607 = vst [vmem:[#allocation3 + $0x28] sm:$0x3f] %v603_v55 }
 0x32c   :  { %v509_v56 = vpop.permute.xlu1 %508 }
 0x32f   :  { %v507_v58 = vpop.permute.xlu0 %506  ;;  %v454_v8 = vpop.permute.xlu2 %453 }
 0x330   :  { %v512_v59 = vsel %vm5462_vm2, %v507_v58, %v509_v56  ;;  %v621_v60 = vld [vmem:[#allocation3 + $0x60] sm:$0x3f] }
 0x331   :  { %516 = vst [vmem:[#allocation3 + $0x48] sm:$0xc0] %v512_v59  ;;  %v629_v61 = vpack.c.bf16 %v621_v60, %v621_v60  ;;  %v622_v62 = vld [vmem:[#allocation3 + $0x28] sm:$0x3f]  ;;  %v4082_v60 = vld [vmem:[%s5539_s29 + $0x24] sm:$0xf0] }
 0x332   :  { %518 = vst [vmem:[#allocation3 + $0x20] sm:$0xf] %v512_v59  ;;  %v630_v63 = vpack.c.bf16 %v622_v62, %v622_v62  ;;  %v3724_v59 = vld [vmem:[%s5539_s29 + $0x20] sm:$0xf]  ;;  %v4081_v62 = vld [vmem:[%s5539_s29 + $0x24] sm:$0xf] }
 0x333   :  { %v637_v0 = vsel %vm5503_vm0, %v629_v61, 0 }
 0x334   :  { %646 = vmatpush.bf16.msra.mxu2 %v637_v0  ;;  %v640_v1 = vsel %vm5503_vm0, %v630_v63, 0  ;;  %v567_v2 = vpop.permute.xlu1 %566  ;;  %v3726_v63 = vld [vmem:[%s5539_s29 + $0x28] sm:$0xf0]  ;;  %v608_v0 = vld [vmem:[%s5540_s20] sm:$0x3]  ;;  %s5576_s20 = smov 8  }
 0x335   :  { %659 = vmatpush.bf16.msra.mxu3 %v640_v1  ;;  %v571_v3 = vsel %vm5502_vm7, %v565_v57, %v567_v2  ;;  %v572_v4 = vsel %vm5502_vm7, %v567_v2, %v569_v51  ;;  %v3734_v51 = vld [vmem:[%s5539_s29 + $0x38] sm:$0xf0]  ;;  %v3725_v2 = vor.u32 %v4082_v60, %v3724_v59 }
 0x336   :  { %575 = vst [vmem:[#allocation3 + $0x10] sm:$0xfc] %v571_v3  ;;  %v3729_v3 = vor.u32 %v4081_v62, %v3726_v63 }
 0x337   :  { %v545_v6 = vpop.permute.xlu0 %544  ;;  %576 = vst [vmem:[#allocation3 + $0x38] sm:$0xfc] %v572_v4  ;;  %v475_v16 = vpop.permute.xlu2 %474  ;;  %v3716_v4 = vld [vmem:[%s5539_s29 + $0x10] sm:$0xf] }
 0x338   :  { %v548_v7 = vsel %vm5498_vm6, %v543_v50, %v545_v6  ;;  %v4080_v6 = vld [vmem:[%s5539_s29 + $0x14] sm:$0xf0] }
 0x339   :  { %552 = vst [vmem:[#allocation3 + $0x20] sm:$0xf0] %v548_v7 }
 0x33a   :  { %554 = vst [vmem:[#allocation3 + $0x38] sm:$0x3] %v548_v7  ;;  %v4079_v7 = vld [vmem:[%s5539_s29 + $0x14] sm:$0xf] }
 0x33c   :  { %v541_v9 = vpop.permute.xlu1 %540 }
 0x33d   :  { %v547_v10 = vsel %vm5498_vm6, %v541_v9, %v543_v50  ;;  %v4083_v50 = vld [vmem:[%s5539_s29 + $0x34] sm:$0xf] }
 0x33e   :  { %551 = vst [vmem:[#allocation3 + $0x40] sm:$0xf0] %v547_v10 }
 0x33f   :  { %v505_v11 = vpop.permute.xlu0 %504  ;;  %553 = vst [vmem:[#allocation3 + $0x10] sm:$0x3] %v547_v10  ;;  %v471_v24 = vpop.permute.xlu2 %470 }
 0x340   :  { %v511_v12 = vsel %vm5462_vm2, %v505_v11, %v507_v58  ;;  %v618_v13 = vld [vmem:[#allocation3 + $0x20] sm:$0xff]  ;;  %vm5501_vm2 = vcmask 916480   ;;  %v3737_v58 = vor.u32 %v4083_v50, %v3734_v51  ;;  %v3717_v11 = vor.u32 %v4080_v6, %v3716_v4 }
 0x341   :  { %515 = vst [vmem:[#allocation3 + $0x8] sm:$0xc0] %v511_v12  ;;  %v620_v14 = vld [vmem:[#allocation3 + $0x38] sm:$0xff]  ;;  %v1031_v4 = vperm.slane %v1027_v32, 0 }
 0x342   :  { %517 = vst [vmem:[#allocation3 + $0x40] sm:$0xf] %v511_v12  ;;  %v628_v15 = vpack.c.bf16 %v620_v14, %v618_v13  ;;  %v3708_v13 = vld [vmem:[%s5539_s29] sm:$0xf]  ;;  %v4078_v14 = vld [vmem:[%s5539_s29 + $0x4] sm:$0xf0] }
 0x344   :  { %660 = vmatpush.bf16.msra.mxu3 %v628_v15  ;;  %v418_v18 = vpop.permute.xlu1 %417 }
 0x346   :  { %v619_v20 = vld [vmem:[#allocation3 + $0x10] sm:$0xff] }
 0x347   :  { %v416_v19 = vpop.permute.xlu0 %415  ;;  %v370_v40 = vpop.permute.xlu2 %369 }
 0x348   :  { %v421_v21 = vsel %vm5475_vm3, %v416_v19, %v418_v18  ;;  %v3710_v18 = vld [vmem:[%s5539_s29 + $0x8] sm:$0xf0] }
 0x349   :  { %425 = vst [vmem:[#allocation3 + $0x18] sm:$0xf0] %v421_v21  ;;  %v617_v17 = vld [vmem:[#allocation3 + $0x40] sm:$0xff] }
 0x34a   :  { %427 = vst [vmem:[#allocation3 + $0x68] sm:$0x3] %v421_v21  ;;  %v627_v23 = vpack.c.bf16 %v619_v20, %v617_v17  ;;  %v3709_v20 = vor.u32 %v4078_v14, %v3708_v13 }
 0x34c   :  { %647 = vmatpush.bf16.msra.mxu2 %v627_v23  ;;  %v473_v25 = vpop.permute.xlu1 %472 }
 0x34d   :  { %v477_v26 = vsel %vm5465_vm1, %v471_v24, %v473_v25  ;;  %v478_v29 = vsel %vm5465_vm1, %v473_v25, %v475_v16  ;;  %vm5468_vm1 = vcmask 1039360   ;;  %v4077_v16 = vld [vmem:[%s5539_s29 + $0x4] sm:$0xf] }
 0x34e   :  { %481 = vst [vmem:[#allocation3 + $0x8] sm:$0x3f] %v477_v26  ;;  %v3713_v21 = vor.u32 %v4077_v16, %v3710_v18 }
 0x34f   :  { %v456_v30 = vpop.permute.xlu0 %455  ;;  %482 = vst [vmem:[#allocation3 + $0x48] sm:$0x3f] %v478_v29  ;;  %v672_v23 = vpop.permute.xlu2 %671 }
 0x350   :  { %v459_v31 = vsel %vm5501_vm2, %v454_v8, %v456_v30 }
 0x351   :  { %463 = vst [vmem:[#allocation3 + $0x68] sm:$0xfc] %v459_v31 }
 0x354   :  { %v452_v33 = vpop.permute.xlu1 %451 }
 0x355   :  { %v458_v27 = vsel %vm5501_vm2, %v452_v33, %v454_v8  ;;  %v615_v45 = vld [vmem:[#allocation3 + $0x8] sm:$0xff]  ;;  %v3718_v8 = vld [vmem:[%s5539_s29 + $0x18] sm:$0xf0]  ;;  %s5579_s29 = smov 119  }
 0x356   :  { %462 = vst [vmem:[#allocation3 + $0x50] sm:$0xfc] %v458_v27  ;;  %v616_v35 = vld [vmem:[#allocation3 + $0x48] sm:$0xff]  ;;  %v3721_v12 = vor.u32 %v4079_v7, %v3718_v8  ;;  %v1067_v27 = vperm.slane %v1027_v32, 2  ;;  %v1035_v8 = vperm.slane %v1031_v4, 0 }
 0x357   :  { %v414_v34 = vpop.permute.xlu0 %413  ;;  %v1008_v63 = vpop.permute.xlu2 %1007 }
 0x358   :  { %v420_v36 = vsel %vm5475_vm3, %v414_v34, %v416_v19  ;;  %v614_v37 = vld [vmem:[#allocation3 + $0x68] sm:$0xff]  ;;  %v1068_v34 = vperm.slane %v1027_v32, 6  ;;  %vm5496_vm3 = vcmask 1045504  }
 0x359   :  { %424 = vst [vmem:[#allocation3 + $0x58] sm:$0xf0] %v420_v36  ;;  %v626_v38 = vpack.c.bf16 %v616_v35, %v614_v37  ;;  %v1071_v37 = vperm.slane %v1067_v27, 2 }
 0x35a   :  { %426 = vst [vmem:[#allocation3 + $0x50] sm:$0x3] %v420_v36 }
 0x35b   :  { %661 = vmatpush.bf16.msra.mxu3 %v626_v38  ;;  %v1072_v38 = vperm.slane %v1068_v34, 2  ;;  %1161 = vrot.lane.b32.xlu1 %v1071_v37, %s5485_s26 }
 0x35c   :  { %v374_v39 = vpop.permute.xlu1 %373  ;;  %1250 = vrot.lane.b32.xlu2 %v1071_v37, %s5481_s16 }
 0x35d   :  { %1252 = vrot.lane.b32.xlu0 %v1072_v38, %s5481_s16  ;;  %s5547_s16 = smov 96  }
 0x35f   :  { %v372_v41 = vpop.permute.xlu0 %371 }
 0x360   :  { %v376_v42 = vsel %vm5468_vm1, %v370_v40, %v372_v41  ;;  %v377_v43 = vsel %vm5468_vm1, %v372_v41, %v374_v39  ;;  %vm5471_vm1 = vcmask 441344  }
 0x361   :  { %380 = vst [vmem:[#allocation3 + $0x30] sm:$0xc0] %v376_v42  ;;  %v613_v44 = vld [vmem:[#allocation3 + $0x50] sm:$0xff] }
 0x362   :  { %381 = vst [vmem:[#allocation3] sm:$0xc0] %v377_v43  ;;  %v625_v46 = vpack.c.bf16 %v615_v45, %v613_v44 }
 0x363   :  { %382 = vst [vmem:[#allocation3 + $0x58] sm:$0xf] %v376_v42 }
 0x364   :  { %383 = vst [vmem:[#allocation3 + $0x18] sm:$0xf] %v377_v43  ;;  %648 = vmatpush.bf16.msra.mxu2 %v625_v46  ;;  %v845_v9 = vpop.permute.xlu1 %844  ;;  %v936_v43 = vlaneseq  ;;  %1163 = vrot.lane.b32.xlu2 %v1072_v38, %s5485_s26  ;;  %s5549_s26 = sld [smem:[#allocation39_spill]] }
 0x365   :  { %v847_v15 = vperm.slane %v845_v9, 0 }
 0x367   :  { %v837_v55 = vpop.permute.xlu0 %836 }
 0x368   :  { %v609_v49 = vld [vmem:[#allocation3 + $0x30] sm:$0xff]  ;;  %v839_v1 = vperm.slane %v837_v55, 0 }
 0x369   :  { %v610_v52 = vld [vmem:[#allocation3] sm:$0xff] }
 0x36a   :  { %v611_v53 = vld [vmem:[#allocation3 + $0x58] sm:$0xff]  ;;  %v840_v10 = vmul.f32 %v839_v1, %v4803_v22 }
 0x36b   :  { %v623_v56 = vpack.c.bf16 %v611_v53, %v609_v49  ;;  %v612_v57 = vld [vmem:[#allocation3 + $0x18] sm:$0xff] }
 0x36c   :  { %v624_v61 = vpack.c.bf16 %v612_v57, %v610_v52  ;;  %v848_v19 = vadd.f32 %v847_v15, %v840_v10  ;;  %1075 = vrot.lane.b32.xlu2 %v1071_v37, %s5487_s15  ;;  %v956_v57 = vld [vmem:[%s5542_s0] sm:$0x7]  ;;  %s5573_s0 = smov 16  }
 0x36d   :  { %649 = vmatpush.bf16.msra.mxu2 %v623_v56 }
 0x36e   :  { %662 = vmatpush.bf16.msra.mxu3 %v624_v61  ;;  %v849_v17 = vmax.f32 %v848_v19, 0.0 }
 0x36f   :  { %v680_v29 = vpop.permute.xlu0 %679 }
 0x370   :  { %3702 = vmatmul.msk.bf16.vlgmr.msra.gmra.mxu2 %vm5471_vm1, %v608_v0  ;;  %v850_v22 = vpack.c.bf16 %v849_v17, %v849_v17 }
 0x371   :  { %907 = vmatpush.bf16.msrb.mxu2 %v3733_v54  ;;  %3703 = vmatmul.msk.bf16.vlgmr.msra.gmra.mxu3 %vm5471_vm1, %v608_v0  ;;  %vm5474_vm1 = vcmask 523264  }
 0x372   :  { %920 = vmatpush.bf16.msrb.mxu3 %v3737_v58  ;;  %v1032_v58 = vperm.slane %v1027_v32, 4 }
 0x375   :  { %908 = vmatpush.bf16.msrb.mxu2 %v3725_v2 }
 0x376   :  { %921 = vmatpush.bf16.msrb.mxu3 %v3729_v3 }
 0x379   :  { %909 = vmatpush.bf16.msrb.mxu2 %v3717_v11 }
 0x37a   :  { %922 = vmatpush.bf16.msrb.mxu3 %v3721_v12 }
 0x37d   :  { %910 = vmatpush.bf16.msrb.mxu2 %v3709_v20 }
 0x37e   :  { %923 = vmatpush.bf16.msrb.mxu3 %v3713_v21 }
 0x380   :  { %3738 = vmatmul.msk.bf16.vlgmr.msrb.gmra.mxu2 %vm5474_vm1, %v850_v22 }
 0x381   :  { %3739 = vmatmul.msk.bf16.vlgmr.msrb.gmra.mxu3 %vm5474_vm1, %v850_v22  ;;  %vm4841_vm1 = vcmp.lt.s32.totalorder %v936_v43, 256 }
 0x3b6   :  { %v1251_v11 = vpop.permute.xlu2 %1250 }
 0x3be   :  { %v4877_v15 = vpop.permute.xlu2 %1163 }
 0x3cf   :  { %v4872_v10 = vpop.permute.xlu0 %1252 }
 0x3d0   :  { %v1254_v19 = vsel %vm584_vm13, %v1251_v11, %v4872_v10 }
 0x3f3   :  { %v651_v24 = vpop.f32.mrf.mxu2 }
 0x3f4   :  { %v674_v25 = vmul.f32 %v672_v23, %v651_v24  ;;  %v664_v26 = vpop.f32.mrf.mxu3 }
 0x3f5   :  { %v675_v30 = vmul.f32 %v672_v23, %v664_v26 }
 0x3f6   :  { %v682_v31 = vadd.f32 %v680_v29, %v674_v25 }
 0x3f7   :  { %v683_v33 = vadd.f32 %v680_v29, %v675_v30 }
 0x3f8   :  { %v684_v35 = vmax.f32 %v682_v31, 0.0  ;;  %v1076_v31 = vpop.permute.xlu2 %1075 }
 0x3f9   :  { %v685_v36 = vmax.f32 %v683_v33, 0.0 }
 0x3fa   :  { %v945_v39 = vrot.slane %v684_v35, 7 }
 0x3fb   :  { %v946_v40 = vrot.slane %v685_v36, 7  ;;  %v653_v41 = vpop.f32.mrf.mxu2 }
 0x3fc   :  { %949 = vst [vmem:[%s4637_s23 + $0x20] sm:$0xe] %v945_v39  ;;  %v666_v42 = vpop.f32.mrf.mxu3 }
 0x3fd   :  { %950 = vst [vmem:[%s4637_s23 + $0x28] sm:$0xe] %v946_v40 }
 0x403   :  { %v912_v44 = vpop.f32.mrf.mxu2 }
 0x404   :  { %v925_v45 = vpop.f32.mrf.mxu3 }
 0x405   :  { %v933_v46 = vrot.slane %v925_v45, 7 }
 0x407   :  { %v934_v48 = vsel %vm5476_vm8, %v912_v44, %v933_v46  ;;  %vm5495_vm8 = vcmask 97280  }
 0x408   :  { %3740 = vst.msk [vmem:[%s4637_s23 + $0x20] ss:$8 sm:$0x3] %vm4841_vm1, %v934_v48 }
 0x40b   :  { %v914_v49 = vpop.f32.mrf.mxu2 }
 0x40c   :  { %v927_v50 = vpop.f32.mrf.mxu3 }
 0x40f   :  { %v953_v51 = vld [vmem:[%s4637_s23 + $0x20] sm:$0xf]  ;;  %v954_v52 = vld [vmem:[%s4637_s23 + $0x28] sm:$0xf] }
 0x410   :  { %v4853_v53 = vpack.c.bf16 %v953_v51, %v4676_v5  ;;  %v4856_v54 = vpack.c.bf16 %v954_v52, %v4705_v28  ;;  %v1036_v5 = vperm.slane %v1032_v58, 0  ;;  %v1000_v28 = vpop.permute.xlu1 %999 }
 0x412   :  { %v965_v55 = vsel %vm5496_vm3, %v4853_v53, 0  ;;  %v968_v56 = vsel %vm5496_vm3, %v4856_v54, 0  ;;  %1113 = vrot.lane.b32.xlu2 %v1036_v5, %s5483_s27  ;;  %vm5555_vm3 = vcmask 1031168  }
 0x413   :  { %977 = vmatpush.bf16.msra.mxu0 %v965_v55  ;;  %990 = vmatpush.bf16.msra.mxu1 %v968_v56 }
 0x416   :  { %3741 = vmatmul.msk.bf16.vlgmr.msra.gmra.mxu0 %vm5495_vm8, %v956_v57  ;;  %3742 = vmatmul.msk.bf16.vlgmr.msra.gmra.mxu1 %vm5495_vm8, %v956_v57  ;;  %vm5554_vm8 = vcmask 900096  }
 0x418   :  { %v1162_v9 = vpop.permute.xlu1 %1161 }
 0x419   :  { %v1165_v46 = vsel %vm490_vm14, %v1162_v9, %v4877_v15 }
 0x46c   :  { %v1114_v51 = vpop.permute.xlu2 %1113 }
 0x493   :  { %v979_v59 = vpop.f32.mrf.mxu0  ;;  %v992_v60 = vpop.f32.mrf.mxu1 }
 0x494   :  { %v1002_v61 = vmul.f32 %v1000_v28, %v979_v59  ;;  %v1003_v62 = vmul.f32 %v1000_v28, %v992_v60 }
 0x496   :  { %v1010_v0 = vadd.f32 %v1008_v63, %v1002_v61  ;;  %v1011_v1 = vadd.f32 %v1008_v63, %v1003_v62 }
 0x498   :  { %v1012_v2 = vmax.f32 %v1010_v0, 0.0  ;;  %v1013_v3 = vmax.f32 %v1011_v1, 0.0 }
 0x49a   :  { %1018 = vrot.lane.b32.xlu1 %v1013_v3, %s5479_s6  ;;  %1016 = vrot.lane.b32.xlu0 %v1012_v2, %s5479_s6  ;;  %s5546_s6 = smov 126  }
 0x49b   :  { %v981_v6 = vpop.f32.mrf.mxu0  ;;  %v994_v7 = vpop.f32.mrf.mxu1 }
 0x4a2   :  { %1197 = vrot.lane.b32.xlu1 %v1036_v5, %s5477_s18  ;;  %1195 = vrot.lane.b32.xlu0 %v1035_v8, %s5477_s18  ;;  %s5545_s18 = smov 95  }
 0x4aa   :  { %1111 = vrot.lane.b32.xlu1 %v1035_v8, %s5483_s27  ;;  %1077 = vrot.lane.b32.xlu0 %v1072_v38, %s5487_s15  ;;  %s5548_s27 = sld [smem:[#allocation38_spill]]  ;;  %s5550_s15 = smov 112  }
 0x50c   :  { %v1019_v12 = vpop.permute.xlu1 %1018  ;;  %v1017_v13 = vpop.permute.xlu0 %1016 }
 0x50d   :  { %1026 = vst.msk [vmem:[#allocation6 + $0x10] sm:$0x3f] %vm258_vm9, %v1019_v12  ;;  %v1020_v14 = vsel %vm337_vm11, %v1017_v13, %v1019_v12 }
 0x50e   :  { %1024 = vst.msk [vmem:[#allocation6] sm:$0x3f] %vm342_vm12, %v1017_v13 }
 0x50f   :  { %1025 = vst [vmem:[#allocation6 + $0x8] sm:$0x3f] %v1020_v14 }
 0x514   :  { %v1198_v27 = vpop.permute.xlu1 %1197  ;;  %v1196_v35 = vpop.permute.xlu0 %1195  ;;  %v1249_v12 = vld [vmem:[#allocation6 + $0x10] sm:$0x3f] }
 0x515   :  { %v1028_v16 = vld [vmem:[#allocation6] sm:$0x3f]  ;;  %v1199_v40 = vsel %vm526_vm15, %v1196_v35, %v1198_v27  ;;  %v1194_v13 = vld [vmem:[#allocation6 + $0x10] sm:$0x3f] }
 0x516   :  { %v1140_v18 = vld [vmem:[#allocation6] sm:$0x3f]  ;;  %v1029_v20 = vld [vmem:[#allocation6 + $0x8] sm:$0x3f]  ;;  %v1037_v21 = vmul.f32 %v1035_v8, %v1028_v16  ;;  %v1260_v16 = vmul.f32 %v4872_v10, %v1249_v12 }
 0x517   :  { %1146 = vrot.lane.b32.xlu0 %v1140_v18, %s5491_s10  ;;  %v1248_v17 = vld [vmem:[#allocation6 + $0x8] sm:$0x3f]  ;;  %v1158_v22 = vld [vmem:[#allocation6] sm:$0x3f]  ;;  %v1038_v23 = vmul.f32 %v1036_v5, %v1029_v20  ;;  %v1205_v18 = vmul.f32 %v1198_v27, %v1194_v13 }
 0x518   :  { %v1259_v24 = vmul.f32 %v1254_v19, %v1248_v17  ;;  %v1169_v25 = vmul.f32 %v1162_v9, %v1158_v22  ;;  %1039 = vst [vmem:[#allocation7 + $0x68] sm:$0x3f] %v1037_v21  ;;  %v1247_v29 = vld [vmem:[#allocation6] sm:$0x3f]  ;;  %v1227_v33 = vld [vmem:[#allocation6 + $0x8] sm:$0x3f] }
 0x519   :  { %1040 = vst [vmem:[#allocation7 + $0x20] sm:$0x3f] %v1038_v23  ;;  %v1064_v30 = vld [vmem:[#allocation6] sm:$0x3f]  ;;  %v1258_v32 = vmul.f32 %v1251_v11, %v1247_v29  ;;  %v1233_v36 = vrot.slane %v1227_v33, 6  ;;  %v1211_v20 = vrot.slane %v1205_v18, 4 }
 0x51a   :  { %1266 = vrot.lane.b32.xlu1 %v1259_v24, %s5493_s7  ;;  %v1175_v26 = vrot.slane %v1169_v25, 2  ;;  %v1083_v34 = vmul.f32 %v1076_v31, %v1064_v30  ;;  %v1192_v37 = vld [vmem:[#allocation6] sm:$0x3f]  ;;  %v1193_v41 = vld [vmem:[#allocation6 + $0x8] sm:$0x3f] }
 0x51b   :  { %v1226_v39 = vld [vmem:[#allocation6] sm:$0x3f]  ;;  %v1203_v42 = vmul.f32 %v1196_v35, %v1192_v37  ;;  %v1204_v44 = vmul.f32 %v1199_v40, %v1193_v41  ;;  %v1159_v45 = vld [vmem:[#allocation6 + $0x8] sm:$0x3f]  ;;  %v1160_v11 = vld [vmem:[#allocation6 + $0x10] sm:$0x3f] }
 0x51c   :  { %1178 = vrot.lane.b32.xlu2 %v1175_v26, %s5489_s28  ;;  %v1089_v38 = vrot.slane %v1083_v34, 4  ;;  %v1232_v43 = vrot.slane %v1226_v39, 6  ;;  %v1112_v48 = vpop.permute.xlu1 %1111  ;;  %v1170_v50 = vmul.f32 %v1165_v46, %v1159_v45  ;;  %v1106_v55 = vld [vmem:[#allocation6] sm:$0x3f]  ;;  %v1078_v57 = vpop.permute.xlu0 %1077  ;;  %v1107_v28 = vld [vmem:[#allocation6 + $0x8] sm:$0x3f]  ;;  %v1171_v14 = vmul.f32 %v4877_v15, %v1160_v11 }
 0x51d   :  { %v1209_v49 = vrot.slane %v1203_v42, 4  ;;  %v1210_v52 = vrot.slane %v1204_v44, 4  ;;  %v1115_v56 = vsel %vm437_vm5, %v1112_v48, %v1114_v51  ;;  %v1119_v58 = vmul.f32 %v1112_v48, %v1106_v55  ;;  %v1065_v62 = vld [vmem:[#allocation6 + $0x8] sm:$0x3f]  ;;  %v1041_v2 = vld [vmem:[#allocation6] sm:$0x3f] }
 0x51e   :  { %v1176_v5 = vrot.slane %v1170_v50, 2  ;;  %v1079_v59 = vsel %vm399_vm4, %v1076_v31, %v1078_v57  ;;  %v1120_v60 = vmul.f32 %v1115_v56, %v1107_v28  ;;  %v1141_v3 = vld [vmem:[#allocation6 + $0x8] sm:$0x3f]  ;;  %v1047_v4 = vrot.slane %v1041_v2, 2  ;;  %v1334_v8 = vld [vmem:[%s5548_s27] sm:$0x7] }
 0x51f   :  { %1264 = vrot.lane.b32.xlu0 %v1258_v32, %s5493_s7  ;;  %v1125_v61 = vrot.slane %v1119_v58, 6  ;;  %v1084_v63 = vmul.f32 %v1079_v59, %v1065_v62  ;;  %v1042_v6 = vld [vmem:[#allocation6 + $0x8] sm:$0x3f]  ;;  %v1342_v9 = vld [vmem:[%s5549_s26] sm:$0x7]  ;;  %v1177_v19 = vrot.slane %v1171_v14, 2 }
 0x520   :  { %v1126_v0 = vrot.slane %v1120_v60, 6  ;;  %v1048_v7 = vrot.slane %v1042_v6, 2  ;;  %v1228_v21 = vld [vmem:[#allocation6 + $0x10] sm:$0x3f]  ;;  %v1685_v31 = vld [vmem:[#allocation16] sm:$0x3] }
 0x521   :  { %v1090_v1 = vrot.slane %v1084_v63, 4  ;;  %v1108_v17 = vld [vmem:[#allocation6 + $0x10] sm:$0x3f]  ;;  %v1234_v24 = vrot.slane %v1228_v21, 6  ;;  %v1692_v32 = vld [vmem:[#allocation18] sm:$0x3] }
 0x522   :  { %1237 = vrot.lane.b32.xlu1 %v1233_v36, %s5545_s18  ;;  %v1066_v22 = vld [vmem:[#allocation6 + $0x10] sm:$0x3f]  ;;  %v1121_v25 = vmul.f32 %v1114_v51, %v1108_v17  ;;  %s5559_s26 = sld [smem:[#allocation37_spill]]  ;;  %v4108_v14 = vld [vmem:[%s5557_s25 + $0x38] sm:$0xff]  ;;  %s5572_s27 = smov 18  }
 0x523   :  { %v1085_v23 = vmul.f32 %v1078_v57, %v1066_v22  ;;  %v1043_v26 = vld [vmem:[#allocation6 + $0x10] sm:$0x3f] }
 0x524   :  { %1092 = vrot.lane.b32.xlu2 %v1089_v38, %s5546_s6  ;;  %v1127_v10 = vrot.slane %v1121_v25, 6  ;;  %v1142_v29 = vld [vmem:[#allocation6 + $0x10] sm:$0x3f]  ;;  %v1049_v30 = vrot.slane %v1043_v26, 2  ;;  %v4106_v25 = vld [vmem:[%s5557_s25 + $0x28] sm:$0xff] }
 0x525   :  { %v1091_v15 = vrot.slane %v1085_v23, 4  ;;  %v4107_v21 = vld [vmem:[%s5557_s25 + $0x30] sm:$0xff] }
 0x527   :  { %1235 = vrot.lane.b32.xlu0 %v1232_v43, %s5545_s18 }
 0x52a   :  { %1212 = vrot.lane.b32.xlu1 %v1209_v49, %s5547_s16 }
 0x52c   :  { %1214 = vrot.lane.b32.xlu2 %v1210_v52, %s5547_s16 }
 0x52f   :  { %1180 = vrot.lane.b32.xlu0 %v1176_v5, %s5489_s28  ;;  %s5551_s28 = smov 127  }
 0x532   :  { %1128 = vrot.lane.b32.xlu1 %v1125_v61, %s5550_s15 }
 0x534   :  { %1130 = vrot.lane.b32.xlu2 %v1126_v0, %s5550_s15 }
 0x537   :  { %1094 = vrot.lane.b32.xlu0 %v1090_v1, %s5546_s6 }
 0x53a   :  { %1148 = vrot.lane.b32.xlu1 %v1141_v3, %s5491_s10  ;;  %s5552_s10 = smov 110  }
 0x53c   :  { %1050 = vrot.lane.b32.xlu2 %v1047_v4, %s5551_s28 }
 0x53f   :  { %1052 = vrot.lane.b32.xlu0 %v1048_v7, %s5551_s28 }
 0x542   :  { %1337 = vperm.xlu1 %4235, %v1334_v8  }
 0x544   :  { %1345 = vperm.xlu2 %4236, %v1342_v9  }
 0x547   :  { %1268 = vrot.lane.b32.xlu0 %v1260_v16, %s5493_s7  ;;  %s5553_s7 = smov 111  }
 0x54a   :  { %1182 = vrot.lane.b32.xlu1 %v1177_v19, %s5552_s10 }
 0x54c   :  { %1216 = vrot.lane.b32.xlu2 %v1211_v20, %s5547_s16  ;;  %v1276_v20 = vld [vmem:[%s5559_s26] sm:$0x3]  ;;  %s5566_s26 = sld [smem:[#allocation33_spill]] }
 0x54f   :  { %1239 = vrot.lane.b32.xlu0 %v1234_v24, %s5545_s18 }
 0x552   :  { %1096 = vrot.lane.b32.xlu1 %v1091_v15, %s5546_s6 }
 0x554   :  { %1132 = vrot.lane.b32.xlu2 %v1127_v10, %s5550_s15 }
 0x557   :  { %1150 = vrot.lane.b32.xlu0 %v1142_v29, %s5553_s7  ;;  %v4105_v29 = vld [vmem:[%s5557_s25 + $0x20] sm:$0xff] }
 0x55a   :  { %1054 = vrot.lane.b32.xlu1 %v1049_v30, %s5551_s28 }
 0x55c   :  { %1688 = vperm.xlu2 %4236, %v1685_v31  }
 0x55f   :  { %1695 = vperm.xlu0 %4234, %v1692_v32  }
 0x576   :  { %v1179_v33 = vpop.permute.xlu2 %1178 }
 0x57e   :  { %v1093_v27 = vpop.permute.xlu2 %1092 }
 0x586   :  { %v1215_v34 = vpop.permute.xlu2 %1214 }
 0x589   :  { %v1147_v35 = vpop.permute.xlu0 %1146 }
 0x58c   :  { %v1267_v36 = vpop.permute.xlu1 %1266 }
 0x58e   :  { %v1131_v37 = vpop.permute.xlu2 %1130 }
 0x591   :  { %v1265_v38 = vpop.permute.xlu0 %1264 }
 0x592   :  { %v1270_v39 = vsel %vm601_vm10, %v1265_v38, %v1267_v36 }
 0x593   :  { %1274 = vst [vmem:[#allocation7 + $0x58] sm:$0x3f] %v1270_v39 }
 0x594   :  { %v4915_v40 = vpop.permute.xlu1 %1237 }
 0x596   :  { %v1051_v41 = vpop.permute.xlu2 %1050 }
 0x599   :  { %v1236_v42 = vpop.permute.xlu0 %1235 }
 0x59a   :  { %v1241_v43 = vsel %vm5502_vm7, %v1236_v42, %v4915_v40  ;;  %v1289_v44 = vld [vmem:[#allocation7 + $0x58] sm:$0x3f] }
 0x59b   :  { %1245 = vst [vmem:[#allocation7 + $0x60] sm:$0xfc] %v1241_v43  ;;  %v1297_v45 = vpack.c.bf16 %v1289_v44, %v1289_v44  ;;  %v4116_v44 = vld [vmem:[%s5557_s25 + $0x78] sm:$0xff] }
 0x59c   :  { %v1213_v46 = vpop.permute.xlu1 %1212 }
 0x59d   :  { %v1218_v48 = vsel %vm5498_vm6, %v1213_v46, %v1215_v34  ;;  %v1303_v49 = vsel %vm5503_vm0, %v1297_v45, 0  ;;  %v4101_v46 = vld [vmem:[%s5557_s25] sm:$0xff] }
 0x59e   :  { %1222 = vst [vmem:[#allocation7 + $0x40] sm:$0xf0] %v1218_v48  ;;  %v4921_v50 = vpop.permute.xlu2 %1345  ;;  %1312 = vmatpush.bf16.msra.mxu2 %v1303_v49  ;;  %v4115_v49 = vld [vmem:[%s5557_s25 + $0x70] sm:$0xff] }
 0x59f   :  { %1224 = vst [vmem:[#allocation7 + $0x60] sm:$0x3] %v1218_v48  ;;  %v4092_v48 = vld [vmem:[#allocation19 + $0x38] sm:$0xff] }
 0x5a0   :  { %1482 = vmatpush.bf16.msrb.mxu0 %v4092_v48 }
 0x5a1   :  { %v1181_v51 = vpop.permute.xlu0 %1180 }
 0x5a2   :  { %v1184_v52 = vsel %vm5554_vm8, %v1179_v33, %v1181_v51  ;;  %vm5556_vm8 = vcmask 908288  }
 0x5a3   :  { %1188 = vst [vmem:[#allocation7 + $0x10] sm:$0xc0] %v1184_v52 }
 0x5a4   :  { %1190 = vst [vmem:[#allocation7 + $0x40] sm:$0xf] %v1184_v52  ;;  %v1129_v55 = vpop.permute.xlu1 %1128  ;;  %v4114_v52 = vld [vmem:[%s5557_s25 + $0x68] sm:$0xff] }
 0x5a5   :  { %v1134_v56 = vsel %vm5501_vm2, %v1129_v55, %v1131_v37  ;;  %v4090_v55 = vld [vmem:[#allocation19 + $0x28] sm:$0xff] }
 0x5a6   :  { %1138 = vst [vmem:[#allocation7 + $0x48] sm:$0xfc] %v1134_v56  ;;  %v1217_v57 = vpop.permute.xlu2 %1216  ;;  %v1287_v60 = vld [vmem:[#allocation7 + $0x60] sm:$0xff] }
 0x5a7   :  { %v1219_v58 = vsel %vm5498_vm6, %v1215_v34, %v1217_v57  ;;  %vm5558_vm6 = vcmask 1039360   ;;  %v4104_v34 = vld [vmem:[%s5557_s25 + $0x18] sm:$0xff]  ;;  %v4113_v56 = vld [vmem:[%s5557_s25 + $0x60] sm:$0xff]  ;;  %v4089_v57 = vld [vmem:[#allocation19 + $0x20] sm:$0xff] }
 0x5a8   :  { %1223 = vst [vmem:[#allocation7 + $0x28] sm:$0xf0] %v1219_v58 }
 0x5a9   :  { %1225 = vst [vmem:[#allocation7 + $0x8] sm:$0x3] %v1219_v58  ;;  %v1095_v5 = vpop.permute.xlu0 %1094  ;;  %v4112_v58 = vld [vmem:[%s5557_s25 + $0x58] sm:$0xff] }
 0x5aa   :  { %v1098_v28 = vsel %vm5555_vm3, %v1093_v27, %v1095_v5  ;;  %vm5560_vm3 = vcmask 900096  }
 0x5ab   :  { %1102 = vst [vmem:[#allocation7 + $0x38] sm:$0xf0] %v1098_v28  ;;  %v1285_v59 = vld [vmem:[#allocation7 + $0x40] sm:$0xff] }
 0x5ac   :  { %1104 = vst [vmem:[#allocation7 + $0x48] sm:$0x3] %v1098_v28  ;;  %v1149_v61 = vpop.permute.xlu1 %1148  ;;  %v1295_v62 = vpack.c.bf16 %v1287_v60, %v1285_v59  ;;  %v4111_v28 = vld [vmem:[%s5557_s25 + $0x50] sm:$0xff]  ;;  %v4087_v59 = vld [vmem:[#allocation19 + $0x10] sm:$0xff] }
 0x5ad   :  { %v1152_v63 = vsel %vm5556_vm8, %v1147_v35, %v1149_v61  ;;  %vm5562_vm8 = vcmask 1031168   ;;  %v4109_v60 = vld [vmem:[%s5557_s25 + $0x40] sm:$0xff] }
 0x5ae   :  { %1156 = vst [vmem:[#allocation7 + $0x10] sm:$0x3f] %v1152_v63  ;;  %v1133_v0 = vpop.permute.xlu2 %1132  ;;  %1313 = vmatpush.bf16.msra.mxu2 %v1295_v62  ;;  %v4100_v62 = vld [vmem:[#allocation19 + $0x78] sm:$0xff]  ;;  %v4085_v63 = vld [vmem:[#allocation19] sm:$0xff] }
 0x5af   :  { %v1135_v1 = vsel %vm5501_vm2, %v1131_v37, %v1133_v0  ;;  %v4103_v37 = vld [vmem:[%s5557_s25 + $0x10] sm:$0xff]  ;;  %1495 = vmatpush.bf16.msrb.mxu1 %v4100_v62  ;;  %v4099_v0 = vld [vmem:[#allocation19 + $0x70] sm:$0xff] }
 0x5b0   :  { %1139 = vst [vmem:[#allocation7 + $0x50] sm:$0xfc] %v1135_v1  ;;  %v955_v1 = vld [vmem:[%s5566_s26] sm:$0xf]  ;;  %s5569_s26 = sld [smem:[#allocation42_spill]] }
 0x5b1   :  { %v1053_v2 = vpop.permute.xlu0 %1052 }
 0x5b2   :  { %v1056_v3 = vsel %vm5558_vm6, %v1051_v41, %v1053_v2  ;;  %vm5561_vm6 = vcmask 441344   ;;  %v4102_v41 = vld [vmem:[%s5557_s25 + $0x8] sm:$0xff] }
 0x5b3   :  { %1060 = vst [vmem:[#allocation7 + $0x68] sm:$0xc0] %v1056_v3  ;;  %v1281_v6 = vld [vmem:[#allocation7 + $0x48] sm:$0xff]  ;;  %1496 = vmatpush.bf16.msrb.mxu1 %v4099_v0 }
 0x5b4   :  { %1062 = vst [vmem:[#allocation7 + $0x38] sm:$0xf] %v1056_v3  ;;  %v4930_v4 = vpop.permute.xlu1 %1337  ;;  %v4098_v3 = vld [vmem:[#allocation19 + $0x68] sm:$0xff] }
 0x5b5   :  { %v1283_v7 = vld [vmem:[#allocation7 + $0x10] sm:$0xff] }
 0x5b6   :  { %v1293_v8 = vpack.c.bf16 %v1283_v7, %v1281_v6  ;;  %v4097_v7 = vld [vmem:[#allocation19 + $0x60] sm:$0xff] }
 0x5b7   :  { %1497 = vmatpush.bf16.msrb.mxu1 %v4098_v3  ;;  %v2381_v3 = vld [vmem:[%s4499_s24] sm:$0x3]  ;;  %s5593_s24 = sld [smem:[#allocation44_spill]] }
 0x5b8   :  { %1314 = vmatpush.bf16.msra.mxu2 %v1293_v8  ;;  %v4096_v8 = vld [vmem:[#allocation19 + $0x58] sm:$0xff] }
 0x5b9   :  { %v1269_v9 = vpop.permute.xlu0 %1268 }
 0x5ba   :  { %v1271_v11 = vsel %vm601_vm10, %v1267_v36, %v1269_v9  ;;  %v1277_v12 = vld [vmem:[#allocation7 + $0x68] sm:$0xff] }
 0x5bb   :  { %1275 = vst [vmem:[#allocation7] sm:$0x3f] %v1271_v11  ;;  %v1279_v13 = vld [vmem:[#allocation7 + $0x38] sm:$0xff]  ;;  %1498 = vmatpush.bf16.msrb.mxu1 %v4097_v7 }
 0x5bc   :  { %v1183_v16 = vpop.permute.xlu1 %1182  ;;  %v1291_v18 = vpack.c.bf16 %v1279_v13, %v1277_v12  ;;  %v4094_v12 = vld [vmem:[#allocation19 + $0x48] sm:$0xff] }
 0x5bd   :  { %v1185_v19 = vsel %vm5560_vm3, %v1181_v51, %v1183_v16  ;;  %vm5563_vm3 = vcmask 908288   ;;  %v4091_v51 = vld [vmem:[#allocation19 + $0x30] sm:$0xff] }
 0x5be   :  { %1189 = vst [vmem:[#allocation7 + $0x30] sm:$0xc0] %v1185_v19  ;;  %1315 = vmatpush.bf16.msra.mxu2 %v1291_v18  ;;  %1483 = vmatpush.bf16.msrb.mxu0 %v4091_v51 }
 0x5bf   :  { %1191 = vst [vmem:[#allocation7 + $0x28] sm:$0xf] %v1185_v19  ;;  %1499 = vmatpush.bf16.msrb.mxu1 %v4096_v8 }
 0x5c1   :  { %3743 = vmatmul.msk.bf16.vlgmr.msra.gmra.mxu2 %vm5561_vm6, %v1276_v20  ;;  %v1240_v17 = vpop.permute.xlu0 %1239  ;;  %vm5564_vm6 = vcmask 1039360  }
 0x5c2   :  { %1636 = vmatpush.bf16.msrb.mxu2 %v4108_v14  ;;  %v1242_v22 = vsel %vm5502_vm7, %v4915_v40, %v1240_v17  ;;  %v1290_v23 = vld [vmem:[#allocation7] sm:$0x3f]  ;;  %1484 = vmatpush.bf16.msrb.mxu0 %v4090_v55  ;;  %v4093_v14 = vld [vmem:[#allocation19 + $0x40] sm:$0xff] }
 0x5c3   :  { %1246 = vst [vmem:[#allocation7 + $0x8] sm:$0xfc] %v1242_v22  ;;  %v1298_v24 = vpack.c.bf16 %v1290_v23, %v1290_v23 }
 0x5c4   :  { %v1097_v15 = vpop.permute.xlu1 %1096 }
 0x5c5   :  { %v1099_v10 = vsel %vm5562_vm8, %v1095_v5, %v1097_v15  ;;  %v1306_v26 = vsel %vm5503_vm0, %v1298_v24, 0  ;;  %vm5565_vm8 = vcmask 441344   ;;  %v4088_v5 = vld [vmem:[#allocation19 + $0x18] sm:$0xff] }
 0x5c6   :  { %1637 = vmatpush.bf16.msrb.mxu2 %v4107_v21  ;;  %1103 = vst [vmem:[#allocation7 + $0x18] sm:$0xf0] %v1099_v10  ;;  %1325 = vmatpush.bf16.msra.mxu3 %v1306_v26  ;;  %v1286_v32 = vld [vmem:[#allocation7 + $0x28] sm:$0xff] }
 0x5c7   :  { %1105 = vst [vmem:[#allocation7 + $0x50] sm:$0x3] %v1099_v10  ;;  %1485 = vmatpush.bf16.msrb.mxu0 %v4089_v57 }
 0x5c9   :  { %v1151_v30 = vpop.permute.xlu0 %1150 }
 0x5ca   :  { %1638 = vmatpush.bf16.msrb.mxu2 %v4106_v25  ;;  %v1153_v31 = vsel %vm5563_vm3, %v1149_v61, %v1151_v30  ;;  %v1288_v33 = vld [vmem:[#allocation7 + $0x8] sm:$0xff]  ;;  %v4086_v61 = vld [vmem:[#allocation19 + $0x8] sm:$0xff]  ;;  %vm5567_vm3 = vcmask 1041408  }
 0x5cb   :  { %1157 = vst [vmem:[#allocation7 + $0x30] sm:$0x3f] %v1153_v31  ;;  %v1296_v27 = vpack.c.bf16 %v1288_v33, %v1286_v32  ;;  %1486 = vmatpush.bf16.msrb.mxu0 %v4088_v5  ;;  %v1705_v32 = vld [vmem:[%s5569_s26] sm:$0x7]  ;;  %s5575_s26 = smov 9  }
 0x5cc   :  { %v1055_v35 = vpop.permute.xlu1 %1054  ;;  %v1717_v33 = vperm.slane %v1705_v32, 2 }
 0x5cd   :  { %v1057_v36 = vsel %vm5564_vm6, %v1053_v2, %v1055_v35  ;;  %1326 = vmatpush.bf16.msra.mxu3 %v1296_v27  ;;  %v1665_v2 = vpack.c.bf16 %v955_v1, %v955_v1  ;;  %vm5568_vm6 = vcmask 31744  }
 0x5ce   :  { %1639 = vmatpush.bf16.msrb.mxu2 %v4105_v29  ;;  %1061 = vst [vmem:[#allocation7 + $0x20] sm:$0xc0] %v1057_v36  ;;  %v1282_v38 = vld [vmem:[#allocation7 + $0x50] sm:$0xff]  ;;  %1772 = vrot.lane.b32.xlu2 %v1717_v33, %s5572_s27 }
 0x5cf   :  { %1063 = vst [vmem:[#allocation7 + $0x18] sm:$0xf] %v1057_v36  ;;  %1487 = vmatpush.bf16.msrb.mxu0 %v4087_v59  ;;  %v1670_v6 = vsel %vm5567_vm3, %v1665_v2, 0  ;;  %vm1824_vm3 = vcmask 519168   ;;  %v2374_v2 = vld [vmem:[%s4494_s19] sm:$0x3] }
 0x5d0   :  { %s5587_s19 = sld [smem:[#allocation41_spill]] }
 0x5d2   :  { %1640 = vmatpush.bf16.msrb.mxu2 %v4104_v34  ;;  %v1284_v39 = vld [vmem:[#allocation7 + $0x30] sm:$0xff]  ;;  %v1689_v34 = vpop.permute.xlu2 %1688 }
 0x5d3   :  { %v1294_v40 = vpack.c.bf16 %v1284_v39, %v1282_v38  ;;  %1488 = vmatpush.bf16.msrb.mxu0 %v4086_v61 }
 0x5d5   :  { %1327 = vmatpush.bf16.msra.mxu3 %v1294_v40  ;;  %v1278_v42 = vld [vmem:[#allocation7 + $0x20] sm:$0xff] }
 0x5d6   :  { %1641 = vmatpush.bf16.msrb.mxu2 %v4103_v37  ;;  %v1280_v43 = vld [vmem:[#allocation7 + $0x18] sm:$0xff]  ;;  %1746 = vrot.lane.b32.xlu2 %v1717_v33, %s5574_s2  ;;  %v1696_v37 = vpop.permute.xlu0 %1695 }
 0x5d7   :  { %v1292_v45 = vpack.c.bf16 %v1280_v43, %v1278_v42  ;;  %1489 = vmatpush.bf16.msrb.mxu0 %v4085_v63 }
 0x5d9   :  { %1328 = vmatpush.bf16.msra.mxu3 %v1292_v45 }
 0x5da   :  { %1642 = vmatpush.bf16.msrb.mxu2 %v4102_v41 }
 0x5db   :  { %1679 = vmatpush.bf16.msra.mxu0 %v1670_v6 }
 0x5dc   :  { %3744 = vmatmul.msk.bf16.vlgmr.msra.gmra.mxu3 %vm5565_vm8, %v1276_v20  ;;  %v1664_v20 = vld [vmem:[#allocation14] sm:$0x1]  ;;  %vm5570_vm8 = vcmask 523264  }
 0x5dd   :  { %1650 = vmatpush.bf16.msrb.mxu3 %v4116_v44 }
 0x5de   :  { %1643 = vmatpush.bf16.msrb.mxu2 %v4101_v46 }
 0x5e1   :  { %1644 = vmatmul.bf16.vlgmr.msrb.gmra.mxu2 %v4853_v53  ;;  %1651 = vmatpush.bf16.msrb.mxu3 %v4115_v49  ;;  %v4110_v53 = vld [vmem:[%s5557_s25 + $0x48] sm:$0xff]  ;;  %s5571_s25 = smov 2  }
 0x5e2   :  { %1719 = vrot.lane.b32.xlu0 %v1717_v33, %s5571_s25 }
 0x5e5   :  { %1652 = vmatpush.bf16.msrb.mxu3 %v4114_v52 }
 0x5e9   :  { %1653 = vmatpush.bf16.msrb.mxu3 %v4113_v56 }
 0x5ed   :  { %1654 = vmatpush.bf16.msrb.mxu3 %v4112_v58 }
 0x5f1   :  { %1655 = vmatpush.bf16.msrb.mxu3 %v4111_v28 }
 0x5f5   :  { %1656 = vmatpush.bf16.msrb.mxu3 %v4110_v53 }
 0x5f9   :  { %1657 = vmatpush.bf16.msrb.mxu3 %v4109_v60 }
 0x5fc   :  { %1658 = vmatmul.bf16.vlgmr.msrb.gmra.mxu3 %v4856_v54  ;;  %v4095_v54 = vld [vmem:[#allocation19 + $0x50] sm:$0xff] }
 0x5fd   :  { %1500 = vmatpush.bf16.msrb.mxu1 %v4095_v54  ;;  %v4995_v54 = vld [vmem:[%s4444_s5 + $0x10] sm:$0xff] }
 0x5fe   :  { %2590 = vst [vmem:[%s4637_s23 + $0x10] sm:$0xff] %v4995_v54 }
 0x601   :  { %1501 = vmatpush.bf16.msrb.mxu1 %v4094_v12 }
 0x605   :  { %1502 = vmatpush.bf16.msrb.mxu1 %v4093_v14 }
 0x628   :  { %v1773_v45 = vpop.permute.xlu2 %1772 }
 0x630   :  { %v1747_v28 = vpop.permute.xlu2 %1746 }
 0x644   :  { %v1317_v9 = vpop.f32.mrf.mxu2 }
 0x645   :  { %v1340_v11 = vmul.f32 %v4930_v4, %v1317_v9 }
 0x647   :  { %v1348_v13 = vadd.f32 %v4921_v50, %v1340_v11 }
 0x649   :  { %v1350_v16 = vmax.f32 %v1348_v13, 0.0 }
 0x64b   :  { %v1352_v18 = vpack.c.bf16 %v1350_v16, %v1350_v16 }
 0x64c   :  { %v1319_v19 = vpop.f32.mrf.mxu2 }
 0x64d   :  { %1490 = vmatmul.bf16.vlgmr.msrb.gmra.mxu0 %v1352_v18 }
 0x654   :  { %v1720_v52 = vpop.permute.xlu0 %1719 }
 0x65d   :  { %3873 = vmatmul.msk.bf16.vlgmr.msra.gmra.mxu0 %vm5568_vm6, %v1664_v20  ;;  %vm1828_vm6 = vcmask 518144   ;;  %v1960_v20 = vpack.c.bf16 %v4995_v54, %v4995_v54 }
 0x65f   :  { %v1330_v21 = vpop.f32.mrf.mxu3 }
 0x660   :  { %v1341_v17 = vmul.f32 %v4930_v4, %v1330_v21  ;;  %v3888_v21 = vld [vmem:[%s4449_s9 + $0x4] sm:$0xf]  ;;  %s5602_s9 = sld [smem:[#allocation46_spill]] }
 0x662   :  { %v1349_v22 = vadd.f32 %v4921_v50, %v1341_v17  ;;  %v1707_v50 = vperm.slane %v1705_v32, 0 }
 0x664   :  { %v1351_v23 = vmax.f32 %v1349_v22, 0.0  ;;  %v1645_v15 = vpop.f32.mrf.mxu2  ;;  %1756 = vrot.lane.b32.xlu0 %v1707_v50, %s5573_s0 }
 0x666   :  { %v1353_v24 = vpack.c.bf16 %v1351_v23, %v1351_v23  ;;  %v2354_v23 = vpack.c.bf16 %v3888_v21, %v3888_v21  ;;  %v1859_v21 = vld [vmem:[%s5602_s9] sm:$0xf] }
 0x667   :  { %v1332_v25 = vpop.f32.mrf.mxu3 }
 0x668   :  { %1503 = vmatmul.bf16.vlgmr.msrb.gmra.mxu1 %v1353_v24 }
 0x66c   :  { %v1647_v29 = vpop.f32.mrf.mxu2 }
 0x67f   :  { %v1659_v10 = vpop.f32.mrf.mxu3 }
 0x680   :  { %v1660_v26 = vadd.f32 %v1659_v10, %v1645_v15  ;;  %v1781_v15 = vld [vmem:[%s5587_s19] sm:$0x1] }
 0x682   :  { %1823 = vst.msk [vmem:[%s4642_s8] sm:$0xff] %vm5570_vm8, %v1660_v26  ;;  %vm5577_vm8 = vcmask 590920   ;;  %v1959_v26 = vld [vmem:[%s4454_s13] sm:$0x7]  ;;  %s5603_s13 = smov 34  }
 0x687   :  { %v1661_v30 = vpop.f32.mrf.mxu3 }
 0x688   :  { %v1662_v31 = vadd.f32 %v1661_v30, %v1647_v29  ;;  %v2353_v29 = vld [vmem:[%s4489_s14] sm:$0x1]  ;;  %s5613_s14 = smov 17  }
 0x689   :  { %v2394_v30 = vld [vmem:[%s4512_s12] sm:$0x7]  ;;  %s5614_s12 = smov 32  }
 0x68a   :  { %1825 = vst.msk [vmem:[%s4642_s8 + $0x8] sm:$0xf] %vm1824_vm3, %v1662_v31  ;;  %vm5578_vm3 = vcmask 517120   ;;  %v2406_v31 = vperm.slane %v2394_v30, 2  ;;  %v2396_v32 = vperm.slane %v2394_v30, 0 }
 0x68b   :  { %vm5584_vm2 = vmmov %vm5578_vm3 }
 0x68c   :  { %vm5585_vm7 = vmmov %vm5584_vm2 }
 0x68d   :  { %vm5590_vm0 = vmmov %vm5584_vm2 }
 0x6ca   :  { %v1491_v4 = vpop.f32.mrf.mxu0 }
 0x6d2   :  { %v1493_v27 = vpop.f32.mrf.mxu0 }
 0x6d6   :  { %v1757_v62 = vpop.permute.xlu0 %1756 }
 0x6da   :  { %v1681_v35 = vpop.f32.mrf.mxu0 }
 0x6db   :  { %v1691_v36 = vmul.f32 %v1689_v34, %v1681_v35 }
 0x6dd   :  { %v1698_v38 = vadd.f32 %v1696_v37, %v1691_v36  ;;  %v1831_v36 = vld [vmem:[#allocation21] sm:$0x3] }
 0x6df   :  { %v1699_v39 = vmax.f32 %v1698_v38, 0.0 }
 0x6e1   :  { %1701 = vrot.lane.b32.xlu1 %v1699_v39, %s5575_s26 }
 0x6e2   :  { %v1683_v40 = vpop.f32.mrf.mxu0 }
 0x6e5   :  { %v1504_v41 = vpop.f32.mrf.mxu1 }
 0x6e6   :  { %v1505_v42 = vadd.f32 %v1504_v41, %v1491_v4  ;;  %v1830_v4 = vld [vmem:[%s5593_s24] sm:$0xf] }
 0x6e7   :  { %v1832_v34 = vpack.c.bf16 %v1830_v4, %v1830_v4 }
 0x6e8   :  { %1829 = vst.msk [vmem:[%s4642_s8 + $0xd] sm:$0x7] %vm1828_vm6, %v1505_v42  ;;  %vm5582_vm6 = vmmov %vm5578_vm3 }
 0x6e9   :  { %1730 = vrot.lane.b32.xlu1 %v1707_v50, %s5576_s20 }
 0x6ed   :  { %v1506_v43 = vpop.f32.mrf.mxu1 }
 0x753   :  { %v1702_v44 = vpop.permute.xlu1 %1701 }
 0x754   :  { %1704 = vst.msk [vmem:[#allocation8] sm:$0x3] %vm5577_vm8, %v1702_v44  ;;  %vm5583_vm8 = vmmov %vm5578_vm3 }
 0x75b   :  { %v1706_v46 = vld [vmem:[#allocation8] sm:$0x3]  ;;  %v1731_v5 = vpop.permute.xlu1 %1730 }
 0x75c   :  { %v1708_v48 = vmul.f32 %v1707_v50, %v1706_v46  ;;  %v1710_v49 = vld [vmem:[#allocation8] sm:$0x3] }
 0x75d   :  { %v1771_v51 = vld [vmem:[#allocation8] sm:$0x3]  ;;  %1712 = vrot.lane.b32.xlu2 %v1710_v49, %s5551_s28 }
 0x75e   :  { %v1775_v55 = vmul.f32 %v1773_v45, %v1771_v51  ;;  %v1716_v56 = vld [vmem:[#allocation8] sm:$0x3]  ;;  %1709 = vst.msk [vmem:[#allocation9] sm:$0x3] %vm5578_vm3, %v1708_v48  ;;  %v5031_v45 = vld [vmem:[%s4444_s5 + $0x18] sm:$0xff]  ;;  %s5601_s5 = sld [smem:[#allocation45_spill]] }
 0x75f   :  { %v1722_v57 = vmul.f32 %v1720_v52, %v1716_v56  ;;  %v1728_v58 = vld [vmem:[#allocation8] sm:$0x3]  ;;  %v1961_v46 = vpack.c.bf16 %v5031_v45, %v5031_v45  ;;  %2591 = vst [vmem:[%s4637_s23 + $0x18] sm:$0xff] %v5031_v45 }
 0x760   :  { %1777 = vrot.lane.b32.xlu1 %v1775_v55, %s5552_s10  ;;  %v1745_v59 = vld [vmem:[#allocation8] sm:$0x3]  ;;  %v1733_v60 = vmul.f32 %v1731_v5, %v1728_v58 }
 0x761   :  { %1724 = vrot.lane.b32.xlu0 %v1722_v57, %s5546_s6  ;;  %v1739_v53 = vld [vmem:[#allocation8] sm:$0x3]  ;;  %v1749_v61 = vmul.f32 %v1747_v28, %v1745_v59 }
 0x762   :  { %v1755_v63 = vld [vmem:[#allocation8] sm:$0x3] }
 0x763   :  { %v1765_v0 = vld [vmem:[#allocation8] sm:$0x3]  ;;  %v1759_v1 = vmul.f32 %v1757_v62, %v1755_v63 }
 0x765   :  { %1741 = vrot.lane.b32.xlu2 %v1739_v53, %s5579_s29 }
 0x768   :  { %1735 = vrot.lane.b32.xlu1 %v1733_v60, %s5580_s30 }
 0x769   :  { %1751 = vrot.lane.b32.xlu0 %v1749_v61, %s5581_s3 }
 0x76d   :  { %1767 = vrot.lane.b32.xlu2 %v1765_v0, %s5553_s7 }
 0x770   :  { %1761 = vrot.lane.b32.xlu1 %v1759_v1, %s5550_s15 }
 0x771   :  { %2377 = vperm.xlu0 %4234, %v2374_v2  }
 0x778   :  { %2384 = vperm.xlu1 %4235, %v2381_v3  }
 0x779   :  { %2461 = vrot.lane.b32.xlu0 %v2406_v31, %s5572_s27 }
 0x780   :  { %2408 = vrot.lane.b32.xlu1 %v2406_v31, %s5571_s25 }
 0x781   :  { %2435 = vrot.lane.b32.xlu0 %v2406_v31, %s5574_s2 }
 0x788   :  { %2445 = vrot.lane.b32.xlu1 %v2396_v32, %s5573_s0 }
 0x7b7   :  { %v1713_v6 = vpop.permute.xlu2 %1712 }
 0x7b8   :  { %1715 = vst.msk [vmem:[#allocation9 + $0x2] sm:$0x3] %vm5582_vm6, %v1713_v6  ;;  %vm5586_vm6 = vmmov %vm5584_vm2  ;;  %v1997_v6 = vld [vmem:[%s5531_s4] sm:$0x3f]  ;;  %s5616_s4 = smov 94  }
 0x7bf   :  { %v1742_v7 = vpop.permute.xlu2 %1741 }
 0x7c0   :  { %1744 = vst.msk [vmem:[#allocation9 + $0x8] sm:$0x3] %vm5583_vm8, %v1742_v7  ;;  %vm5588_vm8 = vmmov %vm5584_vm2 }
 0x7c7   :  { %v1768_v8 = vpop.permute.xlu2 %1767 }
 0x7c8   :  { %1770 = vst.msk [vmem:[#allocation9 + $0xe] sm:$0x3] %vm5578_vm3, %v1768_v8  ;;  %vm5589_vm3 = vcmask 1040384  }
 0x7d2   :  { %v1778_v9 = vpop.permute.xlu1 %1777 }
 0x7d3   :  { %v1725_v11 = vpop.permute.xlu0 %1724  ;;  %1780 = vst.msk [vmem:[#allocation9 + $0x10] sm:$0x3] %vm5584_vm2, %v1778_v9  ;;  %vm5591_vm2 = vcmask 1043456   ;;  %v2005_v9 = vld [vmem:[%s5532_s17] sm:$0x3f]  ;;  %s5617_s17 = sld [smem:[#allocation29_spill]] }
 0x7d4   :  { %1727 = vst.msk [vmem:[#allocation9 + $0x4] sm:$0x3] %vm5585_vm7, %v1725_v11  ;;  %v1966_v25 = vsel %vm5591_vm2, %v1960_v20, 0  ;;  %vm5592_vm7 = vcmask 1041408   ;;  %v1969_v48 = vsel %vm5591_vm2, %v1961_v46, 0  ;;  %vm5606_vm2 = vcmask 1040384  }
 0x7d5   :  { %v2359_v10 = vsel %vm5592_vm7, %v2354_v23, 0  ;;  %v2028_v11 = vld [vmem:[%s5533_s11] sm:$0x77]  ;;  %s5619_s11 = sld [smem:[#allocation48_spill]] }
 0x7d6   :  { %v1852_v20 = vld [vmem:[%s5601_s5] sm:$0xf] }
 0x7da   :  { %v1736_v12 = vpop.permute.xlu1 %1735  ;;  %v1784_v13 = vld [vmem:[#allocation9 + $0x10] sm:$0x3] }
 0x7db   :  { %v1752_v14 = vpop.permute.xlu0 %1751  ;;  %1738 = vst.msk [vmem:[#allocation9 + $0x6] sm:$0x3] %vm5586_vm6, %v1736_v12  ;;  %v1786_v16 = vpack.c.bf16 %v1784_v13, %v1784_v13  ;;  %vm5595_vm6 = vcmask 31744   ;;  %v2068_v12 = vperm.slane %v2028_v11, 2 }
 0x7dc   :  { %1754 = vst.msk [vmem:[#allocation9 + $0xa] sm:$0x3] %vm5588_vm8, %v1752_v14  ;;  %vm5596_vm8 = vmmov %vm5592_vm7  ;;  %v2069_v14 = vperm.slane %v2028_v11, 6 }
 0x7dd   :  { %v1791_v18 = vsel %vm5589_vm3, %v1786_v16, 0  ;;  %v1837_v35 = vsel %vm5596_vm8, %v1832_v34, 0  ;;  %vm5597_vm3 = vmmov %vm5595_vm6  ;;  %v2072_v13 = vperm.slane %v2068_v12, 2 }
 0x7de   :  { %1799 = vmatpush.bf16.msra.mxu1 %v1791_v18  ;;  %1846 = vmatpush.bf16.msra.mxu2 %v1837_v35  ;;  %v2073_v16 = vperm.slane %v2069_v14, 2  ;;  %v2033_v18 = vperm.slane %v2028_v11, 4 }
 0x7e1   :  { %3875 = vmatmul.msk.bf16.vlgmr.msra.gmra.mxu2 %vm5597_vm3, %v1831_v36 }
 0x7e2   :  { %v1762_v19 = vpop.permute.xlu1 %1761  ;;  %v1782_v17 = vld [vmem:[#allocation9] sm:$0xff]  ;;  %1991 = vmatpush.bf16.msrb.mxu2 %v1969_v48 }
 0x7e3   :  { %1764 = vst.msk [vmem:[#allocation9 + $0xc] sm:$0x3] %vm5590_vm0, %v1762_v19  ;;  %vm5594_vm0 = vcmask 64512   ;;  %v2378_v38 = vpop.permute.xlu0 %2377  ;;  %v5055_v19 = vperm.slane %v2033_v18, 0 }
 0x7e4   :  { %vm5598_vm7 = vmmov %vm5594_vm0 }
 0x7ea   :  { %v1783_v22 = vld [vmem:[#allocation9 + $0x8] sm:$0xff]  ;;  %v2385_v41 = vpop.permute.xlu1 %2384 }
 0x7eb   :  { %v1785_v24 = vpack.c.bf16 %v1783_v22, %v1782_v17  ;;  %v2462_v51 = vpop.permute.xlu0 %2461 }
 0x7ed   :  { %1800 = vmatpush.bf16.msra.mxu1 %v1785_v24 }
 0x7f0   :  { %3874 = vmatmul.msk.bf16.vlgmr.msra.gmra.mxu1 %vm490_vm14, %v1781_v15 }
 0x7f1   :  { %1978 = vmatpush.bf16.msrb.mxu1 %v1966_v25  ;;  %3890 = vmatmul.msk.bf16.vlgmr.msrb.gmra.mxu2 %vm5598_vm7, %v1959_v26 }
 0x7f2   :  { %v2409_v55 = vpop.permute.xlu1 %2408 }
 0x7f3   :  { %v2436_v53 = vpop.permute.xlu0 %2435 }
 0x7f5   :  { %2368 = vmatpush.bf16.msra.mxu1 %v2359_v10 }
 0x7fa   :  { %v2446_v3 = vpop.permute.xlu1 %2445 }
 0x800   :  { %3889 = vmatmul.msk.bf16.vlgmr.msrb.gmra.mxu1 %vm5594_vm0, %v1959_v26  ;;  %vm5599_vm0 = vcmask 590920  }
 0x810   :  { %3893 = vmatmul.msk.bf16.vlgmr.msra.gmra.mxu1 %vm5595_vm6, %v2353_v29  ;;  %vm5600_vm6 = vcmask 517120  }
 0x811   :  { %vm5604_vm8 = vmmov %vm5600_vm6 }
 0x812   :  { %vm5605_vm3 = vmmov %vm5600_vm6 }
 0x813   :  { %vm5607_vm7 = vmmov %vm5605_vm3 }
 0x864   :  { %v1848_v17 = vpop.f32.mrf.mxu2 }
 0x86c   :  { %v1850_v22 = vpop.f32.mrf.mxu2 }
 0x86d   :  { %v5021_v33 = vpop.f32.mrf.mxu1 }
 0x874   :  { %v1993_v26 = vpop.f32.mrf.mxu2 }
 0x875   :  { %v1804_v50 = vpop.f32.mrf.mxu1 }
 0x87c   :  { %v1995_v30 = vpop.f32.mrf.mxu2 }
 0x87d   :  { %v5024_v27 = vpop.f32.mrf.mxu1 }
 0x885   :  { %v1982_v37 = vpop.f32.mrf.mxu1 }
 0x88d   :  { %v2370_v39 = vpop.f32.mrf.mxu1 }
 0x88e   :  { %v2380_v40 = vmul.f32 %v2378_v38, %v2370_v39 }
 0x890   :  { %v2387_v42 = vadd.f32 %v2385_v41, %v2380_v40 }
 0x892   :  { %v2388_v43 = vmax.f32 %v2387_v42, 0.0 }
 0x894   :  { %2390 = vrot.lane.b32.xlu2 %v2388_v43, %s5575_s26 }
 0x895   :  { %v2372_v44 = vpop.f32.mrf.mxu1 }
 0x89c   :  { %2419 = vrot.lane.b32.xlu2 %v2396_v32, %s5576_s20 }
 0x8ee   :  { %v2391_v49 = vpop.permute.xlu2 %2390 }
 0x8ef   :  { %2393 = vst.msk [vmem:[#allocation4] sm:$0x3] %vm5599_vm0, %v2391_v49  ;;  %vm5608_vm0 = vmmov %vm5605_vm3 }
 0x8f6   :  { %v2405_v52 = vld [vmem:[#allocation4] sm:$0x3]  ;;  %v2420_v62 = vpop.permute.xlu2 %2419 }
 0x8f7   :  { %v2411_v56 = vmul.f32 %v2409_v55, %v2405_v52  ;;  %v2399_v57 = vld [vmem:[#allocation4] sm:$0x3] }
 0x8f8   :  { %v2460_v58 = vld [vmem:[#allocation4] sm:$0x3]  ;;  %2401 = vrot.lane.b32.xlu0 %v2399_v57, %s5551_s28 }
 0x8f9   :  { %v2464_v5 = vmul.f32 %v2462_v51, %v2460_v58  ;;  %v2395_v28 = vld [vmem:[#allocation4] sm:$0x3]  ;;  %2413 = vrot.lane.b32.xlu1 %v2411_v56, %s5546_s6 }
 0x8fa   :  { %v2397_v59 = vmul.f32 %v2396_v32, %v2395_v28  ;;  %v2434_v60 = vld [vmem:[#allocation4] sm:$0x3] }
 0x8fb   :  { %2466 = vrot.lane.b32.xlu2 %v2464_v5, %s5552_s10  ;;  %v2417_v61 = vld [vmem:[#allocation4] sm:$0x3]  ;;  %v2438_v63 = vmul.f32 %v2436_v53, %v2434_v60  ;;  %v1814_v53 = vld [vmem:[#allocation13] sm:$0x1] }
 0x8fc   :  { %2398 = vst.msk [vmem:[#allocation5] sm:$0x3] %vm5600_vm6, %v2397_v59  ;;  %v2428_v0 = vld [vmem:[#allocation4] sm:$0x3]  ;;  %v2422_v1 = vmul.f32 %v2420_v62, %v2417_v61  ;;  %vm5609_vm6 = vmmov %vm5608_vm0  ;;  %v1806_v59 = vld [vmem:[#allocation12] sm:$0x1] }
 0x8fd   :  { %v2444_v2 = vld [vmem:[#allocation4] sm:$0x3] }
 0x8fe   :  { %v2454_v7 = vld [vmem:[#allocation4] sm:$0x3]  ;;  %v2448_v8 = vmul.f32 %v2446_v3, %v2444_v2 }
 0x900   :  { %2430 = vrot.lane.b32.xlu0 %v2428_v0, %s5579_s29 }
 0x901   :  { %2440 = vrot.lane.b32.xlu1 %v2438_v63, %s5581_s3 }
 0x903   :  { %2424 = vrot.lane.b32.xlu2 %v2422_v1, %s5580_s30 }
 0x908   :  { %2456 = vrot.lane.b32.xlu0 %v2454_v7, %s5553_s7 }
 0x909   :  { %2000 = vperm.xlu1 %4235, %v1997_v6  }
 0x90b   :  { %2450 = vrot.lane.b32.xlu2 %v2448_v8, %s5550_s15 }
 0x913   :  { %2008 = vperm.xlu2 %4236, %v2005_v9  }
 0x91b   :  { %2251 = vrot.lane.b32.xlu2 %v2072_v13, %s5603_s13 }
 0x923   :  { %2164 = vrot.lane.b32.xlu2 %v2073_v16, %s5572_s27 }
 0x92b   :  { %2076 = vrot.lane.b32.xlu2 %v2072_v13, %s5571_s25 }
 0x933   :  { %2114 = vrot.lane.b32.xlu2 %v5055_v19, %s5573_s0 }
 0x93b   :  { %1855 = vperm.xlu2 %4236, %v1852_v20  }
 0x943   :  { %1862 = vperm.xlu2 %4236, %v1859_v21  }
 0x955   :  { %v2467_v23 = vpop.permute.xlu2 %2466 }
 0x956   :  { %2469 = vst.msk [vmem:[#allocation5 + $0x10] sm:$0x3] %vm5604_vm8, %v2467_v23  ;;  %vm5610_vm8 = vmmov %vm5608_vm0 }
 0x95d   :  { %v2425_v24 = vpop.permute.xlu2 %2424  ;;  %v2473_v25 = vld [vmem:[#allocation5 + $0x10] sm:$0x3] }
 0x95e   :  { %2427 = vst.msk [vmem:[#allocation5 + $0x6] sm:$0x3] %vm5605_vm3, %v2425_v24  ;;  %v2475_v15 = vpack.c.bf16 %v2473_v25, %v2473_v25  ;;  %vm5611_vm3 = vmmov %vm5608_vm0 }
 0x960   :  { %v2480_v10 = vsel %vm5606_vm2, %v2475_v15, 0  ;;  %vm5612_vm2 = vmmov %vm5608_vm0 }
 0x961   :  { %2488 = vmatpush.bf16.msra.mxu2 %v2480_v10 }
 0x965   :  { %v2451_v29 = vpop.permute.xlu2 %2450 }
 0x966   :  { %2453 = vst.msk [vmem:[#allocation5 + $0xc] sm:$0x3] %vm5607_vm7, %v2451_v29  ;;  %vm5615_vm7 = vcmask 1041408  }
 0x96a   :  { %v2402_v31 = vpop.permute.xlu0 %2401 }
 0x96b   :  { %2404 = vst.msk [vmem:[#allocation5 + $0x2] sm:$0x3] %vm5608_vm0, %v2402_v31  ;;  %v2414_v32 = vpop.permute.xlu1 %2413  ;;  %vm1826_vm0 = vcmask 516096  }
 0x96c   :  { %2416 = vst.msk [vmem:[#allocation5 + $0x4] sm:$0x3] %vm5609_vm6, %v2414_v32  ;;  %vm5620_vm6 = vcmask 900096  }
 0x96d   :  { %v2009_v50 = vpop.permute.xlu2 %2008 }
 0x972   :  { %v2431_v4 = vpop.permute.xlu0 %2430 }
 0x973   :  { %2433 = vst.msk [vmem:[#allocation5 + $0x8] sm:$0x3] %vm5610_vm8, %v2431_v4  ;;  %v2441_v34 = vpop.permute.xlu1 %2440  ;;  %v2471_v46 = vld [vmem:[#allocation5] sm:$0xff]  ;;  %vm5621_vm8 = vcmask 1042432  }
 0x974   :  { %2443 = vst.msk [vmem:[#allocation5 + $0xa] sm:$0x3] %vm5611_vm3, %v2441_v34  ;;  %vm5623_vm3 = vcmask 31744  }
 0x975   :  { %v2252_v35 = vpop.permute.xlu2 %2251 }
 0x97a   :  { %v2457_v36 = vpop.permute.xlu0 %2456 }
 0x97b   :  { %2459 = vst.msk [vmem:[#allocation5 + $0xe] sm:$0x3] %vm5612_vm2, %v2457_v36  ;;  %v2001_v37 = vpop.permute.xlu1 %2000  ;;  %vm5624_vm2 = vcmask 785408  }
 0x97c   :  { %v2003_v39 = vmul.f32 %v2001_v37, %v5024_v27  ;;  %v2004_v40 = vmul.f32 %v2001_v37, %v1993_v26  ;;  %v2032_v27 = vperm.slane %v2028_v11, 0 }
 0x97d   :  { %v5070_v38 = vpop.permute.xlu2 %2164 }
 0x97e   :  { %v2011_v41 = vadd.f32 %v2009_v50, %v2003_v39  ;;  %v2012_v42 = vadd.f32 %v2009_v50, %v2004_v40  ;;  %v2036_v55 = vperm.slane %v2032_v27, 0 }
 0x980   :  { %v2013_v43 = vmax.f32 %v2011_v41, 0.0  ;;  %v2014_v44 = vmax.f32 %v2012_v42, 0.0 }
 0x982   :  { %2017 = vrot.lane.b32.xlu0 %v2013_v43, %s5613_s14  ;;  %2019 = vrot.lane.b32.xlu1 %v2014_v44, %s5613_s14  ;;  %v2472_v48 = vld [vmem:[#allocation5 + $0x8] sm:$0xff]  ;;  %v2470_v43 = vld [vmem:[%s5534_s21] sm:$0x1]  ;;  %s5618_s21 = sld [smem:[#allocation36_spill]] }
 0x983   :  { %v2474_v49 = vpack.c.bf16 %v2472_v48, %v2471_v46 }
 0x985   :  { %v5075_v51 = vpop.permute.xlu2 %2076  ;;  %2489 = vmatpush.bf16.msra.mxu2 %v2474_v49 }
 0x988   :  { %3894 = vmatmul.msk.bf16.vlgmr.msra.gmra.mxu2 %vm490_vm14, %v2470_v43 }
 0x98a   :  { %2253 = vrot.lane.b32.xlu0 %v2073_v16, %s5603_s13  ;;  %2162 = vrot.lane.b32.xlu1 %v2072_v13, %s5572_s27 }
 0x98d   :  { %v5079_v52 = vpop.permute.xlu2 %2114 }
 0x992   :  { %2196 = vrot.lane.b32.xlu0 %v2036_v55, %s5614_s12  ;;  %2198 = vrot.lane.b32.xlu1 %v5055_v19, %s5614_s12 }
 0x995   :  { %v1856_v56 = vpop.permute.xlu2 %1855 }
 0x996   :  { %v1858_v57 = vmul.f32 %v1856_v56, %v1848_v17 }
 0x99a   :  { %2078 = vrot.lane.b32.xlu0 %v2073_v16, %s5571_s25  ;;  %2112 = vrot.lane.b32.xlu1 %v2036_v55, %s5573_s0 }
 0x99d   :  { %v1863_v58 = vpop.permute.xlu2 %1862 }
 0x99e   :  { %v1865_v5 = vadd.f32 %v1863_v58, %v1858_v57 }
 0x9a0   :  { %v1866_v28 = vmax.f32 %v1865_v5, 0.0 }
 0x9a2   :  { %v1874_v60 = vpack.c.bf16 %v1866_v28, %v1866_v28  ;;  %1809 = vperm.xlu0 %4234, %v1806_v59   ;;  %1817 = vperm.xlu1 %4235, %v1814_v53  }
 0x9a4   :  { %v1884_v61 = vsel %vm5615_vm7, %v1874_v60, 0  ;;  %vm5625_vm7 = vmmov %vm5624_vm2 }
 0x9a5   :  { %1893 = vmatpush.bf16.msra.mxu3 %v1884_v61 }
 0x9f4   :  { %v2018_v62 = vpop.permute.xlu0 %2017  ;;  %v2020_v63 = vpop.permute.xlu1 %2019 }
 0x9f5   :  { %2025 = vst.msk [vmem:[#allocation2] sm:$0x3f] %vm342_vm12, %v2018_v62  ;;  %v2021_v0 = vsel %vm337_vm11, %v2018_v62, %v2020_v63 }
 0x9f6   :  { %2026 = vst [vmem:[#allocation2 + $0x8] sm:$0x3f] %v2021_v0 }
 0x9f7   :  { %2027 = vst.msk [vmem:[#allocation2 + $0x10] sm:$0x3f] %vm258_vm9, %v2020_v63 }
 0x9fc   :  { %v2254_v1 = vpop.permute.xlu0 %2253  ;;  %v2163_v2 = vpop.permute.xlu1 %2162  ;;  %v2248_v3 = vld [vmem:[#allocation2] sm:$0x3f] }
 0x9fd   :  { %v2249_v6 = vld [vmem:[#allocation2 + $0x8] sm:$0x3f]  ;;  %v2255_v7 = vsel %vm584_vm13, %v2252_v35, %v2254_v1  ;;  %v2166_v9 = vsel %vm490_vm14, %v2163_v2, %v5070_v38  ;;  %v2259_v11 = vmul.f32 %v2252_v35, %v2248_v3  ;;  %v2159_v14 = vld [vmem:[#allocation2] sm:$0x3f] }
 0x9fe   :  { %v2160_v8 = vld [vmem:[#allocation2 + $0x8] sm:$0x3f]  ;;  %v2260_v12 = vmul.f32 %v2255_v7, %v2249_v6  ;;  %v2250_v18 = vld [vmem:[#allocation2 + $0x10] sm:$0x3f]  ;;  %v2170_v20 = vmul.f32 %v2163_v2, %v2159_v14  ;;  %v2227_v23 = vld [vmem:[#allocation2] sm:$0x3f] }
 0x9ff   :  { %v2171_v13 = vmul.f32 %v2166_v9, %v2160_v8  ;;  %2265 = vrot.lane.b32.xlu0 %v2259_v11, %s5616_s4  ;;  %v2261_v22 = vmul.f32 %v2254_v1, %v2250_v18  ;;  %v2029_v25 = vld [vmem:[#allocation2] sm:$0x3f]  ;;  %v2030_v15 = vld [vmem:[#allocation2 + $0x8] sm:$0x3f]  ;;  %v2233_v31 = vrot.slane %v2227_v23, 6 }
 0xa00   :  { %2267 = vrot.lane.b32.xlu1 %v2260_v12, %s5616_s4  ;;  %v2176_v24 = vrot.slane %v2170_v20, 2  ;;  %v2038_v26 = vmul.f32 %v2036_v55, %v2029_v25  ;;  %v2039_v29 = vmul.f32 %v5055_v19, %v2030_v15  ;;  %v2193_v30 = vld [vmem:[#allocation2] sm:$0x3f]  ;;  %v2194_v50 = vld [vmem:[#allocation2 + $0x8] sm:$0x3f] }
 0xa01   :  { %v2177_v16 = vrot.slane %v2171_v13, 2  ;;  %v2066_v37 = vld [vmem:[#allocation2 + $0x8] sm:$0x3f]  ;;  %v2065_v41 = vld [vmem:[#allocation2] sm:$0x3f] }
 0xa02   :  { %2040 = vst [vmem:[#allocation3 + $0x30] sm:$0x3f] %v2038_v26  ;;  %v2228_v44 = vld [vmem:[#allocation2 + $0x8] sm:$0x3f]  ;;  %v2084_v46 = vmul.f32 %v5075_v51, %v2065_v41  ;;  %v2107_v28 = vld [vmem:[#allocation2] sm:$0x3f] }
 0xa03   :  { %2181 = vrot.lane.b32.xlu2 %v2177_v16, %s5552_s10  ;;  %2041 = vst [vmem:[#allocation3] sm:$0x3f] %v2039_v29  ;;  %v2234_v55 = vrot.slane %v2228_v44, 6  ;;  %v2108_v59 = vld [vmem:[#allocation2 + $0x8] sm:$0x3f]  ;;  %v1867_v7 = vld [vmem:[%s4642_s8] sm:$0xff] }
 0xa04   :  { %v2197_v21 = vpop.permute.xlu0 %2196  ;;  %v2199_v17 = vpop.permute.xlu1 %2198  ;;  %v2090_v56 = vrot.slane %v2084_v46, 4  ;;  %v2141_v60 = vld [vmem:[#allocation2] sm:$0x3f]  ;;  %v2195_v62 = vld [vmem:[#allocation2 + $0x10] sm:$0x3f] }
 0xa05   :  { %v2200_v10 = vsel %vm526_vm15, %v2197_v21, %v2199_v17  ;;  %v2204_v32 = vmul.f32 %v2197_v21, %v2193_v30  ;;  %v2161_v2 = vld [vmem:[#allocation2 + $0x10] sm:$0x3f]  ;;  %v2043_v11 = vld [vmem:[#allocation2 + $0x8] sm:$0x3f]  ;;  %v2042_v18 = vld [vmem:[#allocation2] sm:$0x3f] }
 0xa06   :  { %v2205_v4 = vmul.f32 %v2200_v10, %v2194_v50  ;;  %v2172_v6 = vmul.f32 %v5070_v38, %v2161_v2  ;;  %v2142_v12 = vld [vmem:[#allocation2 + $0x8] sm:$0x3f]  ;;  %v2049_v14 = vrot.slane %v2043_v11, 2  ;;  %v2229_v16 = vld [vmem:[#allocation2 + $0x10] sm:$0x3f]  ;;  %v2048_v21 = vrot.slane %v2042_v18, 2 }
 0xa07   :  { %2269 = vrot.lane.b32.xlu0 %v2261_v22, %s5616_s4  ;;  %v2210_v36 = vrot.slane %v2204_v32, 4  ;;  %v2235_v20 = vrot.slane %v2229_v16, 6  ;;  %v2109_v38 = vld [vmem:[#allocation2 + $0x10] sm:$0x3f]  ;;  %v2503_v10 = vld [vmem:[#allocation11] sm:$0x1] }
 0xa08   :  { %2179 = vrot.lane.b32.xlu1 %v2176_v24, %s5552_s10  ;;  %v2211_v39 = vrot.slane %v2205_v4, 4  ;;  %v2178_v13 = vrot.slane %v2172_v6, 2  ;;  %v2143_v23 = vld [vmem:[#allocation2 + $0x10] sm:$0x3f]  ;;  %v2122_v24 = vmul.f32 %v5079_v52, %v2109_v38  ;;  %v2495_v30 = vld [vmem:[#allocation10] sm:$0x1] }
 0xa09   :  { %v2044_v26 = vld [vmem:[#allocation2 + $0x10] sm:$0x3f]  ;;  %v2335_v32 = vld [vmem:[%s5535_s22] sm:$0x7]  ;;  %s5622_s22 = sld [smem:[#allocation47_spill]] }
 0xa0a   :  { %v2128_v15 = vrot.slane %v2122_v24, 6  ;;  %v2050_v29 = vrot.slane %v2044_v26, 2  ;;  %v2343_v50 = vld [vmem:[%s5617_s17] sm:$0x7]  ;;  %s5636_s17 = sld [smem:[#allocation27_spill]] }
 0xa0b   :  { %2236 = vrot.lane.b32.xlu2 %v2233_v31, %s5545_s18  ;;  %v2652_v31 = vld [vmem:[%s5536_s1] sm:$0x3f]  ;;  %s5633_s1 = sld [smem:[#allocation32_spill]] }
 0xa0c   :  { %v5101_v34 = vpop.permute.xlu0 %2078  ;;  %v2113_v35 = vpop.permute.xlu1 %2112 }
 0xa0d   :  { %v2080_v19 = vsel %vm399_vm4, %v5075_v51, %v5101_v34  ;;  %v2116_v57 = vsel %vm437_vm5, %v2113_v35, %v5079_v52  ;;  %v2120_v53 = vmul.f32 %v2113_v35, %v2107_v28  ;;  %v2660_v52 = vld [vmem:[%s5618_s21] sm:$0x3f]  ;;  %s5643_s21 = sld [smem:[#allocation40_spill]] }
 0xa0e   :  { %v2085_v40 = vmul.f32 %v2080_v19, %v2066_v37  ;;  %v2121_v61 = vmul.f32 %v2116_v57, %v2108_v59 }
 0xa0f   :  { %2213 = vrot.lane.b32.xlu0 %v2210_v36, %s5547_s16  ;;  %v2126_v0 = vrot.slane %v2120_v53, 6 }
 0xa10   :  { %v2091_v42 = vrot.slane %v2085_v40, 4  ;;  %2215 = vrot.lane.b32.xlu1 %v2211_v39, %s5547_s16  ;;  %v2127_v1 = vrot.slane %v2121_v61, 6  ;;  %v4117_v61 = vld [vmem:[%s5622_s22] sm:$0x10] }
 0xa13   :  { %2095 = vrot.lane.b32.xlu2 %v2091_v42, %s5546_s6 }
 0xa14   :  { %v1810_v48 = vpop.permute.xlu0 %1809  ;;  %v1818_v49 = vpop.permute.xlu1 %1817 }
 0xa15   :  { %v1812_v27 = vperm.slane %v1810_v48, 0  ;;  %v1820_v5 = vperm.slane %v1818_v49, 0  ;;  %v3878_v49 = vld [vmem:[%s5619_s11] sm:$0xf] }
 0xa17   :  { %v1813_v58 = vmul.f32 %v1812_v27, %v5021_v33  ;;  %2238 = vrot.lane.b32.xlu0 %v2234_v55, %s5545_s18  ;;  %v2206_v33 = vmul.f32 %v2199_v17, %v2195_v62  ;;  %v2067_v17 = vld [vmem:[#allocation2 + $0x10] sm:$0x3f]  ;;  %v4118_v27 = vld [vmem:[%s5619_s11] sm:$0x10] }
 0xa18   :  { %2093 = vrot.lane.b32.xlu1 %v2090_v56, %s5546_s6  ;;  %v2086_v22 = vmul.f32 %v5101_v34, %v2067_v17  ;;  %v3879_v55 = vor.u32 %v4118_v27, %v3878_v49 }
 0xa19   :  { %v1821_v51 = vadd.f32 %v1820_v5, %v1813_v58  ;;  %v2212_v3 = vrot.slane %v2206_v33, 4 }
 0xa1a   :  { %v2092_v25 = vrot.slane %v2086_v22, 4  ;;  %3880 = vmatmul.msk.bf16.vlgmr.msra.gmra.mxu3 %vm5623_vm3, %v3879_v55  ;;  %vm5629_vm3 = vcmask 916480  }
 0xa1b   :  { %2147 = vrot.lane.b32.xlu2 %v2141_v60, %s5553_s7  ;;  %v1822_v63 = vmax.f32 %v1821_v51, 0.0  ;;  %v3883_v60 = vld [vmem:[%s5622_s22] sm:$0xf] }
 0xa1c   :  { %v3884_v62 = vor.u32 %v4117_v61, %v3883_v60 }
 0xa1d   :  { %1827 = vst.msk [vmem:[%s4642_s8 + $0xc] sm:$0x1] %vm1826_vm0, %v1822_v63  ;;  %vm5626_vm0 = vmmov %vm5621_vm8 }
 0xa1f   :  { %2129 = vrot.lane.b32.xlu0 %v2126_v0, %s5550_s15 }
 0xa20   :  { %2131 = vrot.lane.b32.xlu1 %v2127_v1, %s5550_s15 }
 0xa23   :  { %2217 = vrot.lane.b32.xlu2 %v2212_v3, %s5547_s16 }
 0xa24   :  { %v1868_v8 = vld [vmem:[%s4642_s8 + $0x8] sm:$0xff] }
 0xa25   :  { %v1871_v9 = vpack.c.bf16 %v1868_v8, %v1867_v7 }
 0xa27   :  { %2149 = vrot.lane.b32.xlu0 %v2142_v12, %s5553_s7  ;;  %1915 = vmatpush.bf16.msrb.mxu0 %v1871_v9  ;;  %v2491_v12 = vpop.f32.mrf.mxu2 }
 0xa28   :  { %2183 = vrot.lane.b32.xlu1 %v2178_v13, %s5552_s10 }
 0xa2a   :  { %3885 = vmatmul.msk.bf16.vlgmr.msrb.gmra.mxu0 %vm437_vm5, %v3884_v62  ;;  %v4125_v62 = vld [vmem:[%s5633_s1 + $0x34] sm:$0xf] }
 0xa2b   :  { %2053 = vrot.lane.b32.xlu2 %v2049_v14, %s5551_s28 }
 0xa2f   :  { %2240 = vrot.lane.b32.xlu0 %v2235_v20, %s5545_s18  ;;  %v2493_v38 = vpop.f32.mrf.mxu2 }
 0xa30   :  { %2051 = vrot.lane.b32.xlu1 %v2048_v21, %s5551_s28 }
 0xa33   :  { %2151 = vrot.lane.b32.xlu2 %v2143_v23, %s5553_s7 }
 0xa37   :  { %2097 = vrot.lane.b32.xlu0 %v2092_v25, %s5546_s6 }
 0xa38   :  { %2133 = vrot.lane.b32.xlu1 %v2128_v15, %s5550_s15 }
 0xa3b   :  { %2506 = vperm.xlu2 %4236, %v2503_v10  }
 0xa3f   :  { %2055 = vrot.lane.b32.xlu0 %v2050_v29, %s5551_s28  ;;  %v3921_v29 = vld [vmem:[%s5633_s1 + $0x30] sm:$0xf] }
 0xa40   :  { %2498 = vperm.xlu1 %4235, %v2495_v30   ;;  %v4126_v30 = vld [vmem:[%s5633_s1 + $0x34] sm:$0xf0] }
 0xa43   :  { %2655 = vperm.xlu2 %4236, %v2652_v31  }
 0xa47   :  { %2338 = vperm.xlu0 %4234, %v2335_v32  }
 0xa48   :  { %2346 = vperm.xlu1 %4235, %v2343_v50  }
 0xa4f   :  { %2663 = vperm.xlu0 %4234, %v2660_v52  }
 0xa5d   :  { %v5140_v4 = vpop.permute.xlu2 %2181 }
 0xa65   :  { %v2237_v34 = vpop.permute.xlu2 %2236 }
 0xa6d   :  { %v5142_v35 = vpop.permute.xlu2 %2095 }
 0xa71   :  { %v2266_v36 = vpop.permute.xlu0 %2265 }
 0xa72   :  { %v2268_v37 = vpop.permute.xlu1 %2267 }
 0xa73   :  { %v2271_v19 = vsel %vm601_vm10, %v2266_v36, %v2268_v37 }
 0xa74   :  { %2275 = vst [vmem:[#allocation3 + $0x60] sm:$0x3f] %v2271_v19  ;;  %v3922_v19 = vor.u32 %v4126_v30, %v3921_v29 }
 0xa75   :  { %v2148_v39 = vpop.permute.xlu2 %2147 }
 0xa79   :  { %v2270_v40 = vpop.permute.xlu0 %2269 }
 0xa7a   :  { %v2272_v41 = vsel %vm601_vm10, %v2268_v37, %v2270_v40  ;;  %v2180_v42 = vpop.permute.xlu1 %2179  ;;  %v3913_v40 = vld [vmem:[%s5633_s1 + $0x20] sm:$0xf] }
 0xa7b   :  { %2276 = vst [vmem:[#allocation3 + $0x28] sm:$0x3f] %v2272_v41  ;;  %v2185_v43 = vsel %vm5620_vm6, %v2180_v42, %v5140_v4  ;;  %v2290_v44 = vld [vmem:[#allocation3 + $0x60] sm:$0x3f]  ;;  %vm5627_vm6 = vcmask 777216  }
 0xa7c   :  { %2189 = vst [vmem:[#allocation3 + $0x8] sm:$0xc0] %v2185_v43  ;;  %v2298_v46 = vpack.c.bf16 %v2290_v44, %v2290_v44  ;;  %v4124_v41 = vld [vmem:[%s5633_s1 + $0x24] sm:$0xf0]  ;;  %v3905_v44 = vld [vmem:[%s5633_s1 + $0x10] sm:$0xf] }
 0xa7d   :  { %2191 = vst [vmem:[#allocation3 + $0x40] sm:$0xf] %v2185_v43  ;;  %v2218_v57 = vpop.permute.xlu2 %2217  ;;  %v3914_v42 = vor.u32 %v4124_v41, %v3913_v40 }
 0xa7e   :  { %v2304_v48 = vsel %vm5621_vm8, %v2298_v46, 0  ;;  %vm5628_vm8 = vcmask 1031168   ;;  %v4122_v46 = vld [vmem:[%s5633_s1 + $0x14] sm:$0xf0] }
 0xa7f   :  { %2313 = vmatpush.bf16.msrb.mxu3 %v2304_v48 }
 0xa81   :  { %v2214_v56 = vpop.permute.xlu0 %2213 }
 0xa82   :  { %v2216_v58 = vpop.permute.xlu1 %2215  ;;  %v2291_v5 = vld [vmem:[#allocation3 + $0x28] sm:$0x3f] }
 0xa83   :  { %v2219_v28 = vsel %vm5624_vm2, %v2214_v56, %v2216_v58  ;;  %v2220_v59 = vsel %vm5625_vm7, %v2216_v58, %v2218_v57  ;;  %v2299_v53 = vpack.c.bf16 %v2291_v5, %v2291_v5  ;;  %vm5630_vm2 = vcmask 908288  }
 0xa84   :  { %2223 = vst [vmem:[#allocation3 + $0x40] sm:$0xf0] %v2219_v28  ;;  %vm5631_vm7 = vmmov %vm5630_vm2  ;;  %v3906_v58 = vor.u32 %v4122_v46, %v3905_v44 }
 0xa85   :  { %2224 = vst [vmem:[#allocation3 + $0x20] sm:$0xf0] %v2220_v59  ;;  %v2307_v51 = vsel %vm5626_vm0, %v2299_v53, 0  ;;  %v2054_v2 = vpop.permute.xlu2 %2053  ;;  %vm5632_vm0 = vcmask 900096   ;;  %v4120_v53 = vld [vmem:[%s5633_s1 + $0x4] sm:$0xf0] }
 0xa86   :  { %2225 = vst [vmem:[#allocation3 + $0x10] sm:$0x3] %v2219_v28  ;;  %2326 = vmatpush.bf16.msra.mxu0 %v2307_v51 }
 0xa87   :  { %2226 = vst [vmem:[#allocation3 + $0x38] sm:$0x3] %v2220_v59  ;;  %v3897_v59 = vld [vmem:[%s5633_s1] sm:$0xf] }
 0xa88   :  { %v3898_v61 = vor.u32 %v4120_v53, %v3897_v59 }
 0xa89   :  { %v2239_v63 = vpop.permute.xlu0 %2238 }
 0xa8a   :  { %v2242_v33 = vsel %vm5627_vm6, %v2237_v34, %v2239_v63  ;;  %v2094_v0 = vpop.permute.xlu1 %2093 }
 0xa8b   :  { %2246 = vst [vmem:[#allocation3 + $0x10] sm:$0xfc] %v2242_v33  ;;  %v2099_v1 = vsel %vm5628_vm8, %v2094_v0, %v5142_v35  ;;  %v2286_v7 = vld [vmem:[#allocation3 + $0x40] sm:$0xff]  ;;  %vm5634_vm8 = vcmask 1039360  }
 0xa8c   :  { %2103 = vst [vmem:[#allocation3 + $0x58] sm:$0xf0] %v2099_v1 }
 0xa8d   :  { %2105 = vst [vmem:[#allocation3 + $0x50] sm:$0x3] %v2099_v1  ;;  %v2152_v13 = vpop.permute.xlu2 %2151 }
 0xa91   :  { %v2130_v3 = vpop.permute.xlu0 %2129 }
 0xa92   :  { %v2132_v6 = vpop.permute.xlu1 %2131  ;;  %v2288_v8 = vld [vmem:[#allocation3 + $0x10] sm:$0xff] }
 0xa93   :  { %v2135_v9 = vsel %vm5629_vm3, %v2130_v3, %v2132_v6  ;;  %v2296_v11 = vpack.c.bf16 %v2288_v8, %v2286_v7  ;;  %vm5635_vm3 = vcmask 1031168   ;;  %v3915_v7 = vld [vmem:[%s5633_s1 + $0x28] sm:$0xf0] }
 0xa94   :  { %2139 = vst [vmem:[#allocation3 + $0x50] sm:$0xfc] %v2135_v9 }
 0xa95   :  { %2314 = vmatpush.bf16.msrb.mxu3 %v2296_v11  ;;  %v2507_v27 = vpop.permute.xlu2 %2506  ;;  %v4121_v11 = vld [vmem:[%s5633_s1 + $0x14] sm:$0xf] }
 0xa96   :  { %v2509_v51 = vperm.slane %v2507_v27, 0 }
 0xa99   :  { %v2150_v14 = vpop.permute.xlu0 %2149 }
 0xa9a   :  { %v2153_v16 = vsel %vm5630_vm2, %v2148_v39, %v2150_v14  ;;  %v2154_v18 = vsel %vm5631_vm7, %v2150_v14, %v2152_v13  ;;  %v2184_v20 = vpop.permute.xlu1 %2183  ;;  %vm5637_vm2 = vcmask 916480   ;;  %vm5638_vm7 = vmmov %vm5634_vm8  ;;  %v4119_v14 = vld [vmem:[%s5633_s1 + $0x4] sm:$0xf] }
 0xa9b   :  { %2157 = vst [vmem:[#allocation3 + $0x8] sm:$0x3f] %v2153_v16  ;;  %v2186_v21 = vsel %vm5632_vm0, %v5140_v4, %v2184_v20  ;;  %v2282_v24 = vld [vmem:[#allocation3 + $0x50] sm:$0xff]  ;;  %vm5639_vm0 = vcmask 441344  }
 0xa9c   :  { %2158 = vst [vmem:[#allocation3 + $0x48] sm:$0x3f] %v2154_v18  ;;  %v3899_v16 = vld [vmem:[%s5633_s1 + $0x8] sm:$0xf0] }
 0xa9d   :  { %2190 = vst [vmem:[#allocation3 + $0x48] sm:$0xc0] %v2186_v21  ;;  %v3902_v18 = vor.u32 %v4119_v14, %v3899_v16  ;;  %v1895_v20 = vpop.f32.mrf.mxu3 }
 0xa9e   :  { %2192 = vst [vmem:[#allocation3 + $0x20] sm:$0xf] %v2186_v21 }
 0xaa1   :  { %v2241_v17 = vpop.permute.xlu0 %2240 }
 0xaa2   :  { %v2243_v22 = vsel %vm5627_vm6, %v2239_v63, %v2241_v17  ;;  %v2052_v23 = vpop.permute.xlu1 %2051  ;;  %v2284_v25 = vld [vmem:[#allocation3 + $0x8] sm:$0xff]  ;;  %v3923_v63 = vld [vmem:[%s5633_s1 + $0x38] sm:$0xf0]  ;;  %vm5640_vm6 = vmmov %vm5639_vm0 }
 0xaa3   :  { %2247 = vst [vmem:[#allocation3 + $0x38] sm:$0xfc] %v2243_v22  ;;  %v2057_v15 = vsel %vm5634_vm8, %v2052_v23, %v2054_v2  ;;  %v2294_v10 = vpack.c.bf16 %v2284_v25, %v2282_v24  ;;  %v3926_v1 = vor.u32 %v4125_v62, %v3923_v63  ;;  %vm5641_vm8 = vcmask 523264  }
 0xaa4   :  { %2061 = vst [vmem:[#allocation3 + $0x30] sm:$0xc0] %v2057_v15  ;;  %v2285_v57 = vld [vmem:[#allocation3 + $0x48] sm:$0xff] }
 0xaa5   :  { %2063 = vst [vmem:[#allocation3 + $0x58] sm:$0xf] %v2057_v15  ;;  %2315 = vmatpush.bf16.msrb.mxu3 %v2294_v10  ;;  %v2287_v50 = vld [vmem:[#allocation3 + $0x20] sm:$0xff]  ;;  %v1897_v17 = vpop.f32.mrf.mxu3 }
 0xaa7   :  { %v1917_v21 = vpop.f32.mrf.mxu0 }
 0xaa8   :  { %v5193_v38 = vadd.f32 %v1917_v21, %v1895_v20 }
 0xaa9   :  { %v2098_v26 = vpop.permute.xlu0 %2097 }
 0xaaa   :  { %v2100_v31 = vsel %vm5635_vm3, %v5142_v35, %v2098_v26  ;;  %v2134_v32 = vpop.permute.xlu1 %2133  ;;  %v2289_v52 = vld [vmem:[#allocation3 + $0x38] sm:$0xff]  ;;  %v2277_v35 = vld [vmem:[%s5636_s17] sm:$0x3]  ;;  %vm5642_vm3 = vmmov %vm5641_vm8 }
 0xaab   :  { %2104 = vst [vmem:[#allocation3 + $0x18] sm:$0xf0] %v2100_v31  ;;  %v2136_v4 = vsel %vm5637_vm2, %v2132_v6, %v2134_v32  ;;  %v2297_v34 = vpack.c.bf16 %v2289_v52, %v2287_v50  ;;  %v2278_v36 = vld [vmem:[#allocation3 + $0x30] sm:$0xff]  ;;  %v4123_v6 = vld [vmem:[%s5633_s1 + $0x24] sm:$0xf]  ;;  %vm5645_vm2 = vcmask 1040384  }
 0xaac   :  { %2106 = vst [vmem:[#allocation3 + $0x68] sm:$0x3] %v2100_v31  ;;  %v2280_v37 = vld [vmem:[#allocation3 + $0x58] sm:$0xff]  ;;  %v3918_v8 = vor.u32 %v4123_v6, %v3915_v7  ;;  %v2683_v52 = vld [vmem:[%s5643_s21] sm:$0x77] }
 0xaad   :  { %2140 = vst [vmem:[#allocation3 + $0x68] sm:$0xfc] %v2136_v4  ;;  %2327 = vmatpush.bf16.msra.mxu0 %v2297_v34  ;;  %v2292_v39 = vpack.c.bf16 %v2280_v37, %v2278_v36  ;;  %v2723_v34 = vperm.slane %v2683_v52, 2  ;;  %v2724_v36 = vperm.slane %v2683_v52, 6  ;;  %v2687_v63 = vperm.slane %v2683_v52, 0 }
 0xaaf   :  { %2316 = vmatpush.bf16.msrb.mxu3 %v2292_v39  ;;  %v1919_v22 = vpop.f32.mrf.mxu0  ;;  %v2728_v39 = vperm.slane %v2724_v36, 2 }
 0xab0   :  { %v5195_v23 = vadd.f32 %v1919_v22, %v1897_v17 }
 0xab1   :  { %v2056_v43 = vpop.permute.xlu0 %2055  ;;  %2908 = vrot.lane.b32.xlu1 %v2728_v39, %s5603_s13 }
 0xab2   :  { %v2058_v48 = vsel %vm5638_vm7, %v2054_v2, %v2056_v43  ;;  %3891 = vmatmul.msk.bf16.vlgmr.msrb.gmra.mxu3 %vm5639_vm0, %v2277_v35  ;;  %v2499_v49 = vpop.permute.xlu1 %2498  ;;  %vm5646_vm7 = vcmask 1045504  }
 0xab3   :  { %2568 = vmatpush.bf16.msra.mxu3 %v3922_v19  ;;  %2062 = vst [vmem:[#allocation3] sm:$0xc0] %v2058_v48  ;;  %v2501_v55 = vperm.slane %v2499_v49, 0  ;;  %v2727_v19 = vperm.slane %v2723_v34, 2  ;;  %v2688_v49 = vperm.slane %v2683_v52, 4  ;;  %vm5647_vm0 = vmmov %vm5646_vm7 }
 0xab4   :  { %2064 = vst [vmem:[#allocation3 + $0x18] sm:$0xf] %v2058_v48  ;;  %v2283_v56 = vld [vmem:[#allocation3 + $0x68] sm:$0xff] }
 0xab5   :  { %v2502_v5 = vmul.f32 %v2501_v55, %v2491_v12  ;;  %v2295_v28 = vpack.c.bf16 %v2285_v57, %v2283_v56  ;;  %v3907_v12 = vld [vmem:[%s5633_s1 + $0x18] sm:$0xf0]  ;;  %2906 = vrot.lane.b32.xlu0 %v2727_v19, %s5603_s13  ;;  %2817 = vrot.lane.b32.xlu2 %v2727_v19, %s5572_s27  ;;  %s5644_s1 = sld [smem:[#allocation34_spill]] }
 0xab6   :  { %v3910_v13 = vor.u32 %v4121_v11, %v3907_v12  ;;  %s5651_s13 = sld [smem:[#allocation39_spill]] }
 0xab7   :  { %2569 = vmatpush.bf16.msra.mxu3 %v3914_v42  ;;  %2328 = vmatpush.bf16.msra.mxu0 %v2295_v28  ;;  %v2510_v60 = vadd.f32 %v2509_v51, %v2502_v5 }
 0xab9   :  { %v2511_v2 = vmax.f32 %v2510_v60, 0.0  ;;  %v2339_v24 = vpop.permute.xlu0 %2338 }
 0xaba   :  { %v2279_v33 = vld [vmem:[#allocation3] sm:$0xff]  ;;  %v2347_v10 = vpop.permute.xlu1 %2346 }
 0xabb   :  { %2570 = vmatpush.bf16.msra.mxu3 %v3906_v58  ;;  %v2281_v0 = vld [vmem:[#allocation3 + $0x18] sm:$0xff]  ;;  %v2512_v9 = vpack.c.bf16 %v2511_v2, %v2511_v2  ;;  %v5217_v58 = vperm.slane %v2688_v49, 0  ;;  %v2614_v28 = vld [vmem:[%s5644_s1] sm:$0x7]  ;;  %v2691_v2 = vperm.slane %v2687_v63, 0 }
 0xabc   :  { %v2293_v3 = vpack.c.bf16 %v2281_v0, %v2279_v33 }
 0xabd   :  { %2819 = vrot.lane.b32.xlu0 %v2728_v39, %s5572_s27 }
 0xabe   :  { %2329 = vmatpush.bf16.msra.mxu0 %v2293_v3 }
 0xabf   :  { %2571 = vmatpush.bf16.msra.mxu3 %v3898_v61 }
 0xac1   :  { %3892 = vmatmul.msk.bf16.vlgmr.msra.gmra.mxu0 %vm5640_vm6, %v2277_v35  ;;  %v2664_v53 = vpop.permute.xlu0 %2663 }
 0xac2   :  { %2581 = vmatpush.bf16.msrb.mxu0 %v3926_v1  ;;  %3927 = vmatmul.msk.bf16.vlgmr.msra.gmra.mxu3 %vm5641_vm8, %v2512_v9  ;;  %vm5658_vm8 = vcmask 916480  }
 0xac5   :  { %2731 = vrot.lane.b32.xlu0 %v2727_v19, %s5571_s25 }
 0xac6   :  { %2582 = vmatpush.bf16.msrb.mxu0 %v3918_v8 }
 0xaca   :  { %2583 = vmatpush.bf16.msrb.mxu0 %v3910_v13 }
 0xacd   :  { %2769 = vrot.lane.b32.xlu0 %v5217_v58, %s5573_s0 }
 0xace   :  { %2584 = vmatpush.bf16.msrb.mxu0 %v3902_v18 }
 0xad1   :  { %3928 = vmatmul.msk.bf16.vlgmr.msrb.gmra.mxu0 %vm5642_vm3, %v2512_v9  ;;  %vm5659_vm3 = vcmask 1031168  }
 0xb23   :  { %v5236_v8 = vpop.permute.xlu1 %2908 }
 0xb27   :  { %v2907_v9 = vpop.permute.xlu0 %2906 }
 0xb2f   :  { %v5242_v14 = vpop.permute.xlu0 %2819 }
 0xb35   :  { %v2318_v25 = vpop.f32.mrf.mxu3 }
 0xb36   :  { %v2341_v15 = vmul.f32 %v2339_v24, %v2318_v25 }
 0xb38   :  { %v2349_v26 = vadd.f32 %v2347_v10, %v2341_v15 }
 0xb3a   :  { %v2351_v29 = vmax.f32 %v2349_v26, 0.0 }
 0xb3c   :  { %v2602_v30 = vrot.slane %v2351_v29, 7 }
 0xb3d   :  { %v2320_v31 = vpop.f32.mrf.mxu3 }
 0xb3e   :  { %2606 = vst [vmem:[%s4637_s23 + $0x30] sm:$0xe] %v2602_v30  ;;  %v2331_v32 = vpop.f32.mrf.mxu0  ;;  %v2732_v30 = vpop.permute.xlu0 %2731 }
 0xb3f   :  { %v2342_v50 = vmul.f32 %v2339_v24, %v2331_v32 }
 0xb41   :  { %v2350_v4 = vadd.f32 %v2347_v10, %v2342_v50 }
 0xb43   :  { %v2352_v37 = vmax.f32 %v2350_v4, 0.0 }
 0xb45   :  { %v2603_v40 = vrot.slane %v2352_v37, 7  ;;  %v2573_v41 = vpop.f32.mrf.mxu3 }
 0xb46   :  { %v2333_v35 = vpop.f32.mrf.mxu0 }
 0xb47   :  { %2607 = vst [vmem:[%s4637_s23 + $0x38] sm:$0xe] %v2603_v40 }
 0xb4d   :  { %v2575_v42 = vpop.f32.mrf.mxu3 }
 0xb4e   :  { %v2586_v43 = vpop.f32.mrf.mxu0 }
 0xb4f   :  { %v2594_v44 = vrot.slane %v2586_v43, 7 }
 0xb51   :  { %v2595_v46 = vsel %vm5645_vm2, %v2573_v41, %v2594_v44  ;;  %vm5660_vm2 = vmmov %vm5659_vm3 }
 0xb52   :  { %3929 = vst.msk [vmem:[%s4637_s23 + $0x30] ss:$8 sm:$0x3] %vm4841_vm1, %v2595_v46  ;;  %vm5648_vm1 = vcmask 97280  }
 0xb53   :  { %vm5649_vm6 = vmmov %vm5648_vm1 }
 0xb56   :  { %v2588_v48 = vpop.f32.mrf.mxu0 }
 0xb57   :  { %v2910_v48 = vsel %vm584_vm13, %v2907_v9, %v5236_v8  ;;  %vm5655_vm13 = vcmask 785408  }
 0xb59   :  { %v2610_v27 = vld [vmem:[%s4637_s23 + $0x30] sm:$0xf]  ;;  %v2611_v55 = vld [vmem:[%s4637_s23 + $0x38] sm:$0xf]  ;;  %s5650_s23 = sld [smem:[#allocation38_spill]] }
 0xb5a   :  { %v5212_v56 = vpack.c.bf16 %v2610_v27, %v4995_v54  ;;  %v5215_v57 = vpack.c.bf16 %v2611_v55, %v5031_v45  ;;  %v2656_v54 = vpop.permute.xlu2 %2655  ;;  %v2770_v55 = vpop.permute.xlu0 %2769 }
 0xb5c   :  { %v2621_v5 = vsel %vm5646_vm7, %v5212_v56, 0  ;;  %v2624_v47 = vsel %vm5647_vm0, %v5215_v57, 0  ;;  %vm5661_vm7 = vcmask 1039360  }
 0xb5d   :  { %2633 = vmatpush.bf16.msrb.mxu1 %v2621_v5  ;;  %2646 = vmatpush.bf16.msrb.mxu2 %v2624_v47  ;;  %vm5664_vm0 = vmmov %vm5661_vm7 }
 0xb60   :  { %3931 = vmatmul.msk.bf16.vlgmr.msrb.gmra.mxu1 %vm5648_vm1, %v2614_v28  ;;  %3932 = vmatmul.msk.bf16.vlgmr.msrb.gmra.mxu2 %vm5649_vm6, %v2614_v28  ;;  %vm5665_vm1 = vmmov %vm5655_vm13  ;;  %vm5666_vm6 = vcmask 441344  }
 0xb62   :  { %v2818_v6 = vpop.permute.xlu2 %2817 }
 0xb63   :  { %v2821_v42 = vsel %vm490_vm14, %v2818_v6, %v5242_v14 }
 0xbdd   :  { %v2635_v45 = vpop.f32.mrf.mxu1 }
 0xbde   :  { %v2658_v59 = vmul.f32 %v2656_v54, %v2635_v45 }
 0xbe0   :  { %v2666_v51 = vadd.f32 %v2664_v53, %v2658_v59 }
 0xbe2   :  { %v2668_v60 = vmax.f32 %v2666_v51, 0.0 }
 0xbe3   :  { %v2648_v61 = vpop.f32.mrf.mxu2 }
 0xbe4   :  { %v2659_v62 = vmul.f32 %v2656_v54, %v2648_v61  ;;  %2672 = vrot.lane.b32.xlu1 %v2668_v60, %s5613_s14 }
 0xbe5   :  { %v2637_v33 = vpop.f32.mrf.mxu1 }
 0xbe6   :  { %v2667_v0 = vadd.f32 %v2664_v53, %v2659_v62 }
 0xbe8   :  { %v2669_v1 = vmax.f32 %v2667_v0, 0.0 }
 0xbea   :  { %2674 = vrot.lane.b32.xlu2 %v2669_v1, %s5613_s14  ;;  %s5672_s14 = sld [smem:[#allocation33_spill]] }
 0xbeb   :  { %v2650_v3 = vpop.f32.mrf.mxu2 }
 0xbec   :  { %2851 = vrot.lane.b32.xlu1 %v2691_v2, %s5614_s12 }
 0xbf2   :  { %2853 = vrot.lane.b32.xlu2 %v5217_v58, %s5614_s12  ;;  %s5674_s12 = sld [smem:[#allocation42_spill]] }
 0xbf4   :  { %2733 = vrot.lane.b32.xlu1 %v2728_v39, %s5571_s25 }
 0xbfa   :  { %2767 = vrot.lane.b32.xlu2 %v2691_v2, %s5573_s0 }
 0xc44   :  { %v2675_v7 = vpop.permute.xlu2 %2674 }
 0xc45   :  { %2682 = vst.msk [vmem:[#allocation6 + $0x10] sm:$0x3f] %vm258_vm9, %v2675_v7  ;;  %vm5652_vm9 = vcmask 908288  }
 0xc4c   :  { %v5240_v13 = vpop.permute.xlu2 %2853 }
 0xc54   :  { %v2768_v25 = vpop.permute.xlu2 %2767 }
 0xc55   :  { %v2771_v47 = vsel %vm437_vm5, %v2768_v25, %v2770_v55 }
 0xc56   :  { %v2673_v11 = vpop.permute.xlu1 %2672 }
 0xc57   :  { %v2676_v12 = vsel %vm337_vm11, %v2673_v11, %v2675_v7  ;;  %2680 = vst.msk [vmem:[#allocation6] sm:$0x3f] %vm342_vm12, %v2673_v11  ;;  %v2998_v7 = vld [vmem:[%s5651_s13] sm:$0x7]  ;;  %v2816_v11 = vld [vmem:[#allocation6 + $0x10] sm:$0x3f] }
 0xc58   :  { %2681 = vst [vmem:[#allocation6 + $0x8] sm:$0x3f] %v2676_v12  ;;  %v2850_v12 = vld [vmem:[#allocation6 + $0x10] sm:$0x3f]  ;;  %vm5653_vm11 = vcmask 777216   ;;  %vm5654_vm12 = vcmask 1042432  }
 0xc5e   :  { %v2848_v16 = vld [vmem:[#allocation6] sm:$0x3f]  ;;  %v2852_v18 = vpop.permute.xlu1 %2851 }
 0xc5f   :  { %v2796_v20 = vld [vmem:[#allocation6] sm:$0x3f]  ;;  %v2859_v21 = vmul.f32 %v2852_v18, %v2848_v16  ;;  %v2685_v34 = vld [vmem:[#allocation6 + $0x8] sm:$0x3f]  ;;  %v2855_v41 = vsel %vm526_vm15, %v2852_v18, %v5240_v13  ;;  %v2827_v18 = vmul.f32 %v5242_v14, %v2816_v11  ;;  %vm5656_vm15 = vcmask 900096  }
 0xc60   :  { %2802 = vrot.lane.b32.xlu1 %v2796_v20, %s5553_s7  ;;  %v2814_v17 = vld [vmem:[#allocation6] sm:$0x3f]  ;;  %v2694_v36 = vmul.f32 %v5217_v58, %v2685_v34  ;;  %v2849_v40 = vld [vmem:[#allocation6 + $0x8] sm:$0x3f]  ;;  %v2861_v20 = vmul.f32 %v5240_v13, %v2850_v12  ;;  %v2798_v13 = vld [vmem:[#allocation6 + $0x10] sm:$0x3f] }
 0xc61   :  { %v2825_v22 = vmul.f32 %v2818_v6, %v2814_v17  ;;  %v2865_v24 = vrot.slane %v2859_v21, 4  ;;  %v2762_v15 = vld [vmem:[#allocation6] sm:$0x3f]  ;;  %v2860_v43 = vmul.f32 %v2855_v41, %v2849_v40  ;;  %v2904_v44 = vld [vmem:[#allocation6 + $0x8] sm:$0x3f]  ;;  %v2833_v21 = vrot.slane %v2827_v18, 2 }
 0xc62   :  { %v2903_v26 = vld [vmem:[#allocation6] sm:$0x3f]  ;;  %v2775_v31 = vmul.f32 %v2768_v25, %v2762_v15  ;;  %2696 = vst [vmem:[#allocation7 + $0x20] sm:$0x3f] %v2694_v36  ;;  %v2815_v46 = vld [vmem:[#allocation6 + $0x8] sm:$0x3f]  ;;  %v2915_v49 = vmul.f32 %v2910_v48, %v2904_v44 }
 0xc63   :  { %v2831_v10 = vrot.slane %v2825_v22, 2  ;;  %2868 = vrot.lane.b32.xlu2 %v2865_v24, %s5547_s16  ;;  %v2720_v29 = vld [vmem:[#allocation6] sm:$0x3f]  ;;  %v2914_v32 = vmul.f32 %v2907_v9, %v2903_v26  ;;  %v2826_v27 = vmul.f32 %v2821_v42, %v2815_v46  ;;  %v2866_v58 = vrot.slane %v2860_v43, 4  ;;  %v2763_v5 = vld [vmem:[#allocation6 + $0x8] sm:$0x3f] }
 0xc64   :  { %v2684_v50 = vld [vmem:[#allocation6] sm:$0x3f]  ;;  %v2739_v52 = vmul.f32 %v2732_v30, %v2720_v29  ;;  %v2781_v37 = vrot.slane %v2775_v31, 6  ;;  %v2776_v45 = vmul.f32 %v2771_v47, %v2763_v5  ;;  %v2883_v53 = vld [vmem:[#allocation6 + $0x8] sm:$0x3f]  ;;  %v2867_v17 = vrot.slane %v2861_v20, 4 }
 0xc65   :  { %2834 = vrot.lane.b32.xlu0 %v2831_v10, %s5552_s10  ;;  %v2693_v4 = vmul.f32 %v2691_v2, %v2684_v50  ;;  %v2882_v39 = vld [vmem:[#allocation6] sm:$0x3f]  ;;  %v2832_v54 = vrot.slane %v2826_v27, 2  ;;  %v2721_v51 = vld [vmem:[#allocation6 + $0x8] sm:$0x3f]  ;;  %v2889_v61 = vrot.slane %v2883_v53, 6 }
 0xc66   :  { %v2745_v19 = vrot.slane %v2739_v52, 4  ;;  %v2888_v35 = vrot.slane %v2882_v39, 6  ;;  %v2734_v28 = vpop.permute.xlu1 %2733  ;;  %v2782_v62 = vrot.slane %v2776_v45, 6  ;;  %v2697_v33 = vld [vmem:[#allocation6] sm:$0x3f] }
 0xc67   :  { %2695 = vst [vmem:[#allocation7 + $0x68] sm:$0x3f] %v2693_v4  ;;  %v2735_v59 = vsel %vm399_vm4, %v2732_v30, %v2734_v28  ;;  %v2797_v0 = vld [vmem:[#allocation6 + $0x8] sm:$0x3f]  ;;  %v2703_v1 = vrot.slane %v2697_v33, 2  ;;  %vm5657_vm4 = vmmov %vm5656_vm15 }
 0xc68   :  { %2920 = vrot.lane.b32.xlu1 %v2914_v32, %s5616_s4  ;;  %v2740_v60 = vmul.f32 %v2735_v59, %v2721_v51  ;;  %v2698_v2 = vld [vmem:[#allocation6 + $0x8] sm:$0x3f]  ;;  %v2990_v6 = vld [vmem:[%s5650_s23] sm:$0x7]  ;;  %v2905_v9 = vld [vmem:[#allocation6 + $0x10] sm:$0x3f] }
 0xc69   :  { %v2704_v3 = vrot.slane %v2698_v2, 2  ;;  %v2916_v16 = vmul.f32 %v5236_v8, %v2905_v9  ;;  %v2884_v22 = vld [vmem:[#allocation6 + $0x10] sm:$0x3f]  ;;  %v3341_v30 = vld [vmem:[#allocation16] sm:$0x3] }
 0xc6a   :  { %v2746_v63 = vrot.slane %v2740_v60, 4  ;;  %v2764_v24 = vld [vmem:[#allocation6 + $0x10] sm:$0x3f]  ;;  %v2890_v10 = vrot.slane %v2884_v22, 6  ;;  %v3348_v32 = vld [vmem:[#allocation18] sm:$0x3] }
 0xc6b   :  { %2784 = vrot.lane.b32.xlu2 %v2781_v37, %s5550_s15  ;;  %v2722_v25 = vld [vmem:[#allocation6 + $0x10] sm:$0x3f]  ;;  %v2777_v26 = vmul.f32 %v2770_v55, %v2764_v24 }
 0xc6c   :  { %v2741_v15 = vmul.f32 %v2734_v28, %v2722_v25  ;;  %v2699_v29 = vld [vmem:[#allocation6 + $0x10] sm:$0x3f] }
 0xc6d   :  { %2748 = vrot.lane.b32.xlu0 %v2745_v19, %s5546_s6  ;;  %v2783_v14 = vrot.slane %v2777_v26, 6  ;;  %v2705_v31 = vrot.slane %v2699_v29, 2 }
 0xc6e   :  { %v2747_v8 = vrot.slane %v2741_v15, 4 }
 0xc70   :  { %2891 = vrot.lane.b32.xlu1 %v2888_v35, %s5545_s18 }
 0xc73   :  { %2922 = vrot.lane.b32.xlu2 %v2915_v49, %s5616_s4 }
 0xc75   :  { %2870 = vrot.lane.b32.xlu0 %v2866_v58, %s5547_s16 }
 0xc78   :  { %2836 = vrot.lane.b32.xlu1 %v2832_v54, %s5552_s10 }
 0xc7b   :  { %2893 = vrot.lane.b32.xlu2 %v2889_v61, %s5545_s18 }
 0xc7d   :  { %2786 = vrot.lane.b32.xlu0 %v2782_v62, %s5550_s15 }
 0xc80   :  { %2750 = vrot.lane.b32.xlu1 %v2746_v63, %s5546_s6 }
 0xc83   :  { %2804 = vrot.lane.b32.xlu2 %v2797_v0, %s5553_s7 }
 0xc85   :  { %2706 = vrot.lane.b32.xlu0 %v2703_v1, %s5551_s28 }
 0xc88   :  { %2708 = vrot.lane.b32.xlu1 %v2704_v3, %s5551_s28 }
 0xc8b   :  { %2993 = vperm.xlu2 %4236, %v2990_v6  }
 0xc8d   :  { %3001 = vperm.xlu0 %4234, %v2998_v7  }
 0xc90   :  { %2924 = vrot.lane.b32.xlu1 %v2916_v16, %s5616_s4 }
 0xc93   :  { %2838 = vrot.lane.b32.xlu2 %v2833_v21, %s5552_s10 }
 0xc95   :  { %2872 = vrot.lane.b32.xlu0 %v2867_v17, %s5547_s16  ;;  %s5662_s16 = sld [smem:[#allocation43_spill]] }
 0xc98   :  { %2895 = vrot.lane.b32.xlu1 %v2890_v10, %s5545_s18  ;;  %s5663_s18 = sld [smem:[#allocation37_spill]] }
 0xc9b   :  { %2752 = vrot.lane.b32.xlu2 %v2747_v8, %s5546_s6  ;;  %v4150_v21 = vld [vmem:[%s5662_s16 + $0x38] sm:$0xff]  ;;  %v4149_v15 = vld [vmem:[%s5662_s16 + $0x30] sm:$0xff] }
 0xc9d   :  { %2788 = vrot.lane.b32.xlu0 %v2783_v14, %s5550_s15 }
 0xc9e   :  { %v2932_v24 = vld [vmem:[%s5663_s18] sm:$0x3] }
 0xca0   :  { %2806 = vrot.lane.b32.xlu1 %v2798_v13, %s5553_s7  ;;  %v4148_v13 = vld [vmem:[%s5662_s16 + $0x28] sm:$0xff] }
 0xca3   :  { %2710 = vrot.lane.b32.xlu2 %v2705_v31, %s5551_s28 }
 0xca5   :  { %3344 = vperm.xlu0 %4234, %v3341_v30  }
 0xca8   :  { %3351 = vperm.xlu1 %4235, %v3348_v32   ;;  %v4147_v32 = vld [vmem:[%s5662_s16 + $0x20] sm:$0xff] }
 0xcbd   :  { %v2869_v50 = vpop.permute.xlu2 %2868 }
 0xcc5   :  { %v2785_v52 = vpop.permute.xlu2 %2784 }
 0xccd   :  { %v2923_v4 = vpop.permute.xlu2 %2922 }
 0xcd2   :  { %v2803_v34 = vpop.permute.xlu1 %2802 }
 0xcd5   :  { %v5282_v36 = vpop.permute.xlu2 %2893 }
 0xcd7   :  { %v2835_v37 = vpop.permute.xlu0 %2834 }
 0xcda   :  { %v2921_v19 = vpop.permute.xlu1 %2920 }
 0xcdb   :  { %v2926_v39 = vsel %vm601_vm10, %v2921_v19, %v2923_v4  ;;  %v4145_v19 = vld [vmem:[%s5662_s16 + $0x10] sm:$0xff] }
 0xcdc   :  { %2930 = vst [vmem:[#allocation7 + $0x58] sm:$0x3f] %v2926_v39 }
 0xcdd   :  { %v5285_v40 = vpop.permute.xlu2 %2804 }
 0xcde   :  { %v2808_v35 = vsel %vm5652_vm9, %v2803_v34, %v5285_v40  ;;  %vm5668_vm9 = vmmov %vm5654_vm12 }
 0xcdf   :  { %v2749_v41 = vpop.permute.xlu0 %2748  ;;  %2812 = vst [vmem:[#allocation7 + $0x10] sm:$0x3f] %v2808_v35 }
 0xce2   :  { %v2892_v42 = vpop.permute.xlu1 %2891 }
 0xce3   :  { %v2897_v43 = vsel %vm5653_vm11, %v2892_v42, %v5282_v36  ;;  %v2945_v44 = vld [vmem:[#allocation7 + $0x58] sm:$0x3f]  ;;  %v4144_v42 = vld [vmem:[%s5662_s16 + $0x8] sm:$0xff] }
 0xce4   :  { %2901 = vst [vmem:[#allocation7 + $0x60] sm:$0xfc] %v2897_v43  ;;  %v2953_v46 = vpack.c.bf16 %v2945_v44, %v2945_v44 }
 0xce5   :  { %v5291_v48 = vpop.permute.xlu2 %2993 }
 0xce6   :  { %v2959_v49 = vsel %vm5654_vm12, %v2953_v46, 0  ;;  %vm5670_vm12 = vcmask 908288  }
 0xce7   :  { %v2871_v27 = vpop.permute.xlu0 %2870  ;;  %2968 = vmatpush.bf16.msrb.mxu3 %v2959_v49  ;;  %v4143_v49 = vld [vmem:[%s5662_s16] sm:$0xff] }
 0xce8   :  { %v2874_v55 = vsel %vm5655_vm13, %v2869_v50, %v2871_v27  ;;  %vm5671_vm13 = vmmov %vm5666_vm6 }
 0xce9   :  { %2878 = vst [vmem:[#allocation7 + $0x40] sm:$0xf0] %v2874_v55 }
 0xcea   :  { %2880 = vst [vmem:[#allocation7 + $0x60] sm:$0x3] %v2874_v55  ;;  %v2837_v58 = vpop.permute.xlu1 %2836  ;;  %v4157_v55 = vld [vmem:[%s5662_s16 + $0x70] sm:$0xff] }
 0xceb   :  { %v2840_v5 = vsel %vm5656_vm15, %v2835_v37, %v2837_v58  ;;  %v4146_v37 = vld [vmem:[%s5662_s16 + $0x18] sm:$0xff]  ;;  %vm5673_vm15 = vcmask 1041408  }
 0xcec   :  { %2844 = vst [vmem:[#allocation7 + $0x10] sm:$0xc0] %v2840_v5 }
 0xced   :  { %2846 = vst [vmem:[#allocation7 + $0x40] sm:$0xf] %v2840_v5  ;;  %v2839_v47 = vpop.permute.xlu2 %2838  ;;  %v4156_v5 = vld [vmem:[%s5662_s16 + $0x68] sm:$0xff] }
 0xcee   :  { %v2841_v28 = vsel %vm5657_vm4, %v2837_v58, %v2839_v47  ;;  %v4133_v58 = vld [vmem:[#allocation19 + $0x30] sm:$0xff]  ;;  %v4132_v47 = vld [vmem:[#allocation19 + $0x28] sm:$0xff]  ;;  %vm5675_vm4 = vcmask 31744  }
 0xcef   :  { %v2787_v54 = vpop.permute.xlu0 %2786  ;;  %2845 = vst [vmem:[#allocation7 + $0x30] sm:$0xc0] %v2841_v28 }
 0xcf0   :  { %v2790_v45 = vsel %vm5658_vm8, %v2785_v52, %v2787_v54  ;;  %2847 = vst [vmem:[#allocation7 + $0x28] sm:$0xf] %v2841_v28  ;;  %v4155_v28 = vld [vmem:[%s5662_s16 + $0x60] sm:$0xff] }
 0xcf1   :  { %2794 = vst [vmem:[#allocation7 + $0x48] sm:$0xfc] %v2790_v45  ;;  %v2943_v60 = vld [vmem:[#allocation7 + $0x60] sm:$0xff] }
 0xcf2   :  { %v2751_v59 = vpop.permute.xlu1 %2750  ;;  %v4154_v45 = vld [vmem:[%s5662_s16 + $0x58] sm:$0xff] }
 0xcf3   :  { %v2754_v53 = vsel %vm5659_vm3, %v2749_v41, %v2751_v59  ;;  %v2939_v3 = vld [vmem:[#allocation7 + $0x10] sm:$0xff]  ;;  %vm5677_vm3 = vmmov %vm5675_vm4 }
 0xcf4   :  { %2758 = vst [vmem:[#allocation7 + $0x38] sm:$0xf0] %v2754_v53  ;;  %v2941_v51 = vld [vmem:[#allocation7 + $0x40] sm:$0xff] }
 0xcf5   :  { %2760 = vst [vmem:[#allocation7 + $0x48] sm:$0x3] %v2754_v53  ;;  %v2951_v61 = vpack.c.bf16 %v2943_v60, %v2941_v51  ;;  %v2753_v62 = vpop.permute.xlu2 %2752  ;;  %v4153_v53 = vld [vmem:[%s5662_s16 + $0x50] sm:$0xff]  ;;  %v4129_v51 = vld [vmem:[#allocation19 + $0x10] sm:$0xff] }
 0xcf6   :  { %v2755_v33 = vsel %vm5660_vm2, %v2751_v59, %v2753_v62  ;;  %v4130_v59 = vld [vmem:[#allocation19 + $0x18] sm:$0xff]  ;;  %v4128_v62 = vld [vmem:[#allocation19 + $0x8] sm:$0xff]  ;;  %vm5678_vm2 = vcmask 590920  }
 0xcf7   :  { %v2707_v63 = vpop.permute.xlu0 %2706  ;;  %2969 = vmatpush.bf16.msrb.mxu3 %v2951_v61  ;;  %2759 = vst [vmem:[#allocation7 + $0x18] sm:$0xf0] %v2755_v33  ;;  %v4151_v60 = vld [vmem:[%s5662_s16 + $0x40] sm:$0xff] }
 0xcf8   :  { %2761 = vst [vmem:[#allocation7 + $0x50] sm:$0x3] %v2755_v33  ;;  %v4142_v61 = vld [vmem:[#allocation19 + $0x78] sm:$0xff]  ;;  %v4127_v33 = vld [vmem:[#allocation19] sm:$0xff] }
 0xcf9   :  { %3151 = vmatpush.bf16.msra.mxu2 %v4142_v61 }
 0xcfa   :  { %v2709_v0 = vpop.permute.xlu1 %2708 }
 0xcfb   :  { %v2712_v1 = vsel %vm5661_vm7, %v2707_v63, %v2709_v0  ;;  %v4141_v63 = vld [vmem:[#allocation19 + $0x70] sm:$0xff]  ;;  %vm5679_vm7 = vcmask 517120  }
 0xcfc   :  { %2716 = vst [vmem:[#allocation7 + $0x68] sm:$0xc0] %v2712_v1  ;;  %v2937_v2 = vld [vmem:[#allocation7 + $0x48] sm:$0xff] }
 0xcfd   :  { %2718 = vst [vmem:[#allocation7 + $0x38] sm:$0xf] %v2712_v1  ;;  %v2949_v6 = vpack.c.bf16 %v2939_v3, %v2937_v2  ;;  %v2711_v7 = vpop.permute.xlu2 %2710  ;;  %3152 = vmatpush.bf16.msra.mxu2 %v4141_v63  ;;  %v4139_v1 = vld [vmem:[#allocation19 + $0x60] sm:$0xff]  ;;  %v4138_v2 = vld [vmem:[#allocation19 + $0x58] sm:$0xff]  ;;  %v4137_v3 = vld [vmem:[#allocation19 + $0x50] sm:$0xff] }
 0xcfe   :  { %v2713_v11 = vsel %vm5664_vm0, %v2709_v0, %v2711_v7  ;;  %v4140_v0 = vld [vmem:[#allocation19 + $0x68] sm:$0xff]  ;;  %vm5683_vm0 = vmmov %vm5679_vm7 }
 0xcff   :  { %v5301_v9 = vpop.permute.xlu0 %3001  ;;  %2970 = vmatpush.bf16.msrb.mxu3 %v2949_v6  ;;  %2717 = vst [vmem:[#allocation7 + $0x20] sm:$0xc0] %v2713_v11  ;;  %v3930_v6 = vld [vmem:[%s5672_s14 + $0x4] sm:$0xf] }
 0xd00   :  { %2719 = vst [vmem:[#allocation7 + $0x18] sm:$0xf] %v2713_v11  ;;  %v3321_v7 = vpack.c.bf16 %v3930_v6, %v3930_v6 }
 0xd01   :  { %3153 = vmatpush.bf16.msra.mxu2 %v4140_v0 }
 0xd02   :  { %v2925_v12 = vpop.permute.xlu1 %2924  ;;  %v3326_v11 = vsel %vm5673_vm15, %v3321_v7, 0 }
 0xd03   :  { %v2927_v16 = vsel %vm601_vm10, %v2923_v4, %v2925_v12  ;;  %v2933_v18 = vld [vmem:[#allocation7 + $0x68] sm:$0xff]  ;;  %vm5667_vm10 = vmmov %vm5653_vm11 }
 0xd04   :  { %2931 = vst [vmem:[#allocation7] sm:$0x3f] %v2927_v16  ;;  %v2935_v20 = vld [vmem:[#allocation7 + $0x38] sm:$0xff]  ;;  %vm5669_vm11 = vmmov %vm5658_vm8 }
 0xd05   :  { %v2947_v17 = vpack.c.bf16 %v2935_v20, %v2933_v18  ;;  %3154 = vmatpush.bf16.msra.mxu2 %v4139_v1  ;;  %v4135_v16 = vld [vmem:[#allocation19 + $0x40] sm:$0xff]  ;;  %vm5676_vm8 = vmmov %vm5673_vm15  ;;  %v3462_v1 = vld [vmem:[#allocation12] sm:$0x1] }
 0xd06   :  { %v2934_v43 = vld [vmem:[#allocation7 + $0x20] sm:$0xff]  ;;  %vm5691_vm15 = vmmov %vm5683_vm0 }
 0xd07   :  { %v2873_v22 = vpop.permute.xlu0 %2872  ;;  %2971 = vmatpush.bf16.msrb.mxu3 %v2947_v17  ;;  %v2936_v44 = vld [vmem:[#allocation7 + $0x18] sm:$0xff] }
 0xd08   :  { %v2875_v25 = vsel %vm5665_vm1, %v2871_v27, %v2873_v22  ;;  %v2948_v46 = vpack.c.bf16 %v2936_v44, %v2934_v43  ;;  %v4134_v27 = vld [vmem:[#allocation19 + $0x38] sm:$0xff]  ;;  %v3505_v43 = vld [vmem:[#allocation21] sm:$0x3]  ;;  %vm5684_vm1 = vmmov %vm5683_vm0 }
 0xd09   :  { %2879 = vst [vmem:[#allocation7 + $0x28] sm:$0xf0] %v2875_v25  ;;  %3138 = vmatpush.bf16.msra.mxu1 %v4134_v27  ;;  %3155 = vmatpush.bf16.msra.mxu2 %v4138_v2 }
 0xd0a   :  { %2881 = vst [vmem:[#allocation7 + $0x8] sm:$0x3] %v2875_v25  ;;  %3933 = vmatmul.msk.bf16.vlgmr.msrb.gmra.mxu3 %vm5666_vm6, %v2932_v24  ;;  %v2896_v10 = vpop.permute.xlu1 %2895  ;;  %vm5685_vm6 = vcmask 1040384  }
 0xd0b   :  { %3292 = vmatpush.bf16.msra.mxu3 %v4150_v21  ;;  %v2898_v26 = vsel %vm5667_vm10, %v5282_v36, %v2896_v10  ;;  %v2946_v8 = vld [vmem:[#allocation7] sm:$0x3f]  ;;  %vm5686_vm10 = vmmov %vm5683_vm0 }
 0xd0c   :  { %2902 = vst [vmem:[#allocation7 + $0x8] sm:$0xfc] %v2898_v26  ;;  %v2954_v14 = vpack.c.bf16 %v2946_v8, %v2946_v8  ;;  %v3361_v8 = vld [vmem:[%s5674_s12] sm:$0x7] }
 0xd0d   :  { %3139 = vmatpush.bf16.msra.mxu1 %v4133_v58  ;;  %3156 = vmatpush.bf16.msra.mxu2 %v4137_v3 }
 0xd0e   :  { %v2962_v29 = vsel %vm5668_vm9, %v2954_v14, 0  ;;  %vm5687_vm9 = vmmov %vm5683_vm0 }
 0xd0f   :  { %3293 = vmatpush.bf16.msra.mxu3 %v4149_v15  ;;  %v2789_v30 = vpop.permute.xlu0 %2788  ;;  %2981 = vmatpush.bf16.msra.mxu0 %v2962_v29  ;;  %v3320_v15 = vld [vmem:[#allocation14] sm:$0x1] }
 0xd10   :  { %v2791_v31 = vsel %vm5669_vm11, %v2787_v54, %v2789_v30  ;;  %v2942_v4 = vld [vmem:[#allocation7 + $0x28] sm:$0xff]  ;;  %v4131_v54 = vld [vmem:[#allocation19 + $0x20] sm:$0xff]  ;;  %v3363_v30 = vperm.slane %v3361_v8, 0  ;;  %vm5688_vm11 = vmmov %vm5683_vm0 }
 0xd11   :  { %2795 = vst [vmem:[#allocation7 + $0x50] sm:$0xfc] %v2791_v31  ;;  %3140 = vmatpush.bf16.msra.mxu1 %v4132_v47 }
 0xd12   :  { %v2807_v50 = vpop.permute.xlu1 %2806 }
 0xd13   :  { %3294 = vmatpush.bf16.msra.mxu3 %v4148_v13  ;;  %v2809_v52 = vsel %vm5670_vm12, %v5285_v40, %v2807_v50  ;;  %v2944_v34 = vld [vmem:[#allocation7 + $0x8] sm:$0xff]  ;;  %v4158_v40 = vld [vmem:[%s5662_s16 + $0x78] sm:$0xff]  ;;  %v3373_v13 = vperm.slane %v3361_v8, 2  ;;  %vm5689_vm12 = vmmov %vm5683_vm0 }
 0xd14   :  { %2813 = vst [vmem:[#allocation7 + $0x30] sm:$0x3f] %v2809_v52  ;;  %v2952_v36 = vpack.c.bf16 %v2944_v34, %v2942_v4 }
 0xd15   :  { %3141 = vmatpush.bf16.msra.mxu1 %v4131_v54  ;;  %3428 = vrot.lane.b32.xlu0 %v3373_v13, %s5572_s27 }
 0xd16   :  { %2982 = vmatpush.bf16.msra.mxu0 %v2952_v36  ;;  %3375 = vrot.lane.b32.xlu1 %v3373_v13, %s5571_s25  ;;  %s5680_s25 = sld [smem:[#allocation49_spill]] }
 0xd17   :  { %3295 = vmatpush.bf16.msra.mxu3 %v4147_v32  ;;  %v3345_v31 = vpop.permute.xlu0 %3344 }
 0xd18   :  { %v2938_v39 = vld [vmem:[#allocation7 + $0x50] sm:$0xff] }
 0xd19   :  { %3142 = vmatpush.bf16.msra.mxu1 %v4130_v59 }
 0xd1a   :  { %v3352_v52 = vpop.permute.xlu1 %3351 }
 0xd1b   :  { %3296 = vmatpush.bf16.msra.mxu3 %v4146_v37  ;;  %v2940_v41 = vld [vmem:[#allocation7 + $0x30] sm:$0xff] }
 0xd1c   :  { %v2950_v35 = vpack.c.bf16 %v2940_v41, %v2938_v39  ;;  %v4065_v41 = vld [vmem:[%s5593_s24 + $0x4] sm:$0xf] }
 0xd1d   :  { %3143 = vmatpush.bf16.msra.mxu1 %v4129_v51  ;;  %3402 = vrot.lane.b32.xlu0 %v3373_v13, %s5574_s2 }
 0xd1e   :  { %2983 = vmatpush.bf16.msra.mxu0 %v2950_v35  ;;  %3412 = vrot.lane.b32.xlu1 %v3363_v30, %s5573_s0  ;;  %v3506_v35 = vpack.c.bf16 %v4065_v41, %v4065_v41 }
 0xd1f   :  { %3297 = vmatpush.bf16.msra.mxu3 %v4145_v19 }
 0xd21   :  { %3144 = vmatpush.bf16.msra.mxu1 %v4128_v62 }
 0xd22   :  { %2984 = vmatpush.bf16.msra.mxu0 %v2948_v46 }
 0xd23   :  { %3298 = vmatpush.bf16.msra.mxu3 %v4144_v42  ;;  %v3511_v42 = vsel %vm5676_vm8, %v3506_v35, 0  ;;  %vm3489_vm8 = vcmask 1043968  }
 0xd25   :  { %3934 = vmatmul.msk.bf16.vlgmr.msra.gmra.mxu0 %vm5671_vm13, %v2932_v24  ;;  %3145 = vmatpush.bf16.msra.mxu1 %v4127_v33  ;;  %vm5690_vm13 = vmmov %vm5683_vm0 }
 0xd26   :  { %3306 = vmatpush.bf16.msrb.mxu0 %v4158_v40 }
 0xd27   :  { %3299 = vmatpush.bf16.msra.mxu3 %v4143_v49 }
 0xd29   :  { %3335 = vmatpush.bf16.msrb.mxu1 %v3326_v11 }
 0xd2a   :  { %3300 = vmatmul.bf16.vlgmr.msra.gmra.mxu3 %v5212_v56  ;;  %3307 = vmatpush.bf16.msrb.mxu0 %v4157_v55  ;;  %v4152_v56 = vld [vmem:[%s5662_s16 + $0x48] sm:$0xff] }
 0xd2b   :  { %3520 = vmatpush.bf16.msrb.mxu3 %v3511_v42 }
 0xd2e   :  { %3308 = vmatpush.bf16.msrb.mxu0 %v4156_v5 }
 0xd32   :  { %3309 = vmatpush.bf16.msrb.mxu0 %v4155_v28 }
 0xd36   :  { %3310 = vmatpush.bf16.msrb.mxu0 %v4154_v45 }
 0xd3a   :  { %3311 = vmatpush.bf16.msrb.mxu0 %v4153_v53  ;;  %4066 = vmatmul.msk.bf16.vlgmr.msrb.gmra.mxu3 %vm5677_vm3, %v3505_v43  ;;  %vm3501_vm3 = vcmask 1042944  }
 0xd3e   :  { %3312 = vmatpush.bf16.msrb.mxu0 %v4152_v56 }
 0xd42   :  { %3313 = vmatpush.bf16.msrb.mxu0 %v4151_v60 }
 0xd45   :  { %3314 = vmatmul.bf16.vlgmr.msrb.gmra.mxu0 %v5215_v57  ;;  %v4136_v57 = vld [vmem:[#allocation19 + $0x48] sm:$0xff] }
 0xd46   :  { %3157 = vmatpush.bf16.msra.mxu2 %v4136_v57  ;;  %v3470_v57 = vld [vmem:[#allocation13] sm:$0x1] }
 0xd4a   :  { %3158 = vmatpush.bf16.msra.mxu2 %v4135_v16  ;;  %v3600_v16 = vld [vmem:[%s5680_s25] sm:$0xff] }
 0xd87   :  { %v3429_v40 = vpop.permute.xlu0 %3428 }
 0xd88   :  { %v3376_v46 = vpop.permute.xlu1 %3375 }
 0xd8d   :  { %v2973_v12 = vpop.f32.mrf.mxu3 }
 0xd8e   :  { %v2996_v18 = vmul.f32 %v5291_v48, %v2973_v12  ;;  %v3526_v12 = vld [vmem:[%s5601_s5] sm:$0xf] }
 0xd8f   :  { %v3403_v54 = vpop.permute.xlu0 %3402 }
 0xd90   :  { %v3004_v20 = vadd.f32 %v5301_v9, %v2996_v18  ;;  %v3413_v63 = vpop.permute.xlu1 %3412 }
 0xd92   :  { %v3006_v21 = vmax.f32 %v3004_v20, 0.0 }
 0xd94   :  { %v3008_v17 = vpack.c.bf16 %v3006_v21, %v3006_v21 }
 0xd95   :  { %v2975_v22 = vpop.f32.mrf.mxu3 }
 0xd96   :  { %3146 = vmatmul.bf16.vlgmr.msra.gmra.mxu1 %v3008_v17 }
 0xda2   :  { %v2986_v24 = vpop.f32.mrf.mxu0 }
 0xda3   :  { %v2997_v25 = vmul.f32 %v5291_v48, %v2986_v24 }
 0xda5   :  { %v3005_v10 = vadd.f32 %v5301_v9, %v2997_v25 }
 0xda6   :  { %4063 = vmatmul.msk.bf16.vlgmr.msrb.gmra.mxu1 %vm5675_vm4, %v3320_v15  ;;  %vm3487_vm4 = vcmask 1048064  }
 0xda7   :  { %v3007_v26 = vmax.f32 %v3005_v10, 0.0 }
 0xda9   :  { %v3009_v14 = vpack.c.bf16 %v3007_v26, %v3007_v26 }
 0xdaa   :  { %v2988_v29 = vpop.f32.mrf.mxu0 }
 0xdab   :  { %3159 = vmatmul.bf16.vlgmr.msra.gmra.mxu2 %v3009_v14 }
 0xdad   :  { %v3301_v62 = vpop.f32.mrf.mxu3 }
 0xdb5   :  { %v3303_v7 = vpop.f32.mrf.mxu3 }
 0xdbd   :  { %v3522_v8 = vpop.f32.mrf.mxu3 }
 0xdc2   :  { %v3315_v61 = vpop.f32.mrf.mxu0 }
 0xdc3   :  { %v3316_v6 = vadd.f32 %v3315_v61, %v3301_v62  ;;  %v1923_v62 = vld [vmem:[%s5680_s25 + $0x8] sm:$0x3] }
 0xdc5   :  { %v3524_v29 = vpop.f32.mrf.mxu3 }
 0xdca   :  { %v3317_v3 = vpop.f32.mrf.mxu0 }
 0xdcb   :  { %v3318_v11 = vadd.f32 %v3317_v3, %v3303_v7  ;;  %v4160_v3 = vld [vmem:[%s5619_s11] sm:$0x10]  ;;  %v4074_v7 = vld [vmem:[%s5622_s22] sm:$0xf] }
 0xe13   :  { %v3147_v48 = vpop.f32.mrf.mxu1 }
 0xe1b   :  { %v3149_v9 = vpop.f32.mrf.mxu1 }
 0xe23   :  { %v3337_v32 = vpop.f32.mrf.mxu1 }
 0xe24   :  { %v3347_v50 = vmul.f32 %v3345_v31, %v3337_v32 }
 0xe26   :  { %v3354_v4 = vadd.f32 %v3352_v52, %v3347_v50 }
 0xe28   :  { %v3355_v34 = vmax.f32 %v3354_v4, 0.0  ;;  %v3437_v4 = vld [vmem:[%s5587_s19] sm:$0x1] }
 0xe2a   :  { %3357 = vrot.lane.b32.xlu2 %v3355_v34, %s5575_s26  ;;  %s5681_s26 = sld [smem:[#allocation50_spill]] }
 0xe2b   :  { %v3339_v36 = vpop.f32.mrf.mxu1 }
 0xe2e   :  { %v3160_v37 = vpop.f32.mrf.mxu2 }
 0xe2f   :  { %v3161_v19 = vadd.f32 %v3160_v37, %v3147_v48 }
 0xe30   :  { %v3615_v18 = vld [vmem:[%s5681_s26 + $0x8] sm:$0x3]  ;;  %v5367_v20 = vld [vmem:[%s5681_s26] sm:$0xff] }
 0xe32   :  { %3386 = vrot.lane.b32.xlu2 %v3363_v30, %s5576_s20 }
 0xe36   :  { %v3162_v39 = vpop.f32.mrf.mxu2 }
 0xe84   :  { %v3358_v44 = vpop.permute.xlu2 %3357 }
 0xe85   :  { %3360 = vst.msk [vmem:[#allocation8] sm:$0x3] %vm5678_vm2, %v3358_v44  ;;  %v3533_v44 = vld [vmem:[%s5602_s9] sm:$0xf]  ;;  %vm5693_vm2 = vcmask 1041408  }
 0xe8c   :  { %v3366_v49 = vld [vmem:[#allocation8] sm:$0x3]  ;;  %v3387_v53 = vpop.permute.xlu2 %3386 }
 0xe8d   :  { %v3427_v27 = vld [vmem:[#allocation8] sm:$0x3]  ;;  %3368 = vrot.lane.b32.xlu0 %v3366_v49, %s5551_s28 }
 0xe8e   :  { %v3372_v55 = vld [vmem:[#allocation8] sm:$0x3]  ;;  %v3431_v58 = vmul.f32 %v3429_v40, %v3427_v27  ;;  %v3601_v40 = vld [vmem:[%s5680_s25 + $0x8] sm:$0x3] }
 0xe8f   :  { %v3378_v5 = vmul.f32 %v3376_v46, %v3372_v55  ;;  %v3362_v47 = vld [vmem:[#allocation8] sm:$0x3]  ;;  %v1937_v46 = vld [vmem:[%s5681_s26 + $0x8] sm:$0x3] }
 0xe90   :  { %3433 = vrot.lane.b32.xlu2 %v3431_v58, %s5552_s10  ;;  %v3364_v28 = vmul.f32 %v3363_v30, %v3362_v47  ;;  %v3401_v45 = vld [vmem:[#allocation8] sm:$0x3] }
 0xe91   :  { %3380 = vrot.lane.b32.xlu1 %v3378_v5, %s5546_s6  ;;  %v3384_v59 = vld [vmem:[#allocation8] sm:$0x3]  ;;  %v3405_v56 = vmul.f32 %v3403_v54, %v3401_v45 }
 0xe92   :  { %3365 = vst.msk [vmem:[#allocation9] sm:$0x3] %vm5679_vm7, %v3364_v28  ;;  %v3395_v51 = vld [vmem:[#allocation8] sm:$0x3]  ;;  %v3389_v60 = vmul.f32 %v3387_v53, %v3384_v59  ;;  %vm5694_vm7 = vcmask 523264  }
 0xe93   :  { %v3411_v33 = vld [vmem:[#allocation8] sm:$0x3] }
 0xe94   :  { %v3421_v0 = vld [vmem:[#allocation8] sm:$0x3]  ;;  %v3415_v2 = vmul.f32 %v3413_v63, %v3411_v33 }
 0xe95   :  { %3397 = vrot.lane.b32.xlu0 %v3395_v51, %s5579_s29 }
 0xe98   :  { %3391 = vrot.lane.b32.xlu2 %v3389_v60, %s5580_s30 }
 0xe99   :  { %3407 = vrot.lane.b32.xlu1 %v3405_v56, %s5581_s3  ;;  %s5682_s3 = smov 64  }
 0xe9d   :  { %3423 = vrot.lane.b32.xlu0 %v3421_v0, %s5553_s7  ;;  %s5692_s7 = sld [smem:[#allocation51_spill]] }
 0xea0   :  { %3417 = vrot.lane.b32.xlu2 %v3415_v2, %s5550_s15  ;;  %v4069_v2 = vld [vmem:[%s5619_s11] sm:$0xf] }
 0xea1   :  { %3465 = vperm.xlu1 %4235, %v3462_v1  }
 0xea5   :  { %3481 = vrot.lane.b32.xlu0 %v3316_v6, %s5682_s3  ;;  %v4070_v6 = vor.u32 %v4160_v3, %v4069_v2 }
 0xea8   :  { %3473 = vperm.xlu2 %4236, %v3470_v57   ;;  %v4159_v57 = vld [vmem:[%s5622_s22] sm:$0x10] }
 0xea9   :  { %3483 = vrot.lane.b32.xlu1 %v3318_v11, %s5682_s3 }
 0xead   :  { %3498 = vrot.lane.b32.xlu0 %v3161_v19, %s5682_s3 }
 0xeb1   :  { %3529 = vperm.xlu1 %4235, %v3526_v12   ;;  %v4075_v12 = vor.u32 %v4159_v57, %v4074_v7 }
 0xeb9   :  { %3604 = vperm.xlu1 %4235, %v3600_v16  }
 0xec1   :  { %3623 = vperm.xlu1 %4235, %v3615_v18  }
 0xec9   :  { %1940 = vperm.xlu1 %4235, %v5367_v20  }
 0xeea   :  { %v3434_v21 = vpop.permute.xlu2 %3433 }
 0xeeb   :  { %3436 = vst.msk [vmem:[#allocation9 + $0x10] sm:$0x3] %vm5683_vm0, %v3434_v21  ;;  %vm5695_vm0 = vcmask 31744  }
 0xef2   :  { %v3392_v17 = vpop.permute.xlu2 %3391  ;;  %v3440_v22 = vld [vmem:[#allocation9 + $0x10] sm:$0x3] }
 0xef3   :  { %3394 = vst.msk [vmem:[#allocation9 + $0x6] sm:$0x3] %vm5684_vm1, %v3392_v17  ;;  %v3442_v24 = vpack.c.bf16 %v3440_v22, %v3440_v22 }
 0xef5   :  { %v3447_v25 = vsel %vm5685_vm6, %v3442_v24, 0 }
 0xef6   :  { %3455 = vmatpush.bf16.msrb.mxu2 %v3447_v25 }
 0xefa   :  { %v3418_v15 = vpop.permute.xlu2 %3417 }
 0xefb   :  { %3420 = vst.msk [vmem:[#allocation9 + $0xc] sm:$0x3] %vm5686_vm10, %v3418_v15 }
 0xeff   :  { %v3369_v10 = vpop.permute.xlu0 %3368 }
 0xf00   :  { %3371 = vst.msk [vmem:[#allocation9 + $0x2] sm:$0x3] %vm5687_vm9, %v3369_v10 }
 0xf02   :  { %v3474_v36 = vpop.permute.xlu2 %3473 }
 0xf03   :  { %v3381_v26 = vpop.permute.xlu1 %3380  ;;  %v3476_v39 = vperm.slane %v3474_v36, 0 }
 0xf04   :  { %3383 = vst.msk [vmem:[#allocation9 + $0x4] sm:$0x3] %vm5688_vm11, %v3381_v26 }
 0xf07   :  { %v3398_v14 = vpop.permute.xlu0 %3397 }
 0xf08   :  { %3400 = vst.msk [vmem:[#allocation9 + $0x8] sm:$0x3] %vm5689_vm12, %v3398_v14 }
 0xf0b   :  { %v3408_v13 = vpop.permute.xlu1 %3407  ;;  %v3438_v31 = vld [vmem:[#allocation9] sm:$0xff] }
 0xf0c   :  { %3410 = vst.msk [vmem:[#allocation9 + $0xa] sm:$0x3] %vm5690_vm13, %v3408_v13 }
 0xf0f   :  { %v3424_v30 = vpop.permute.xlu0 %3423 }
 0xf10   :  { %3426 = vst.msk [vmem:[#allocation9 + $0xe] sm:$0x3] %vm5691_vm15, %v3424_v30 }
 0xf13   :  { %v3466_v48 = vpop.permute.xlu1 %3465 }
 0xf14   :  { %v3468_v37 = vperm.slane %v3466_v48, 0 }
 0xf17   :  { %v3482_v9 = vpop.permute.xlu0 %3481  ;;  %v3439_v32 = vld [vmem:[#allocation9 + $0x8] sm:$0xff] }
 0xf18   :  { %3488 = vst.msk [vmem:[%s4642_s8] sm:$0xff] %vm3487_vm4, %v3482_v9  ;;  %v3441_v50 = vpack.c.bf16 %v3439_v32, %v3438_v31 }
 0xf1a   :  { %3456 = vmatpush.bf16.msrb.mxu2 %v3441_v50 }
 0xf1b   :  { %v3484_v52 = vpop.permute.xlu1 %3483 }
 0xf1c   :  { %3490 = vst.msk [vmem:[%s4642_s8 + $0x8] sm:$0xf] %vm3489_vm8, %v3484_v52 }
 0xf1d   :  { %4064 = vmatmul.msk.bf16.vlgmr.msrb.gmra.mxu2 %vm490_vm14, %v3437_v4  ;;  %vm3495_vm14 = vcmask 1040896  }
 0xf1f   :  { %v3499_v34 = vpop.permute.xlu0 %3498  ;;  %v3541_v47 = vld [vmem:[%s4642_s8] sm:$0xff] }
 0xf20   :  { %3502 = vst.msk [vmem:[%s4642_s8 + $0xd] sm:$0x7] %vm3501_vm3, %v3499_v34 }
 0xf23   :  { %v3530_v49 = vpop.permute.xlu1 %3529 }
 0xf24   :  { %v3532_v58 = vmul.f32 %v3530_v49, %v3522_v8 }
 0xf2b   :  { %v3605_v55 = vpop.permute.xlu1 %3604 }
 0xf33   :  { %v3624_v56 = vpop.permute.xlu1 %3623 }
 0xf3b   :  { %v1941_v33 = vpop.permute.xlu1 %1940 }
 0xfa0   :  { %v3458_v19 = vpop.f32.mrf.mxu2 }
 0xfa1   :  { %v3469_v41 = vmul.f32 %v3468_v37, %v3458_v19 }
 0xfa3   :  { %v3477_v35 = vadd.f32 %v3476_v39, %v3469_v41 }
 0xfa5   :  { %v3478_v42 = vmax.f32 %v3477_v35, 0.0 }
 0xfa7   :  { %3492 = vrot.lane.b32.xlu2 %v3478_v42, %s5682_s3 }
 0xfa8   :  { %v3460_v43 = vpop.f32.mrf.mxu2 }
 0xfaf   :  { %3536 = vperm.xlu2 %4236, %v3533_v44  }
 0xfb7   :  { %3609 = vperm.xlu2 %4236, %v3601_v40  }
 0xfbf   :  { %1926 = vperm.xlu2 %4236, %v3600_v16  }
 0xfc7   :  { %1945 = vperm.xlu2 %4236, %v1937_v46  }
0x1001   :  { %v3493_v27 = vpop.permute.xlu2 %3492 }
0x1002   :  { %3496 = vst.msk [vmem:[%s4642_s8 + $0xc] sm:$0x1] %vm3495_vm14, %v3493_v27 }
0x1009   :  { %v3537_v5 = vpop.permute.xlu2 %3536  ;;  %v3542_v28 = vld [vmem:[%s4642_s8 + $0x8] sm:$0xff] }
0x100a   :  { %v3539_v54 = vadd.f32 %v3537_v5, %v3532_v58  ;;  %v3545_v45 = vpack.c.bf16 %v3542_v28, %v3541_v47 }
0x100c   :  { %v3540_v59 = vmax.f32 %v3539_v54, 0.0  ;;  %3580 = vrot.lane.b32.xlu0 %v3545_v45, %s5682_s3 }
0x100e   :  { %v3548_v53 = vpack.c.bf16 %v3540_v59, %v3540_v59 }
0x1010   :  { %v3558_v51 = vsel %vm5693_vm2, %v3548_v53, 0 }
0x1011   :  { %v3610_v60 = vpop.permute.xlu2 %3609  ;;  %3567 = vmatpush.bf16.msra.mxu0 %v3558_v51 }
0x1014   :  { %3618 = vperm.xlu0 %4234, %v5367_v20   ;;  %4071 = vmatmul.msk.bf16.vlgmr.msra.gmra.mxu0 %vm5695_vm0, %v4070_v6 }
0x1019   :  { %v1927_v61 = vpop.permute.xlu2 %1926 }
0x101a   :  { %v1934_v63 = vmul.f32 %v1927_v61, %v5193_v38 }
0x101c   :  { %v1948_v0 = vadd.f32 %v1941_v33, %v1934_v63  ;;  %1931 = vperm.xlu0 %4234, %v1923_v62  }
0x101e   :  { %v1950_v1 = vmax.f32 %v1948_v0, 0.0 }
0x1020   :  { %1952 = vst.msk [vmem:[%s5692_s7] sm:$0xff] %vm5694_vm7, %v1950_v1 }
0x1021   :  { %v1946_v20 = vpop.permute.xlu2 %1945 }
0x107e   :  { %v3581_v11 = vpop.permute.xlu0 %3580 }
0x107f   :  { %3593 = vmatpush.bf16.msra.mxu1 %v3581_v11 }
0x1082   :  { %4076 = vmatmul.msk.bf16.vlgmr.msra.gmra.mxu1 %vm437_vm5, %v4075_v12  ;;  %vm3639_vm5 = vcmask 1041920  }
0x1086   :  { %v3619_v38 = vpop.permute.xlu0 %3618 }
0x108e   :  { %v1932_v16 = vpop.permute.xlu0 %1931 }
0x108f   :  { %v1935_v18 = vmul.f32 %v1932_v16, %v5195_v23 }
0x1091   :  { %v1949_v21 = vadd.f32 %v1946_v20, %v1935_v18  ;;  %v3569_v22 = vpop.f32.mrf.mxu0 }
0x1093   :  { %v1951_v17 = vmax.f32 %v1949_v21, 0.0 }
0x1095   :  { %1953 = vst.msk [vmem:[%s5692_s7 + $0x8] sm:$0x3] %vm5684_vm1, %v1951_v17 }
0x1099   :  { %v3571_v8 = vpop.f32.mrf.mxu0 }
0x10ff   :  { %v3595_v24 = vpop.f32.mrf.mxu1 }
0x1100   :  { %v3596_v25 = vadd.f32 %v3595_v24, %v3569_v22 }
0x1102   :  { %v3612_v15 = vmul.f32 %v3605_v55, %v3596_v25 }
0x1104   :  { %v3626_v10 = vadd.f32 %v3619_v38, %v3612_v15 }
0x1106   :  { %v3628_v26 = vmax.f32 %v3626_v10, 0.0 }
0x1107   :  { %v3597_v14 = vpop.f32.mrf.mxu1 }
0x1108   :  { %v3598_v13 = vadd.f32 %v3597_v14, %v3571_v8  ;;  %3632 = vrot.lane.b32.xlu0 %v3628_v26, %s5682_s3 }
0x110a   :  { %v3613_v29 = vmul.f32 %v3610_v60, %v3598_v13 }
0x110c   :  { %v3627_v23 = vadd.f32 %v3624_v56, %v3613_v29 }
0x110e   :  { %v3629_v30 = vmax.f32 %v3627_v23, 0.0 }
0x1110   :  { %3634 = vrot.lane.b32.xlu1 %v3629_v30, %s5682_s3 }
0x117a   :  { %v3633_v48 = vpop.permute.xlu0 %3632 }
0x117b   :  { %3638 = vst.msk [vmem:[%s5692_s7] sm:$0xff] %vm3487_vm4, %v3633_v48 }
0x1182   :  { %v3635_v9 = vpop.permute.xlu1 %3634 }
0x1183   :  { %3640 = vst.msk [vmem:[%s5692_s7 + $0x8] sm:$0x3] %vm3639_vm5, %v3635_v9 }
0x1184   :  { %3653 = vsyncpa [#allocation15], 1 }
0x1185   :  { %3654 = vsyncpa [#allocation17], 1 }
0x1186   :  { %3655 = vsyncpa [#allocation20], 1 }

</bundles_post_ra>
